<compile_context>
chip_gen: v5e
topology: v5e:2x2
jax: 0.10.0
libtpu: 0.0.40
codegen_flags: <defaults>
</compile_context>

<pallas_src>
import jax
import jax.numpy as jnp
from jax.experimental import pallas as pl
from jax.experimental.pallas import tpu as pltpu

LANE = 128


def _relu(v):
    return jnp.maximum(v, 0.0)


def _ceil_to(v, m):
    return (v + m - 1) // m * m


# ---------------------------------------------------------------------------
# Layout helpers (network boundary only; blocks exchange the canonical format)
# ---------------------------------------------------------------------------
def _to_canonical(x_nchw, cpad):
    """NCHW f32 -> flat zero-bordered NHWC bf16: (N, (H+3)*(W+2), cpad)."""
    n, c, h, w = x_nchw.shape
    x = jnp.transpose(x_nchw.astype(jnp.bfloat16), (0, 2, 3, 1))   # bf16 first
    x = jnp.pad(x, ((0, 0), (1, 2), (1, 1), (0, cpad - c)))
    return x.reshape(n, (h + 3) * (w + 2), cpad)


def _to_padded_nhwc(x_nchw, cpad):
    n, c, h, w = x_nchw.shape
    x = jnp.transpose(x_nchw.astype(jnp.bfloat16), (0, 2, 3, 1))   # bf16 first
    return jnp.pad(x, ((0, 0), (1, 1), (1, 1), (0, cpad - c)))


def _canonical_to_padded_nhwc(x_can, h, w, cpad):
    n = x_can.shape[0]
    return x_can.reshape(n, h + 3, w + 2, cpad)[:, : h + 2]


def _phase_from_padded(xpad):
    """Space-to-depth phase layout for stride-2 blocks.

    xpad: (N, H+2, W+2, cpad) bf16 with a 1-pixel zero border (H, W even).
    Returns (N, 4, (H//2 + 2) * (W//2 + 2), cpad): four phase images, each a
    flat slab of width Wflat = W//2 + 2 with one guard row/col so every
    in-kernel tap slice stays in bounds.
    """
    n, hp, wp, cpad = xpad.shape
    hs, ws = hp // 2, wp // 2
    hout, wout = hs - 1, ws - 1
    wflat = wout + 2
    xph = xpad.reshape(n, hs, 2, ws, 2, cpad).transpose(0, 2, 4, 1, 3, 5)
    xph = jnp.pad(xph, ((0, 0), (0, 0), (0, 0),
                        (0, hout + 2 - hs), (0, wflat - ws), (0, 0)))
    return xph.reshape(n, 4, (hout + 2) * wflat, cpad)


def _from_canonical(y_can, channels, h, w):
    """Canonical flat bf16 -> NCHW f32 (network boundary only)."""
    n, _, cpad = y_can.shape
    y = y_can.reshape(n, h + 3, w + 2, cpad)[:, 1:1 + h, 1:1 + w, :channels]
    return jnp.transpose(y, (0, 3, 1, 2)).astype(jnp.float32)


# ---------------------------------------------------------------------------
# Kernel
# ---------------------------------------------------------------------------
def _make_block_kernel(s, hout, wflat, cp, pp, has_proj, activation):
    wout = wflat - 2
    m2 = hout * wflat                  # computed rows (incl. 2 wrap cols / row)
    rows = (hout + 3) * wflat          # canonical slab rows (incl. guard row)
    top = wflat + 1                    # leading zero-border rows of the slab
    interior_end = top + m2            # == (hout+1)*wflat + 1
    nbot = rows - interior_end         # == 2*wflat - 1 trailing zero rows

    def conv1_tap(x_ref, kh, kw):
        if s == 1:
            return x_ref[pl.ds(kh * wflat + kw, m2), :]
        phase = (kh % 2) * 2 + (kw % 2)
        return x_ref[phase, pl.ds((kh // 2) * wflat + (kw // 2), m2), :]

    def kernel(*refs):
        if has_proj:
            (x_ref, w1_ref, b1_ref, w2_ref, b2_ref,
             ws_ref, bs_ref, out_ref, scr_ref) = refs
        else:
            (x_ref, w1_ref, b1_ref, w2_ref, b2_ref,
             out_ref, scr_ref) = refs

        # Rows whose flat column index is a "wrap" column must be zeroed on
        # store: they land exactly on the canonical slab's border columns.
        col = jax.lax.broadcasted_iota(jnp.int32, (m2, 1), 0) % wflat
        valid = col < wout

        # ---- conv1: 3x3 / stride s as 9 accumulated K=cp MXU matmuls.
        #      Every tap is a pure static-offset slice (no im2col copies).
        # TODO(synk): on v6e/v7x a fused K=3*cp/9*cp form fills the 256-deep
        # MXU better at the cost of concat copies; 9 x K=128 is the copy-free
        # form preferred for v5e and keeps VMEM small.
        acc1 = jnp.dot(conv1_tap(x_ref, 0, 0), w1_ref[0],
                       preferred_element_type=jnp.float32)
        for kh in range(3):
            for kw in range(3):
                if kh == 0 and kw == 0:
                    continue
                acc1 = acc1 + jnp.dot(conv1_tap(x_ref, kh, kw),
                                      w1_ref[kh * 3 + kw],
                                      preferred_element_type=jnp.float32)
        act1 = activation(acc1 + b1_ref[...])

        # ---- stage conv1's activation into a canonical zero-border scratch
        #      so conv2's taps are flat offset slices too.  Borders re-zeroed
        #      every grid step (scratch is per-core / persistent).
        # TODO(synk): switch to an f32 scratch if bf16 act1 accuracy drifts
        # over a deep network.
        scr_ref[pl.ds(0, top), :] = jnp.zeros((top, pp), jnp.bfloat16)
        scr_ref[pl.ds(interior_end, nbot), :] = jnp.zeros((nbot, pp),
                                                          jnp.bfloat16)
        scr_ref[pl.ds(top, m2), :] = jnp.where(valid, act1,
                                               0.0).astype(jnp.bfloat16)

        # ---- conv2: 3x3 / stride 1, same 9-matmul accumulation.
        acc2 = jnp.dot(scr_ref[pl.ds(0, m2), :], w2_ref[0],
                       preferred_element_type=jnp.float32)
        for kh in range(3):
            for kw in range(3):
                if kh == 0 and kw == 0:
                    continue
                acc2 = acc2 + jnp.dot(scr_ref[pl.ds(kh * wflat + kw, m2), :],
                                      w2_ref[kh * 3 + kw],
                                      preferred_element_type=jnp.float32)
        acc2 = acc2 + b2_ref[...]

        # ---- shortcut: the conv1 centre tap IS the (strided) input pixel.
        center = conv1_tap(x_ref, 1, 1)
        if has_proj:
            acc2 = acc2 + jnp.dot(center, ws_ref[...],
                                  preferred_element_type=jnp.float32)
            acc2 = acc2 + bs_ref[...]
        else:
            acc2 = acc2 + center.astype(jnp.float32)        # cp == pp here

        out = jnp.where(valid, activation(acc2), 0.0).astype(out_ref.dtype)

        # ---- emit the canonical bf16 slab (directly the next block's input).
        out_ref[pl.ds(0, top), :] = jnp.zeros((top, pp), out_ref.dtype)
        out_ref[pl.ds(interior_end, nbot), :] = jnp.zeros((nbot, pp),
                                                          out_ref.dtype)
        out_ref[pl.ds(top, m2), :] = out

    return kernel


def _vmem_limit_bytes():
    # Derive the scoped-VMEM limit from the hardware instead of hard-coding
    # 32 MiB (v5e/v6e: 128 MiB physical, v7x: 64 MiB per TensorCore).
    try:
        cap = int(pltpu.get_tpu_info().vmem_capacity_bytes)
    except Exception:
        cap = 64 * 1024 * 1024
    return max(32 * 1024 * 1024, min(cap * 3 // 4, 96 * 1024 * 1024))


def basic_block_forward(x, params, stride, height, width, activation=_relu):
    """One BasicBlock forward pass.

    x: raw NCHW f32 (N, Cin, H, W) — converted at this (network) boundary, or
       canonical flat bf16 (N, (H+3)*(W+2), Cpad) from a previous block.
    Returns the canonical flat bf16 slab (N, (H//s+3)*(W//s+2), Ppad).
    """
    w1, b1, w2, b2, ws, bs = params        # ws/bs None -> identity shortcut
    planes, cin = int(w1.shape[0]), int(w1.shape[1])
    s = int(stride)
    assert s in (1, 2)
    if s == 2:
        # TODO(synk): odd spatial sizes (e.g. 7 -> stride 2) need explicit
        # handling before this covers every possible ResNet stage.
        assert height % 2 == 0 and width % 2 == 0
    cp = _ceil_to(cin, LANE)
    pp = _ceil_to(planes, LANE)
    has_proj = ws is not None
    if not has_proj:
        assert s == 1 and cin == planes, "identity shortcut needs same shape"

    hout, wout = height // s, width // s
    wflat = wout + 2
    rows_out = (hout + 3) * wflat

    # ---- input formatting (raw NCHW or the stride-2 phase split only).
    if s == 2:
        xpad = (_to_padded_nhwc(x, cp) if x.ndim == 4
                else _canonical_to_padded_nhwc(x, height, width, cp))
        x_fmt = _phase_from_padded(xpad)          # (N, 4, (hout+2)*wflat, cp)
    else:
        x_fmt = _to_canonical(x, cp) if x.ndim == 4 else x
    n = x_fmt.shape[0]
    if s == 1:
        assert x_fmt.shape == (n, (height + 3) * (width + 2), cp)

    # ---- weights: (out,in,3,3) -> tap-major (9, Cin_pad, Out_pad) bf16.
    w1_k = jnp.pad(jnp.transpose(w1, (2, 3, 1, 0)),
                   ((0, 0), (0, 0), (0, cp - cin), (0, pp - planes)))
    w1_k = w1_k.reshape(9, cp, pp).astype(jnp.bfloat16)
    w2_k = jnp.pad(jnp.transpose(w2, (2, 3, 1, 0)),
                   ((0, 0), (0, 0), (0, pp - planes), (0, pp - planes)))
    w2_k = w2_k.reshape(9, pp, pp).astype(jnp.bfloat16)
    b1_k = jnp.pad(b1, (0, pp - planes)).reshape(1, pp).astype(jnp.float32)
    b2_k = jnp.pad(b2, (0, pp - planes)).reshape(1, pp).astype(jnp.float32)

    def resident(shape):
        # Constant index_map -> block stays resident in VMEM across the grid.
        # TODO(synk): pipeline_mode=pl.Buffered(1) would drop the useless
        # second buffer of these constant blocks for extra v7x VMEM headroom.
        zeros = (0,) * len(shape)
        return pl.BlockSpec(shape, lambda nn, _z=zeros: _z)

    inputs = [x_fmt, w1_k, b1_k, w2_k, b2_k]
    in_specs = [
        (pl.BlockSpec((None, 4, (hout + 2) * wflat, cp),
                      lambda nn: (nn, 0, 0, 0))
         if s == 2 else
         pl.BlockSpec((None, (height + 3) * (width + 2), cp),
                      lambda nn: (nn, 0, 0))),
        resident((9, cp, pp)), resident((1, pp)),
        resident((9, pp, pp)), resident((1, pp)),
    ]
    if has_proj:
        ws_k = jnp.pad(jnp.transpose(ws[:, :, 0, 0], (1, 0)),
                       ((0, cp - cin), (0, pp - planes))).astype(jnp.bfloat16)
        bs_k = jnp.pad(bs, (0, pp - planes)).reshape(1, pp).astype(jnp.float32)
        inputs += [ws_k, bs_k]
        in_specs += [resident((cp, pp)), resident((1, pp))]

    kernel = _make_block_kernel(s, hout, wflat, cp, pp, has_proj, activation)

    m_valid = hout * wout
    flops = 2 * n * m_valid * pp * (9 * cp + 9 * pp + (cp if has_proj else 0))
    bytes_accessed = int(sum(int(a.size) * a.dtype.itemsize for a in inputs)
                         + n * rows_out * pp * 2)

    # TODO(synk): for production stage-1 shapes add a second "parallel" grid
    # axis over output row bands (1-row halo) so each step fits v7x's
    # 64 MiB/TC VMEM and both TensorCores stay busy at batch 1; for 7x7/14x14
    # stages block several batch elements per step to keep the MXU M-dim big.
    out = pl.pallas_call(
        kernel,
        out_shape=jax.ShapeDtypeStruct((n, rows_out, pp), jnp.bfloat16),
        grid=(n,),
        in_specs=in_specs,
        out_specs=pl.BlockSpec((None, rows_out, pp), lambda nn: (nn, 0, 0)),
        scratch_shapes=[pltpu.VMEM((rows_out, pp), jnp.bfloat16)],
        compiler_params=pltpu.CompilerParams(
            dimension_semantics=("parallel",),
            vmem_limit_bytes=_vmem_limit_bytes()),
        cost_estimate=pl.CostEstimate(flops=flops, transcendentals=0,
                                      bytes_accessed=bytes_accessed),
    )(*inputs)
    return out


# ---------------------------------------------------------------------------
# Pure-JAX f32 reference with PyTorch Conv2d semantics
# ---------------------------------------------------------------------------
def _reference(x_nchw, params, stride):
    w1, b1, w2, b2, ws, bs = params
    dn = ("NCHW", "OIHW", "NCHW")
    out = jax.lax.conv_general_dilated(x_nchw, w1, (stride, stride),
                                       ((1, 1), (1, 1)), dimension_numbers=dn)
    out = jnp.maximum(out + b1[None, :, None, None], 0.0)
    out = jax.lax.conv_general_dilated(out, w2, (1, 1),
                                       ((1, 1), (1, 1)), dimension_numbers=dn)
    out = out + b2[None, :, None, None]
    if ws is None:
        sc = x_nchw
    else:
        sc = jax.lax.conv_general_dilated(x_nchw, ws, (stride, stride),
                                          ((0, 0), (0, 0)),
                                          dimension_numbers=dn)
        sc = sc + bs[None, :, None, None]
    return jnp.maximum(out + sc, 0.0)


if __name__ == "__main__":
    # A 2-block stage like _make_layer(planes=8, stride=2): one stride-2
    # projection block followed by one identity block.
    N, Cin, H, W = 2, 4, 16, 16
    planes = 8

    key = jax.random.PRNGKey(0)
    keys = jax.random.split(key, 13)
    x = jax.random.normal(keys[0], (N, Cin, H, W), dtype=jnp.float32)

    def make_block_params(ks, cin, cout, stride):
        w1 = 0.1 * jax.random.normal(ks[0], (cout, cin, 3, 3), jnp.float32)
        b1 = 0.1 * jax.random.normal(ks[1], (cout,), jnp.float32)
        w2 = 0.1 * jax.random.normal(ks[2], (cout, cout, 3, 3), jnp.float32)
        b2 = 0.1 * jax.random.normal(ks[3], (cout,), jnp.float32)
        if stride != 1 or cin != cout:
            ws = 0.1 * jax.random.normal(ks[4], (cout, cin, 1, 1), jnp.float32)
            bs = 0.1 * jax.random.normal(ks[5], (cout,), jnp.float32)
        else:
            ws, bs = None, None
        return (w1, b1, w2, b2, ws, bs)

    p1 = make_block_params(keys[1:7], Cin, planes, stride=2)      # projection
    p2 = make_block_params(keys[7:13], planes, planes, stride=1)  # identity

    # Block 1: raw NCHW in (boundary conversion), canonical bf16 slab out.
    y1 = basic_block_forward(x, p1, stride=2, height=H, width=W)
    # Block 2: consumes block-1's canonical output directly — no per-block
    # transpose / pad between blocks.
    y2 = basic_block_forward(y1, p2, stride=1, height=H // 2, width=W // 2)
    y2 = jax.block_until_ready(y2)

    # Single conversion back to NCHW f32 at the network boundary.
    y = jax.block_until_ready(_from_canonical(y2, planes, H // 2, W // 2))

    y_ref = jax.block_until_ready(_reference(_reference(x, p1, 2), p2, 1))

    assert y.shape == y_ref.shape == (N, planes, H // 2, W // 2)
    max_err = float(jnp.max(jnp.abs(y - y_ref)))
    # bf16 inputs/weights with f32 accumulation vs. an all-f32 reference.
    assert jnp.allclose(y, y_ref, rtol=5e-2, atol=5e-2), max_err

    print("KERNEL_OK")
</pallas_src>

<mosaic_0001>
module attributes {stable_mosaic.version = 11 : i64} {
  func.func @kernel(%arg0: i32, %arg1: memref<1x4x100x128xbf16, #tpu.memory_space<vmem>>, %arg2: memref<9x128x128xbf16, #tpu.memory_space<vmem>>, %arg3: memref<1x128xf32, #tpu.memory_space<vmem>>, %arg4: memref<9x128x128xbf16, #tpu.memory_space<vmem>>, %arg5: memref<1x128xf32, #tpu.memory_space<vmem>>, %arg6: memref<128x128xbf16, #tpu.memory_space<vmem>>, %arg7: memref<1x128xf32, #tpu.memory_space<vmem>>, %arg8: memref<1x110x128xbf16, #tpu.memory_space<vmem>>, %arg9: memref<110x128xbf16, #tpu.memory_space<vmem>>) attributes {dimension_semantics = [#tpu.dimension_semantics<parallel>], iteration_bounds = array<i64: 2>, scalar_prefetch = 0 : i64, scratch_operands = 1 : i64, tpu.core_type = #tpu.core_type<tc>, window_params = [{transform_indices = @transform_0, window_bounds = array<i64: 1, 4, 100, 128>}, {pipeline_mode = #tpu.pipeline_mode<synchronous>, transform_indices = @transform_1, window_bounds = array<i64: 9, 128, 128>}, {pipeline_mode = #tpu.pipeline_mode<synchronous>, transform_indices = @transform_2, window_bounds = array<i64: 1, 128>}, {pipeline_mode = #tpu.pipeline_mode<synchronous>, transform_indices = @transform_3, window_bounds = array<i64: 9, 128, 128>}, {pipeline_mode = #tpu.pipeline_mode<synchronous>, transform_indices = @transform_4, window_bounds = array<i64: 1, 128>}, {pipeline_mode = #tpu.pipeline_mode<synchronous>, transform_indices = @transform_5, window_bounds = array<i64: 128, 128>}, {pipeline_mode = #tpu.pipeline_mode<synchronous>, transform_indices = @transform_6, window_bounds = array<i64: 1, 128>}, {transform_indices = @transform_7, window_bounds = array<i64: 1, 110, 128>}]} {
    %0 = tpu.iota {dimensions = array<i32: 0>} : vector<80x1xi32>
    %c10_i32 = arith.constant 10 : i32
    %c0_i32 = arith.constant 0 : i32
    %1 = arith.cmpi eq, %c10_i32, %c0_i32 : i32
    %c1_i32 = arith.constant 1 : i32
    %2 = arith.select %1, %c1_i32, %c10_i32 : i32
    %3 = vector.broadcast %2 : i32 to vector<80x1xi32>
    %4 = arith.remsi %0, %3 : vector<80x1xi32>
    %c0_i32_0 = arith.constant 0 : i32
    %5 = vector.broadcast %c0_i32_0 : i32 to vector<80x1xi32>
    %6 = arith.cmpi ne, %4, %5 : vector<80x1xi32>
    %c0_i32_1 = arith.constant 0 : i32
    %7 = vector.broadcast %c0_i32_1 : i32 to vector<80x1xi32>
    %8 = arith.cmpi slt, %4, %7 : vector<80x1xi32>
    %c0_i32_2 = arith.constant 0 : i32
    %9 = arith.cmpi slt, %2, %c0_i32_2 : i32
    %10 = vector.broadcast %9 : i1 to vector<80x1xi1>
    %11 = vector.broadcast %10 : vector<80x1xi1> to vector<80x1xi1>
    %12 = arith.xori %8, %11 : vector<80x1xi1>
    %13 = arith.andi %12, %6 : vector<80x1xi1>
    %14 = vector.broadcast %2 : i32 to vector<80x1xi32>
    %15 = arith.addi %4, %14 : vector<80x1xi32>
    %16 = arith.select %13, %15, %4 : vector<80x1xi1>, vector<80x1xi32>
    %c8_i32 = arith.constant 8 : i32
    %17 = vector.broadcast %c8_i32 : i32 to vector<80x1xi32>
    %18 = arith.cmpi slt, %16, %17 : vector<80x1xi32>
    %c0 = arith.constant 0 : index
    %c0_3 = arith.constant 0 : index
    %c0_4 = arith.constant 0 : index
    %c0_5 = arith.constant 0 : index
    %19 = vector.load %arg1[%c0, %c0_3, %c0_4, %c0_5] : memref<1x4x100x128xbf16, #tpu.memory_space<vmem>>, vector<1x1x80x128xbf16>
    %20 = vector.shape_cast %19 : vector<1x1x80x128xbf16> to vector<80x128xbf16>
    %c0_6 = arith.constant 0 : index
    %c0_7 = arith.constant 0 : index
    %c0_8 = arith.constant 0 : index
    %21 = vector.load %arg2[%c0_6, %c0_7, %c0_8] : memref<9x128x128xbf16, #tpu.memory_space<vmem>>, vector<1x128x128xbf16>
    %22 = vector.shape_cast %21 : vector<1x128x128xbf16> to vector<128x128xbf16>
    %cst = arith.constant dense<0.000000e+00> : vector<80x128xf32>
    %23 = tpu.matmul %20, %22, %cst {dimension_numbers = #tpu.dot_dimension_numbers<[1], [0], [0], [1], [0, 0, 1, 1], [], []>} : vector<80x128xbf16>, vector<128x128xbf16>, vector<80x128xf32> -> vector<80x128xf32>
    %c0_9 = arith.constant 0 : index
    %c1 = arith.constant 1 : index
    %c0_10 = arith.constant 0 : index
    %c0_11 = arith.constant 0 : index
    %24 = vector.load %arg1[%c0_9, %c1, %c0_10, %c0_11] : memref<1x4x100x128xbf16, #tpu.memory_space<vmem>>, vector<1x1x80x128xbf16>
    %25 = vector.shape_cast %24 : vector<1x1x80x128xbf16> to vector<80x128xbf16>
    %c1_12 = arith.constant 1 : index
    %c0_13 = arith.constant 0 : index
    %c0_14 = arith.constant 0 : index
    %26 = vector.load %arg2[%c1_12, %c0_13, %c0_14] : memref<9x128x128xbf16, #tpu.memory_space<vmem>>, vector<1x128x128xbf16>
    %27 = vector.shape_cast %26 : vector<1x128x128xbf16> to vector<128x128xbf16>
    %cst_15 = arith.constant dense<0.000000e+00> : vector<80x128xf32>
    %28 = tpu.matmul %25, %27, %cst_15 {dimension_numbers = #tpu.dot_dimension_numbers<[1], [0], [0], [1], [0, 0, 1, 1], [], []>} : vector<80x128xbf16>, vector<128x128xbf16>, vector<80x128xf32> -> vector<80x128xf32>
    %29 = arith.addf %23, %28 : vector<80x128xf32>
    %c0_16 = arith.constant 0 : index
    %c0_17 = arith.constant 0 : index
    %c1_18 = arith.constant 1 : index
    %c0_19 = arith.constant 0 : index
    %30 = vector.load %arg1[%c0_16, %c0_17, %c1_18, %c0_19] : memref<1x4x100x128xbf16, #tpu.memory_space<vmem>>, vector<1x1x80x128xbf16>
    %31 = vector.shape_cast %30 : vector<1x1x80x128xbf16> to vector<80x128xbf16>
    %c2 = arith.constant 2 : index
    %c0_20 = arith.constant 0 : index
    %c0_21 = arith.constant 0 : index
    %32 = vector.load %arg2[%c2, %c0_20, %c0_21] : memref<9x128x128xbf16, #tpu.memory_space<vmem>>, vector<1x128x128xbf16>
    %33 = vector.shape_cast %32 : vector<1x128x128xbf16> to vector<128x128xbf16>
    %cst_22 = arith.constant dense<0.000000e+00> : vector<80x128xf32>
    %34 = tpu.matmul %31, %33, %cst_22 {dimension_numbers = #tpu.dot_dimension_numbers<[1], [0], [0], [1], [0, 0, 1, 1], [], []>} : vector<80x128xbf16>, vector<128x128xbf16>, vector<80x128xf32> -> vector<80x128xf32>
    %35 = arith.addf %29, %34 : vector<80x128xf32>
    %c0_23 = arith.constant 0 : index
    %c2_24 = arith.constant 2 : index
    %c0_25 = arith.constant 0 : index
    %c0_26 = arith.constant 0 : index
    %36 = vector.load %arg1[%c0_23, %c2_24, %c0_25, %c0_26] : memref<1x4x100x128xbf16, #tpu.memory_space<vmem>>, vector<1x1x80x128xbf16>
    %37 = vector.shape_cast %36 : vector<1x1x80x128xbf16> to vector<80x128xbf16>
    %c3 = arith.constant 3 : index
    %c0_27 = arith.constant 0 : index
    %c0_28 = arith.constant 0 : index
    %38 = vector.load %arg2[%c3, %c0_27, %c0_28] : memref<9x128x128xbf16, #tpu.memory_space<vmem>>, vector<1x128x128xbf16>
    %39 = vector.shape_cast %38 : vector<1x128x128xbf16> to vector<128x128xbf16>
    %cst_29 = arith.constant dense<0.000000e+00> : vector<80x128xf32>
    %40 = tpu.matmul %37, %39, %cst_29 {dimension_numbers = #tpu.dot_dimension_numbers<[1], [0], [0], [1], [0, 0, 1, 1], [], []>} : vector<80x128xbf16>, vector<128x128xbf16>, vector<80x128xf32> -> vector<80x128xf32>
    %41 = arith.addf %35, %40 : vector<80x128xf32>
    %c0_30 = arith.constant 0 : index
    %c3_31 = arith.constant 3 : index
    %c0_32 = arith.constant 0 : index
    %c0_33 = arith.constant 0 : index
    %42 = vector.load %arg1[%c0_30, %c3_31, %c0_32, %c0_33] : memref<1x4x100x128xbf16, #tpu.memory_space<vmem>>, vector<1x1x80x128xbf16>
    %43 = vector.shape_cast %42 : vector<1x1x80x128xbf16> to vector<80x128xbf16>
    %c4 = arith.constant 4 : index
    %c0_34 = arith.constant 0 : index
    %c0_35 = arith.constant 0 : index
    %44 = vector.load %arg2[%c4, %c0_34, %c0_35] : memref<9x128x128xbf16, #tpu.memory_space<vmem>>, vector<1x128x128xbf16>
    %45 = vector.shape_cast %44 : vector<1x128x128xbf16> to vector<128x128xbf16>
    %cst_36 = arith.constant dense<0.000000e+00> : vector<80x128xf32>
    %46 = tpu.matmul %43, %45, %cst_36 {dimension_numbers = #tpu.dot_dimension_numbers<[1], [0], [0], [1], [0, 0, 1, 1], [], []>} : vector<80x128xbf16>, vector<128x128xbf16>, vector<80x128xf32> -> vector<80x128xf32>
    %47 = arith.addf %41, %46 : vector<80x128xf32>
    %c0_37 = arith.constant 0 : index
    %c2_38 = arith.constant 2 : index
    %c1_39 = arith.constant 1 : index
    %c0_40 = arith.constant 0 : index
    %48 = vector.load %arg1[%c0_37, %c2_38, %c1_39, %c0_40] : memref<1x4x100x128xbf16, #tpu.memory_space<vmem>>, vector<1x1x80x128xbf16>
    %49 = vector.shape_cast %48 : vector<1x1x80x128xbf16> to vector<80x128xbf16>
    %c5 = arith.constant 5 : index
    %c0_41 = arith.constant 0 : index
    %c0_42 = arith.constant 0 : index
    %50 = vector.load %arg2[%c5, %c0_41, %c0_42] : memref<9x128x128xbf16, #tpu.memory_space<vmem>>, vector<1x128x128xbf16>
    %51 = vector.shape_cast %50 : vector<1x128x128xbf16> to vector<128x128xbf16>
    %cst_43 = arith.constant dense<0.000000e+00> : vector<80x128xf32>
    %52 = tpu.matmul %49, %51, %cst_43 {dimension_numbers = #tpu.dot_dimension_numbers<[1], [0], [0], [1], [0, 0, 1, 1], [], []>} : vector<80x128xbf16>, vector<128x128xbf16>, vector<80x128xf32> -> vector<80x128xf32>
    %53 = arith.addf %47, %52 : vector<80x128xf32>
    %c0_44 = arith.constant 0 : index
    %c0_45 = arith.constant 0 : index
    %c10 = arith.constant 10 : index
    %c0_46 = arith.constant 0 : index
    %54 = vector.load %arg1[%c0_44, %c0_45, %c10, %c0_46] : memref<1x4x100x128xbf16, #tpu.memory_space<vmem>>, vector<1x1x80x128xbf16>
    %55 = vector.shape_cast %54 : vector<1x1x80x128xbf16> to vector<80x128xbf16>
    %c6 = arith.constant 6 : index
    %c0_47 = arith.constant 0 : index
    %c0_48 = arith.constant 0 : index
    %56 = vector.load %arg2[%c6, %c0_47, %c0_48] : memref<9x128x128xbf16, #tpu.memory_space<vmem>>, vector<1x128x128xbf16>
    %57 = vector.shape_cast %56 : vector<1x128x128xbf16> to vector<128x128xbf16>
    %cst_49 = arith.constant dense<0.000000e+00> : vector<80x128xf32>
    %58 = tpu.matmul %55, %57, %cst_49 {dimension_numbers = #tpu.dot_dimension_numbers<[1], [0], [0], [1], [0, 0, 1, 1], [], []>} : vector<80x128xbf16>, vector<128x128xbf16>, vector<80x128xf32> -> vector<80x128xf32>
    %59 = arith.addf %53, %58 : vector<80x128xf32>
    %c0_50 = arith.constant 0 : index
    %c1_51 = arith.constant 1 : index
    %c10_52 = arith.constant 10 : index
    %c0_53 = arith.constant 0 : index
    %60 = vector.load %arg1[%c0_50, %c1_51, %c10_52, %c0_53] : memref<1x4x100x128xbf16, #tpu.memory_space<vmem>>, vector<1x1x80x128xbf16>
    %61 = vector.shape_cast %60 : vector<1x1x80x128xbf16> to vector<80x128xbf16>
    %c7 = arith.constant 7 : index
    %c0_54 = arith.constant 0 : index
    %c0_55 = arith.constant 0 : index
    %62 = vector.load %arg2[%c7, %c0_54, %c0_55] : memref<9x128x128xbf16, #tpu.memory_space<vmem>>, vector<1x128x128xbf16>
    %63 = vector.shape_cast %62 : vector<1x128x128xbf16> to vector<128x128xbf16>
    %cst_56 = arith.constant dense<0.000000e+00> : vector<80x128xf32>
    %64 = tpu.matmul %61, %63, %cst_56 {dimension_numbers = #tpu.dot_dimension_numbers<[1], [0], [0], [1], [0, 0, 1, 1], [], []>} : vector<80x128xbf16>, vector<128x128xbf16>, vector<80x128xf32> -> vector<80x128xf32>
    %65 = arith.addf %59, %64 : vector<80x128xf32>
    %c0_57 = arith.constant 0 : index
    %c0_58 = arith.constant 0 : index
    %c11 = arith.constant 11 : index
    %c0_59 = arith.constant 0 : index
    %66 = vector.load %arg1[%c0_57, %c0_58, %c11, %c0_59] : memref<1x4x100x128xbf16, #tpu.memory_space<vmem>>, vector<1x1x80x128xbf16>
    %67 = vector.shape_cast %66 : vector<1x1x80x128xbf16> to vector<80x128xbf16>
    %c8 = arith.constant 8 : index
    %c0_60 = arith.constant 0 : index
    %c0_61 = arith.constant 0 : index
    %68 = vector.load %arg2[%c8, %c0_60, %c0_61] : memref<9x128x128xbf16, #tpu.memory_space<vmem>>, vector<1x128x128xbf16>
    %69 = vector.shape_cast %68 : vector<1x128x128xbf16> to vector<128x128xbf16>
    %cst_62 = arith.constant dense<0.000000e+00> : vector<80x128xf32>
    %70 = tpu.matmul %67, %69, %cst_62 {dimension_numbers = #tpu.dot_dimension_numbers<[1], [0], [0], [1], [0, 0, 1, 1], [], []>} : vector<80x128xbf16>, vector<128x128xbf16>, vector<80x128xf32> -> vector<80x128xf32>
    %71 = arith.addf %65, %70 : vector<80x128xf32>
    %c0_63 = arith.constant 0 : index
    %c0_64 = arith.constant 0 : index
    %72 = vector.load %arg3[%c0_63, %c0_64] : memref<1x128xf32, #tpu.memory_space<vmem>>, vector<1x128xf32>
    %73 = vector.broadcast %72 : vector<1x128xf32> to vector<80x128xf32>
    %74 = arith.addf %71, %73 : vector<80x128xf32>
    %cst_65 = arith.constant 0.000000e+00 : f32
    %75 = vector.broadcast %cst_65 : f32 to vector<80x128xf32>
    %76 = arith.maximumf %74, %75 : vector<80x128xf32>
    %cst_66 = arith.constant 0.000000e+00 : bf16
    %77 = vector.broadcast %cst_66 : bf16 to vector<11x128xbf16>
    %c0_67 = arith.constant 0 : index
    %c0_68 = arith.constant 0 : index
    %78 = vector.load %arg9[%c0_67, %c0_68] : memref<110x128xbf16, #tpu.memory_space<vmem>>, vector<11x128xbf16>
    tpu.vector_store %arg9[%c0_67, %c0_68], %77 {strides = array<i32>} : memref<110x128xbf16, #tpu.memory_space<vmem>>, vector<11x128xbf16>,
    %cst_69 = arith.constant 0.000000e+00 : bf16
    %79 = vector.broadcast %cst_69 : bf16 to vector<19x128xbf16>
    %c91 = arith.constant 91 : index
    %c0_70 = arith.constant 0 : index
    %80 = vector.load %arg9[%c91, %c0_70] : memref<110x128xbf16, #tpu.memory_space<vmem>>, vector<19x128xbf16>
    tpu.vector_store %arg9[%c91, %c0_70], %79 {strides = array<i32>} : memref<110x128xbf16, #tpu.memory_space<vmem>>, vector<19x128xbf16>,
    %cst_71 = arith.constant 0.000000e+00 : f32
    %81 = vector.shape_cast %18 : vector<80x1xi1> to vector<80x1xi1>
    %82 = vector.broadcast %81 : vector<80x1xi1> to vector<80x128xi1>
    %83 = vector.broadcast %cst_71 : f32 to vector<80x128xf32>
    %84 = arith.select %82, %76, %83 : vector<80x128xi1>, vector<80x128xf32>
    %85 = arith.truncf %84 : vector<80x128xf32> to vector<80x128xbf16>
    %c11_72 = arith.constant 11 : index
    %c0_73 = arith.constant 0 : index
    %86 = vector.load %arg9[%c11_72, %c0_73] : memref<110x128xbf16, #tpu.memory_space<vmem>>, vector<80x128xbf16>
    tpu.vector_store %arg9[%c11_72, %c0_73], %85 {strides = array<i32>} : memref<110x128xbf16, #tpu.memory_space<vmem>>, vector<80x128xbf16>,
    %c0_74 = arith.constant 0 : index
    %c0_75 = arith.constant 0 : index
    %87 = vector.load %arg9[%c0_74, %c0_75] : memref<110x128xbf16, #tpu.memory_space<vmem>>, vector<80x128xbf16>
    %c0_76 = arith.constant 0 : index
    %c0_77 = arith.constant 0 : index
    %c0_78 = arith.constant 0 : index
    %88 = vector.load %arg4[%c0_76, %c0_77, %c0_78] : memref<9x128x128xbf16, #tpu.memory_space<vmem>>, vector<1x128x128xbf16>
    %89 = vector.shape_cast %88 : vector<1x128x128xbf16> to vector<128x128xbf16>
    %cst_79 = arith.constant dense<0.000000e+00> : vector<80x128xf32>
    %90 = tpu.matmul %87, %89, %cst_79 {dimension_numbers = #tpu.dot_dimension_numbers<[1], [0], [0], [1], [0, 0, 1, 1], [], []>} : vector<80x128xbf16>, vector<128x128xbf16>, vector<80x128xf32> -> vector<80x128xf32>
    %c1_80 = arith.constant 1 : index
    %c0_81 = arith.constant 0 : index
    %91 = vector.load %arg9[%c1_80, %c0_81] : memref<110x128xbf16, #tpu.memory_space<vmem>>, vector<80x128xbf16>
    %c1_82 = arith.constant 1 : index
    %c0_83 = arith.constant 0 : index
    %c0_84 = arith.constant 0 : index
    %92 = vector.load %arg4[%c1_82, %c0_83, %c0_84] : memref<9x128x128xbf16, #tpu.memory_space<vmem>>, vector<1x128x128xbf16>
    %93 = vector.shape_cast %92 : vector<1x128x128xbf16> to vector<128x128xbf16>
    %cst_85 = arith.constant dense<0.000000e+00> : vector<80x128xf32>
    %94 = tpu.matmul %91, %93, %cst_85 {dimension_numbers = #tpu.dot_dimension_numbers<[1], [0], [0], [1], [0, 0, 1, 1], [], []>} : vector<80x128xbf16>, vector<128x128xbf16>, vector<80x128xf32> -> vector<80x128xf32>
    %95 = arith.addf %90, %94 : vector<80x128xf32>
    %c2_86 = arith.constant 2 : index
    %c0_87 = arith.constant 0 : index
    %96 = vector.load %arg9[%c2_86, %c0_87] : memref<110x128xbf16, #tpu.memory_space<vmem>>, vector<80x128xbf16>
    %c2_88 = arith.constant 2 : index
    %c0_89 = arith.constant 0 : index
    %c0_90 = arith.constant 0 : index
    %97 = vector.load %arg4[%c2_88, %c0_89, %c0_90] : memref<9x128x128xbf16, #tpu.memory_space<vmem>>, vector<1x128x128xbf16>
    %98 = vector.shape_cast %97 : vector<1x128x128xbf16> to vector<128x128xbf16>
    %cst_91 = arith.constant dense<0.000000e+00> : vector<80x128xf32>
    %99 = tpu.matmul %96, %98, %cst_91 {dimension_numbers = #tpu.dot_dimension_numbers<[1], [0], [0], [1], [0, 0, 1, 1], [], []>} : vector<80x128xbf16>, vector<128x128xbf16>, vector<80x128xf32> -> vector<80x128xf32>
    %100 = arith.addf %95, %99 : vector<80x128xf32>
    %c10_92 = arith.constant 10 : index
    %c0_93 = arith.constant 0 : index
    %101 = vector.load %arg9[%c10_92, %c0_93] : memref<110x128xbf16, #tpu.memory_space<vmem>>, vector<80x128xbf16>
    %c3_94 = arith.constant 3 : index
    %c0_95 = arith.constant 0 : index
    %c0_96 = arith.constant 0 : index
    %102 = vector.load %arg4[%c3_94, %c0_95, %c0_96] : memref<9x128x128xbf16, #tpu.memory_space<vmem>>, vector<1x128x128xbf16>
    %103 = vector.shape_cast %102 : vector<1x128x128xbf16> to vector<128x128xbf16>
    %cst_97 = arith.constant dense<0.000000e+00> : vector<80x128xf32>
    %104 = tpu.matmul %101, %103, %cst_97 {dimension_numbers = #tpu.dot_dimension_numbers<[1], [0], [0], [1], [0, 0, 1, 1], [], []>} : vector<80x128xbf16>, vector<128x128xbf16>, vector<80x128xf32> -> vector<80x128xf32>
    %105 = arith.addf %100, %104 : vector<80x128xf32>
    %c11_98 = arith.constant 11 : index
    %c0_99 = arith.constant 0 : index
    %106 = vector.load %arg9[%c11_98, %c0_99] : memref<110x128xbf16, #tpu.memory_space<vmem>>, vector<80x128xbf16>
    %c4_100 = arith.constant 4 : index
    %c0_101 = arith.constant 0 : index
    %c0_102 = arith.constant 0 : index
    %107 = vector.load %arg4[%c4_100, %c0_101, %c0_102] : memref<9x128x128xbf16, #tpu.memory_space<vmem>>, vector<1x128x128xbf16>
    %108 = vector.shape_cast %107 : vector<1x128x128xbf16> to vector<128x128xbf16>
    %cst_103 = arith.constant dense<0.000000e+00> : vector<80x128xf32>
    %109 = tpu.matmul %106, %108, %cst_103 {dimension_numbers = #tpu.dot_dimension_numbers<[1], [0], [0], [1], [0, 0, 1, 1], [], []>} : vector<80x128xbf16>, vector<128x128xbf16>, vector<80x128xf32> -> vector<80x128xf32>
    %110 = arith.addf %105, %109 : vector<80x128xf32>
    %c12 = arith.constant 12 : index
    %c0_104 = arith.constant 0 : index
    %111 = vector.load %arg9[%c12, %c0_104] : memref<110x128xbf16, #tpu.memory_space<vmem>>, vector<80x128xbf16>
    %c5_105 = arith.constant 5 : index
    %c0_106 = arith.constant 0 : index
    %c0_107 = arith.constant 0 : index
    %112 = vector.load %arg4[%c5_105, %c0_106, %c0_107] : memref<9x128x128xbf16, #tpu.memory_space<vmem>>, vector<1x128x128xbf16>
    %113 = vector.shape_cast %112 : vector<1x128x128xbf16> to vector<128x128xbf16>
    %cst_108 = arith.constant dense<0.000000e+00> : vector<80x128xf32>
    %114 = tpu.matmul %111, %113, %cst_108 {dimension_numbers = #tpu.dot_dimension_numbers<[1], [0], [0], [1], [0, 0, 1, 1], [], []>} : vector<80x128xbf16>, vector<128x128xbf16>, vector<80x128xf32> -> vector<80x128xf32>
    %115 = arith.addf %110, %114 : vector<80x128xf32>
    %c20 = arith.constant 20 : index
    %c0_109 = arith.constant 0 : index
    %116 = vector.load %arg9[%c20, %c0_109] : memref<110x128xbf16, #tpu.memory_space<vmem>>, vector<80x128xbf16>
    %c6_110 = arith.constant 6 : index
    %c0_111 = arith.constant 0 : index
    %c0_112 = arith.constant 0 : index
    %117 = vector.load %arg4[%c6_110, %c0_111, %c0_112] : memref<9x128x128xbf16, #tpu.memory_space<vmem>>, vector<1x128x128xbf16>
    %118 = vector.shape_cast %117 : vector<1x128x128xbf16> to vector<128x128xbf16>
    %cst_113 = arith.constant dense<0.000000e+00> : vector<80x128xf32>
    %119 = tpu.matmul %116, %118, %cst_113 {dimension_numbers = #tpu.dot_dimension_numbers<[1], [0], [0], [1], [0, 0, 1, 1], [], []>} : vector<80x128xbf16>, vector<128x128xbf16>, vector<80x128xf32> -> vector<80x128xf32>
    %120 = arith.addf %115, %119 : vector<80x128xf32>
    %c21 = arith.constant 21 : index
    %c0_114 = arith.constant 0 : index
    %121 = vector.load %arg9[%c21, %c0_114] : memref<110x128xbf16, #tpu.memory_space<vmem>>, vector<80x128xbf16>
    %c7_115 = arith.constant 7 : index
    %c0_116 = arith.constant 0 : index
    %c0_117 = arith.constant 0 : index
    %122 = vector.load %arg4[%c7_115, %c0_116, %c0_117] : memref<9x128x128xbf16, #tpu.memory_space<vmem>>, vector<1x128x128xbf16>
    %123 = vector.shape_cast %122 : vector<1x128x128xbf16> to vector<128x128xbf16>
    %cst_118 = arith.constant dense<0.000000e+00> : vector<80x128xf32>
    %124 = tpu.matmul %121, %123, %cst_118 {dimension_numbers = #tpu.dot_dimension_numbers<[1], [0], [0], [1], [0, 0, 1, 1], [], []>} : vector<80x128xbf16>, vector<128x128xbf16>, vector<80x128xf32> -> vector<80x128xf32>
    %125 = arith.addf %120, %124 : vector<80x128xf32>
    %c22 = arith.constant 22 : index
    %c0_119 = arith.constant 0 : index
    %126 = vector.load %arg9[%c22, %c0_119] : memref<110x128xbf16, #tpu.memory_space<vmem>>, vector<80x128xbf16>
    %c8_120 = arith.constant 8 : index
    %c0_121 = arith.constant 0 : index
    %c0_122 = arith.constant 0 : index
    %127 = vector.load %arg4[%c8_120, %c0_121, %c0_122] : memref<9x128x128xbf16, #tpu.memory_space<vmem>>, vector<1x128x128xbf16>
    %128 = vector.shape_cast %127 : vector<1x128x128xbf16> to vector<128x128xbf16>
    %cst_123 = arith.constant dense<0.000000e+00> : vector<80x128xf32>
    %129 = tpu.matmul %126, %128, %cst_123 {dimension_numbers = #tpu.dot_dimension_numbers<[1], [0], [0], [1], [0, 0, 1, 1], [], []>} : vector<80x128xbf16>, vector<128x128xbf16>, vector<80x128xf32> -> vector<80x128xf32>
    %130 = arith.addf %125, %129 : vector<80x128xf32>
    %c0_124 = arith.constant 0 : index
    %c0_125 = arith.constant 0 : index
    %131 = vector.load %arg5[%c0_124, %c0_125] : memref<1x128xf32, #tpu.memory_space<vmem>>, vector<1x128xf32>
    %132 = vector.broadcast %131 : vector<1x128xf32> to vector<80x128xf32>
    %133 = arith.addf %130, %132 : vector<80x128xf32>
    %c0_126 = arith.constant 0 : index
    %c3_127 = arith.constant 3 : index
    %c0_128 = arith.constant 0 : index
    %c0_129 = arith.constant 0 : index
    %134 = vector.load %arg1[%c0_126, %c3_127, %c0_128, %c0_129] : memref<1x4x100x128xbf16, #tpu.memory_space<vmem>>, vector<1x1x80x128xbf16>
    %135 = vector.shape_cast %134 : vector<1x1x80x128xbf16> to vector<80x128xbf16>
    %c0_130 = arith.constant 0 : index
    %c0_131 = arith.constant 0 : index
    %136 = vector.load %arg6[%c0_130, %c0_131] : memref<128x128xbf16, #tpu.memory_space<vmem>>, vector<128x128xbf16>
    %cst_132 = arith.constant dense<0.000000e+00> : vector<80x128xf32>
    %137 = tpu.matmul %135, %136, %cst_132 {dimension_numbers = #tpu.dot_dimension_numbers<[1], [0], [0], [1], [0, 0, 1, 1], [], []>} : vector<80x128xbf16>, vector<128x128xbf16>, vector<80x128xf32> -> vector<80x128xf32>
    %138 = arith.addf %133, %137 : vector<80x128xf32>
    %c0_133 = arith.constant 0 : index
    %c0_134 = arith.constant 0 : index
    %139 = vector.load %arg7[%c0_133, %c0_134] : memref<1x128xf32, #tpu.memory_space<vmem>>, vector<1x128xf32>
    %140 = vector.broadcast %139 : vector<1x128xf32> to vector<80x128xf32>
    %141 = arith.addf %138, %140 : vector<80x128xf32>
    %cst_135 = arith.constant 0.000000e+00 : f32
    %142 = vector.broadcast %cst_135 : f32 to vector<80x128xf32>
    %143 = arith.maximumf %141, %142 : vector<80x128xf32>
    %cst_136 = arith.constant 0.000000e+00 : f32
    %144 = vector.shape_cast %18 : vector<80x1xi1> to vector<80x1xi1>
    %145 = vector.broadcast %144 : vector<80x1xi1> to vector<80x128xi1>
    %146 = vector.broadcast %cst_136 : f32 to vector<80x128xf32>
    %147 = arith.select %145, %143, %146 : vector<80x128xi1>, vector<80x128xf32>
    %148 = arith.truncf %147 : vector<80x128xf32> to vector<80x128xbf16>
    %cst_137 = arith.constant 0.000000e+00 : bf16
    %149 = vector.broadcast %cst_137 : bf16 to vector<11x128xbf16>
    %c0_138 = arith.constant 0 : index
    %c0_139 = arith.constant 0 : index
    %c0_140 = arith.constant 0 : index
    %150 = vector.load %arg8[%c0_138, %c0_139, %c0_140] : memref<1x110x128xbf16, #tpu.memory_space<vmem>>, vector<1x11x128xbf16>
    %151 = vector.shape_cast %150 : vector<1x11x128xbf16> to vector<11x128xbf16>
    %152 = vector.shape_cast %149 : vector<11x128xbf16> to vector<1x11x128xbf16>
    tpu.vector_store %arg8[%c0_138, %c0_139, %c0_140], %152 {strides = array<i32>} : memref<1x110x128xbf16, #tpu.memory_space<vmem>>, vector<1x11x128xbf16>,
    %cst_141 = arith.constant 0.000000e+00 : bf16
    %153 = vector.broadcast %cst_141 : bf16 to vector<19x128xbf16>
    %c0_142 = arith.constant 0 : index
    %c91_143 = arith.constant 91 : index
    %c0_144 = arith.constant 0 : index
    %154 = vector.load %arg8[%c0_142, %c91_143, %c0_144] : memref<1x110x128xbf16, #tpu.memory_space<vmem>>, vector<1x19x128xbf16>
    %155 = vector.shape_cast %154 : vector<1x19x128xbf16> to vector<19x128xbf16>
    %156 = vector.shape_cast %153 : vector<19x128xbf16> to vector<1x19x128xbf16>
    tpu.vector_store %arg8[%c0_142, %c91_143, %c0_144], %156 {strides = array<i32>} : memref<1x110x128xbf16, #tpu.memory_space<vmem>>, vector<1x19x128xbf16>,
    %c0_145 = arith.constant 0 : index
    %c11_146 = arith.constant 11 : index
    %c0_147 = arith.constant 0 : index
    %157 = vector.load %arg8[%c0_145, %c11_146, %c0_147] : memref<1x110x128xbf16, #tpu.memory_space<vmem>>, vector<1x80x128xbf16>
    %158 = vector.shape_cast %157 : vector<1x80x128xbf16> to vector<80x128xbf16>
    %159 = vector.shape_cast %148 : vector<80x128xbf16> to vector<1x80x128xbf16>
    tpu.vector_store %arg8[%c0_145, %c11_146, %c0_147], %159 {strides = array<i32>} : memref<1x110x128xbf16, #tpu.memory_space<vmem>>, vector<1x80x128xbf16>,
    return
  }
  func.func @transform_0(%arg0: i32) -> (i32, i32, i32, i32) {
    %c0_i32 = arith.constant 0 : i32
    %c0_i32_0 = arith.constant 0 : i32
    %c0_i32_1 = arith.constant 0 : i32
    %c0_i32_2 = arith.constant 0 : i32
    return %arg0, %c0_i32, %c0_i32_0, %c0_i32_1 : i32, i32, i32, i32
  }
  func.func @transform_1(%arg0: i32) -> (i32, i32, i32) {
    %c0_i32 = arith.constant 0 : i32
    %c0_i32_0 = arith.constant 0 : i32
    %c0_i32_1 = arith.constant 0 : i32
    %c0_i32_2 = arith.constant 0 : i32
    return %c0_i32, %c0_i32_0, %c0_i32_1 : i32, i32, i32
  }
  func.func @transform_2(%arg0: i32) -> (i32, i32) {
    %c0_i32 = arith.constant 0 : i32
    %c0_i32_0 = arith.constant 0 : i32
    %c0_i32_1 = arith.constant 0 : i32
    return %c0_i32, %c0_i32_0 : i32, i32
  }
  func.func @transform_3(%arg0: i32) -> (i32, i32, i32) {
    %c0_i32 = arith.constant 0 : i32
    %c0_i32_0 = arith.constant 0 : i32
    %c0_i32_1 = arith.constant 0 : i32
    %c0_i32_2 = arith.constant 0 : i32
    return %c0_i32, %c0_i32_0, %c0_i32_1 : i32, i32, i32
  }
  func.func @transform_4(%arg0: i32) -> (i32, i32) {
    %c0_i32 = arith.constant 0 : i32
    %c0_i32_0 = arith.constant 0 : i32
    %c0_i32_1 = arith.constant 0 : i32
    return %c0_i32, %c0_i32_0 : i32, i32
  }
  func.func @transform_5(%arg0: i32) -> (i32, i32) {
    %c0_i32 = arith.constant 0 : i32
    %c0_i32_0 = arith.constant 0 : i32
    %c0_i32_1 = arith.constant 0 : i32
    return %c0_i32, %c0_i32_0 : i32, i32
  }
  func.func @transform_6(%arg0: i32) -> (i32, i32) {
    %c0_i32 = arith.constant 0 : i32
    %c0_i32_0 = arith.constant 0 : i32
    %c0_i32_1 = arith.constant 0 : i32
    return %c0_i32, %c0_i32_0 : i32, i32
  }
  func.func @transform_7(%arg0: i32) -> (i32, i32, i32) {
    %c0_i32 = arith.constant 0 : i32
    %c0_i32_0 = arith.constant 0 : i32
    %c0_i32_1 = arith.constant 0 : i32
    return %arg0, %c0_i32, %c0_i32_0 : i32, i32, i32
  }
}

</mosaic_0001>

<bundles_post_ra>
// kernel: tpu_custom_call.1
= control target key start
LH: loop header
LB: loop body
LE: loop exit
PB: predicated region body
PF: predicated region fallthrough
CT: control target
= control target key end

     0   :  { %12 = vsyncpa [#allocation4], 0  ;;  %s5477_s24 = smov 0   ;;  %s6826_s0 = inlined_call_operand.vmem [shape: bf16[2,4,100,128], index: 0, kind: input, shape index: {}]   ;;  %s6827_s1 = inlined_call_operand.vmem [shape: bf16[9,128,128], index: 1, kind: input, shape index: {}]   ;;  %s6828_s2 = inlined_call_operand.vmem [shape: f32[1,128], index: 2, kind: input, shape index: {}]   ;;  %s6829_s3 = inlined_call_operand.hbm [shape: bf16[9,128,128], index: 3, kind: input, shape index: {}]   ;;  %s6830_s4 = inlined_call_operand.vmem [shape: f32[1,128], index: 4, kind: input, shape index: {}]   ;;  %s6831_s5 = inlined_call_operand.vmem [shape: bf16[128,128], index: 5, kind: input, shape index: {}]   ;;  %s6832_s6 = inlined_call_operand.vmem [shape: f32[1,128], index: 6, kind: input, shape index: {}]   ;;  %s6833_s7 = inlined_call_operand.vmem [shape: bf16[2,110,128], index: 7, kind: output, shape index: {}]  }
   0x1 LB: > { %s218_s27 = sshll.u32 %s6829_s3, 4  ;;  %s5486_s28 = sadd.s32 4294967295, %s5431_s24   ;;  %s5431_s24 = sphi %s5477_s24, %s18_s24   ;;  %s219_s27 = int_to_ptr.hbm [resolvable:$true] %s218_s27 }
   0x2   : > { %p4097_p0 = scmp.ge.s32.totalorder %s5431_s24, 1  ;;  %p201_p1 = scmp.lt.s32.totalorder %s5431_s24, 3 }
   0x3   : > { %p5374_p2 = scmp.eq.s32.totalorder %s5486_s28, 0  ;;  %s5433_s29 = smov [#allocation3]  }
   0x4   : > { %p202_p3 = pnand %p4097_p0, %p201_p1  ;;  %s220_s30 = sshll.u32 %s5433_s29, 4  ;;  %s221_s30 = int_to_ptr.vmem [resolvable:$true] %s220_s30 }
   0x5   : > { %s5434_s8 = smov 64   ;;  %s5435_s9 = smov 4  }
   0x6   : > { %p5370_p4 = pneg %p202_p3  ;;  %253 = sbr.rel (%p202_p3) target bundleno = 717 (0x2cd), region = 48 }
   0x8   : > { %p5371_p5 = pnand %p5374_p2, %p5370_p4 }
   0xa   : > { %5373 = dma.hbm_to_vmem [thread:$0]  (!%p5371_p5), %s219_s27, 9216, %s221_s30, [#allocation4], %s5434_s8, %s5434_s8, %s5435_s9  }
   0xb   : > { %5426 = dma.done.wait (%p5374_p2), [#allocation4], 9216  }
   0xc   : > { %5428 = vsyncadd (%p5374_p2), [#allocation4], 4294958080  ;;  %v5436_v0 = vmov 0   ;;  %v5157_v1 = vld [vmem:[%s6827_s1 + $0x78] sm:$0xff]  ;;  %p286_p6 = scmp.lt.s32.totalorder %s5486_s28, 1  ;;  %v5156_v4 = vld [vmem:[%s6827_s1 + $0x70] sm:$0xff] }
   0xd   : > { %2156 = vst [vmem:[#allocation2] sm:$0xf] %v5436_v0  ;;  %v5144_v2 = vld [vmem:[%s6827_s1 + $0x38] sm:$0xff]  ;;  %5348 = vmatpush.bf16.msra.mxu3 %v5157_v1  ;;  %v5143_v5 = vld [vmem:[%s6827_s1 + $0x30] sm:$0xff]  ;;  %790 = vmatpush.bf16.msra.mxu0 %v5157_v1  ;;  %v5155_v7 = vld [vmem:[%s6827_s1 + $0x68] sm:$0xff]  ;;  %vm6836_vm1 = vcmask 1046528  }
   0xe   : > { %2169 = vst [vmem:[#allocation2 + $0x30] sm:$0xf] %v5436_v0  ;;  %v5170_v3 = vld [vmem:[%s6827_s1 + $0xb8] sm:$0xff]  ;;  %902 = vmatpush.bf16.msra.mxu1 %v5144_v2  ;;  %v5169_v6 = vld [vmem:[%s6827_s1 + $0xb0] sm:$0xff]  ;;  %s6904_s28 = smov (!%p286_p6, %s5486_s28), 1  ;;  %v5142_v8 = vld [vmem:[%s6827_s1 + $0x28] sm:$0xff] }
   0xf   : > { %1090 = vmatpush.bf16.msra.mxu2 %v5170_v3  ;;  %v5168_v9 = vld [vmem:[%s6827_s1 + $0xa8] sm:$0xff]  ;;  %s5364_s30 = smul.u32 208, %s6904_s28  ;;  %v5154_v10 = vld [vmem:[%s6827_s1 + $0x60] sm:$0xff]  ;;  %v5153_v13 = vld [vmem:[%s6827_s1 + $0x58] sm:$0xff]  ;;  %vm6835_vm0 = vsmask.f32 7424 }
  0x10   : > { %v5141_v11 = vld [vmem:[%s6827_s1 + $0x20] sm:$0xff]  ;;  %v5140_v14 = vld [vmem:[%s6827_s1 + $0x18] sm:$0xff]  ;;  %v5152_v17 = vld [vmem:[%s6827_s1 + $0x50] sm:$0xff]  ;;  %vm6834_vm2 = vsmask.f32 6400  ;;  %s5365_s17 = smul.u32 56, %s6904_s28 }
  0x11   : > { %5349 = vmatpush.bf16.msra.mxu3 %v5156_v4  ;;  %791 = vmatpush.bf16.msra.mxu0 %v5156_v4  ;;  %v5167_v12 = vld [vmem:[%s6827_s1 + $0xa0] sm:$0xff]  ;;  %s5537_s16 = scalar_lea.vmem %s6826_s0, %s5364_s30  ;;  %v5166_v15 = vld [vmem:[%s6827_s1 + $0x98] sm:$0xff]  ;;  %v5139_v18 = vld [vmem:[%s6827_s1 + $0x10] sm:$0xff]  ;;  %vm2157_vm7 = vcmask 1041408   ;;  %vm2158_vm8 = vsmask.f32 1280 }
  0x12   : > { %903 = vmatpush.bf16.msra.mxu1 %v5143_v5  ;;  %v5158_v16 = vld [vmem:[%s5537_s16] sm:$0xff]  ;;  %v5165_v19 = vld [vmem:[%s6827_s1 + $0x90] sm:$0xff]  ;;  %v5159_v20 = vld [vmem:[%s5537_s16 + $0x8] sm:$0xff]  ;;  %s5796_s20 = scalar_lea.vmem %s6833_s7, %s5365_s17  ;;  %vm2163_vm9 = vcmask 1043457   ;;  %vm2164_vm11 = vsmask.f32 7942 }
  0x13   : > { %1091 = vmatpush.bf16.msra.mxu2 %v5169_v6  ;;  %v996_v21 = vshll.u32 %v5158_v16, 16  ;;  %v5151_v22 = vld [vmem:[%s6827_s1 + $0x48] sm:$0xff]  ;;  %v994_v25 = vshrl.u32 %v5158_v16, 16  ;;  %v1001_v27 = vshll.u32 %v5159_v20, 16  ;;  %v5150_v28 = vld [vmem:[%s6827_s1 + $0x40] sm:$0xff]  ;;  %v5183_v33 = vld [vmem:[%s6827_s1 + $0xf8] sm:$0xff] }
  0x14   : > { %v5138_v23 = vld [vmem:[%s6827_s1 + $0x8] sm:$0xff]  ;;  %v5137_v29 = vld [vmem:[%s6827_s1] sm:$0xff]  ;;  %v5196_v36 = vld [vmem:[%s6827_s1 + $0x138] sm:$0xff]  ;;  %v1005_v45 = vshrl.u32 %v5159_v20, 16  ;;  %3894 = vst [vmem:[%s5796_s20] sm:$0xf] %v5436_v0 }
  0x15   : > { %5350 = vmatpush.bf16.msra.mxu3 %v5155_v7  ;;  %792 = vmatpush.bf16.msra.mxu0 %v5155_v7  ;;  %v5164_v24 = vld [vmem:[%s6827_s1 + $0x88] sm:$0xff]  ;;  %v998_v26 = vrot.slane %v996_v21, 1  ;;  %v5163_v30 = vld [vmem:[%s6827_s1 + $0x80] sm:$0xff]  ;;  %v1003_v32 = vrot.slane %v1001_v27, 1  ;;  %v5182_v38 = vld [vmem:[%s6827_s1 + $0xf0] sm:$0xff] }
  0x16   : > { %904 = vmatpush.bf16.msra.mxu1 %v5142_v8  ;;  %v5147_v34 = vld [vmem:[%s5537_s16 + $0x44] sm:$0xff]  ;;  %v5145_v39 = vld [vmem:[%s5537_s16 + $0x34] sm:$0xff]  ;;  %v5148_v52 = vld [vmem:[%s5537_s16 + $0x4c] sm:$0xff]  ;;  %3901 = vst [vmem:[%s5796_s20 + $0x30] sm:$0xf] %v5436_v0 }
  0x17   : > { %1092 = vmatpush.bf16.msra.mxu2 %v5168_v9  ;;  %v999_v31 = vor.u32 %v998_v26, %v994_v25  ;;  %v5132_v35 = vld [vmem:[%s5537_s16] sm:$0xff]  ;;  %v5195_v40 = vld [vmem:[%s6827_s1 + $0x130] sm:$0xff]  ;;  %v5181_v41 = vld [vmem:[%s6827_s1 + $0xe8] sm:$0xff]  ;;  %v1007_v49 = vor.u32 %v1005_v45, %v1003_v32  ;;  %3902 = vst [vmem:[%s5796_s20 + $0x34] sm:$0x7] %v5436_v0 }
  0x18   : > { %v5160_v42 = vld [vmem:[%s5537_s16 + $0x10] sm:$0xff]  ;;  %v5222_v43 = vld [vmem:[%s6827_s1 + $0x1b8] sm:$0xff]  ;;  %v5194_v44 = vld [vmem:[%s6827_s1 + $0x128] sm:$0xff] }
  0x19   : > { %5351 = vmatpush.bf16.msra.mxu3 %v5154_v10  ;;  %793 = vmatpush.bf16.msra.mxu0 %v5154_v10  ;;  %v1004_v37 = vsel %vm6835_vm0, %v999_v31, %v1003_v32  ;;  %v1009_v46 = vshll.u32 %v5160_v42, 16  ;;  %v5180_v47 = vld [vmem:[%s6827_s1 + $0xe0] sm:$0xff]  ;;  %v5179_v51 = vld [vmem:[%s6827_s1 + $0xd8] sm:$0xff]  ;;  %v5133_v53 = vld [vmem:[%s5537_s16 + $0x8] sm:$0xff]  ;;  %v1013_v3 = vshrl.u32 %v5160_v42, 16 }
  0x1a   : > { %905 = vmatpush.bf16.msra.mxu1 %v5141_v11  ;;  %v5193_v48 = vld [vmem:[%s6827_s1 + $0x120] sm:$0xff]  ;;  %v5192_v54 = vld [vmem:[%s6827_s1 + $0x118] sm:$0xff]  ;;  %v5178_v56 = vld [vmem:[%s6827_s1 + $0xd0] sm:$0xff] }
  0x1b   : > { %1093 = vmatpush.bf16.msra.mxu2 %v5167_v12  ;;  %v1011_v50 = vrot.slane %v1009_v46, 1  ;;  %v5146_v57 = vld [vmem:[%s5537_s16 + $0x3c] sm:$0xff]  ;;  %v5191_v59 = vld [vmem:[%s6827_s1 + $0x110] sm:$0xff]  ;;  %v5177_v62 = vld [vmem:[%s6827_s1 + $0xc8] sm:$0xff] }
  0x1c   : > { %v5209_v58 = vld [vmem:[%s6827_s1 + $0x178] sm:$0xff]  ;;  %v5221_v60 = vld [vmem:[%s6827_s1 + $0x1b0] sm:$0xff]  ;;  %v5220_v1 = vld [vmem:[%s6827_s1 + $0x1a8] sm:$0xff] }
  0x1d   : > { %5352 = vmatpush.bf16.msra.mxu3 %v5153_v13  ;;  %794 = vmatpush.bf16.msra.mxu0 %v5153_v13  ;;  %v1012_v55 = vsel %vm6835_vm0, %v1007_v49, %v1011_v50  ;;  %v5161_v61 = vld [vmem:[%s5537_s16 + $0x18] sm:$0xff]  ;;  %v5208_v63 = vld [vmem:[%s6827_s1 + $0x170] sm:$0xff]  ;;  %v5190_v2 = vld [vmem:[%s6827_s1 + $0x108] sm:$0xff]  ;;  %v1015_v10 = vor.u32 %v1013_v3, %v1011_v50 }
  0x1e   : > { %906 = vmatpush.bf16.msra.mxu1 %v5140_v14  ;;  %v1017_v4 = vshll.u32 %v5161_v61, 16  ;;  %v5176_v5 = vld [vmem:[%s6827_s1 + $0xc0] sm:$0xff]  ;;  %v5235_v6 = vld [vmem:[%s6827_s1 + $0x1f8] sm:$0xff]  ;;  %v5207_v7 = vld [vmem:[%s6827_s1 + $0x168] sm:$0xff] }
  0x1f   : > { %1094 = vmatpush.bf16.msra.mxu2 %v5166_v15  ;;  %v5219_v8 = vld [vmem:[%s6827_s1 + $0x1a0] sm:$0xff]  ;;  %v5243_v12 = vld [vmem:[%s6827_s1 + $0x238] sm:$0xff]  ;;  %v5234_v13 = vld [vmem:[%s6827_s1 + $0x1f0] sm:$0xff] }
  0x20   : > { %v5189_v9 = vld [vmem:[%s6827_s1 + $0x100] sm:$0xff]  ;;  %v1019_v11 = vrot.slane %v1017_v4, 1  ;;  %v5149_v15 = vld [vmem:[%s5537_s16 + $0x54] sm:$0xff]  ;;  %v5241_v26 = vld [vmem:[%s6827_s1 + $0x228] sm:$0xff] }
  0x21   : > { %5353 = vmatpush.bf16.msra.mxu3 %v5152_v17  ;;  %795 = vmatpush.bf16.msra.mxu0 %v5152_v17  ;;  %v5206_v14 = vld [vmem:[%s6827_s1 + $0x160] sm:$0xff]  ;;  %v5134_v16 = vld [vmem:[%s5537_s16 + $0x10] sm:$0xff]  ;;  %v5218_v20 = vld [vmem:[%s6827_s1 + $0x198] sm:$0xff] }
  0x22   : > { %907 = vmatpush.bf16.msra.mxu1 %v5139_v18  ;;  %v1020_v17 = vsel %vm6835_vm0, %v1015_v10, %v1019_v11  ;;  %v5184_v18 = vld [vmem:[%s5537_s16 + $0x9c] sm:$0xff]  ;;  %v5242_v21 = vld [vmem:[%s6827_s1 + $0x230] sm:$0xff]  ;;  %v5203_v31 = vld [vmem:[%s6827_s1 + $0x148] sm:$0xff] }
  0x23   : > { %1095 = vmatpush.bf16.msra.mxu2 %v5165_v19  ;;  %v5205_v19 = vld [vmem:[%s6827_s1 + $0x158] sm:$0xff]  ;;  %v5204_v25 = vld [vmem:[%s6827_s1 + $0x150] sm:$0xff]  ;;  %v5232_v27 = vld [vmem:[%s6827_s1 + $0x1e0] sm:$0xff] }
  0x24   : > { %v5240_v42 = vld [vmem:[%s6827_s1 + $0x220] sm:$0xff]  ;;  %v5172_v50 = vld [vmem:[%s5537_s16 + $0x70] sm:$0xff]  ;;  %vm5943_vm10 = vmand %vm2157_vm7, %vm2158_vm8 }
  0x25   : > { %5354 = vmatpush.bf16.msra.mxu3 %v5151_v22  ;;  %796 = vmatpush.bf16.msra.mxu0 %v5151_v22  ;;  %v5233_v22 = vld [vmem:[%s6827_s1 + $0x1e8] sm:$0xff]  ;;  %v5136_v49 = vld [vmem:[%s5537_s16 + $0x20] sm:$0xff]  ;;  %vm5952_vm12 = vmand %vm2163_vm9, %vm2164_vm11 }
  0x26   : > { %908 = vmatpush.bf16.msra.mxu1 %v5138_v23  ;;  %v5162_v23 = vld [vmem:[%s5537_s16 + $0x20] sm:$0xff] }
  0x27   : > { %1096 = vmatpush.bf16.msra.mxu2 %v5164_v24  ;;  %v5217_v24 = vld [vmem:[%s6827_s1 + $0x190] sm:$0xff]  ;;  %v1029_v45 = vshrl.u32 %v5162_v23, 16 }
  0x29   : > { %5355 = vmatpush.bf16.msra.mxu3 %v5150_v28  ;;  %797 = vmatpush.bf16.msra.mxu0 %v5150_v28  ;;  %v1021_v28 = vshrl.u32 %v5161_v61, 16  ;;  %v5229_v61 = vld [vmem:[%s6827_s1 + $0x1c8] sm:$0xff] }
  0x2a   : > { %909 = vmatpush.bf16.msra.mxu1 %v5137_v29  ;;  %v1025_v29 = vshll.u32 %v5162_v23, 16 }
  0x2b   : > { %1097 = vmatpush.bf16.msra.mxu2 %v5163_v30  ;;  %v5216_v30 = vld [vmem:[%s6827_s1 + $0x188] sm:$0xff]  ;;  %v1023_v32 = vor.u32 %v1021_v28, %v1019_v11  ;;  %v5187_v11 = vld [vmem:[%s5537_s16 + $0xb4] sm:$0xff] }
  0x2c   : > { %808 = vmatmul.bf16.vlgmr.msra.gmra.mxu3 %v5147_v34  ;;  %798 = vmatmul.bf16.vlgmr.msra.gmra.mxu0 %v5145_v39  ;;  %v5215_v34 = vld [vmem:[%s6827_s1 + $0x180] sm:$0xff] }
  0x2d   : > { %1240 = vmatpush.bf16.msrb.mxu3 %v5183_v33  ;;  %910 = vmatmul.bf16.vlgmr.msra.gmra.mxu1 %v5132_v35  ;;  %v1027_v33 = vrot.slane %v1025_v29, 1  ;;  %v946_v35 = vld [vmem:[%s5537_s16 + $0x28] sm:$0x1] }
  0x2e   : > { %1098 = vmatmul.bf16.vlgmr.msra.gmra.mxu2 %v1004_v37  ;;  %1390 = vmatpush.bf16.msrb.mxu0 %v5196_v36  ;;  %v5202_v36 = vld [vmem:[%s6827_s1 + $0x140] sm:$0xff]  ;;  %v5135_v37 = vld [vmem:[%s5537_s16 + $0x18] sm:$0xff] }
  0x2f   : > { %1752 = vmatpush.bf16.msrb.mxu2 %v5222_v43  ;;  %1587 = vmatpush.bf16.msrb.mxu1 %v5209_v58  ;;  %v1028_v39 = vsel %vm6835_vm0, %v1023_v32, %v1027_v33  ;;  %v5231_v43 = vld [vmem:[%s6827_s1 + $0x1d8] sm:$0xff]  ;;  %v4555_v58 = vld [vmem:[%s5537_s16 + $0x4] sm:$0xe] }
  0x31   : > { %1241 = vmatpush.bf16.msrb.mxu3 %v5182_v38  ;;  %v5171_v38 = vld [vmem:[%s5537_s16 + $0x68] sm:$0xff] }
  0x32   : > { %1391 = vmatpush.bf16.msrb.mxu0 %v5195_v40  ;;  %v985_v40 = vunpack.c.l.b16 %v946_v35 }
  0x33   : > { %1753 = vmatpush.bf16.msrb.mxu2 %v5221_v60  ;;  %1588 = vmatpush.bf16.msrb.mxu1 %v5208_v63  ;;  %v5238_v60 = vld [vmem:[%s6827_s1 + $0x210] sm:$0xff] }
  0x35   : > { %1242 = vmatpush.bf16.msrb.mxu3 %v5181_v41  ;;  %v5185_v41 = vld [vmem:[%s5537_s16 + $0xa4] sm:$0xff] }
  0x36   : > { %1392 = vmatpush.bf16.msrb.mxu0 %v5194_v44  ;;  %v991_v44 = vpack.c.b16 %v985_v40, %v985_v40 }
  0x37   : > { %1754 = vmatpush.bf16.msrb.mxu2 %v5220_v1  ;;  %1589 = vmatpush.bf16.msrb.mxu1 %v5207_v7 }
  0x38   : > { %v1033_v46 = vshll.u32 %v991_v44, 16 }
  0x39   : > { %1243 = vmatpush.bf16.msrb.mxu3 %v5180_v47  ;;  %v1031_v47 = vor.u32 %v1029_v45, %v1027_v33  ;;  %v5762_v33 = vld [vmem:[%s5537_s16 + $0x1c] sm:$0xff] }
  0x3a   : > { %1393 = vmatpush.bf16.msrb.mxu0 %v5193_v48  ;;  %v1035_v48 = vrot.slane %v1033_v46, 1  ;;  %v1693_v40 = vrot.slane %v5762_v33, 1 }
  0x3b   : > { %1755 = vmatpush.bf16.msrb.mxu2 %v5219_v8  ;;  %1590 = vmatpush.bf16.msrb.mxu1 %v5206_v14  ;;  %v5173_v8 = vld [vmem:[%s5537_s16 + $0x78] sm:$0xff]  ;;  %v5228_v14 = vld [vmem:[%s6827_s1 + $0x1c0] sm:$0xff] }
  0x3c   : > { %813 = vmatmul.bf16.gmra.mxu3 %v5148_v52  ;;  %803 = vmatmul.bf16.gmra.mxu0 %v5146_v57  ;;  %v1036_v52 = vsel %vm6835_vm0, %v1031_v47, %v1035_v48  ;;  %v5230_v57 = vld [vmem:[%s6827_s1 + $0x1d0] sm:$0xff]  ;;  %v5201_v47 = vld [vmem:[%s5537_s16 + $0x88] sm:$0xff]  ;;  %v4634_v48 = vld [vmem:[%s5537_s16 + $0x38] sm:$0xe] }
  0x3d   : > { %1244 = vmatpush.bf16.msrb.mxu3 %v5179_v51  ;;  %915 = vmatmul.bf16.gmra.mxu1 %v5133_v53  ;;  %v5197_v51 = vld [vmem:[%s5537_s16 + $0x68] sm:$0xff] }
  0x3e   : > { %1103 = vmatmul.bf16.gmra.mxu2 %v1012_v55  ;;  %1394 = vmatpush.bf16.msrb.mxu0 %v5192_v54  ;;  %v5186_v53 = vld [vmem:[%s5537_s16 + $0xac] sm:$0xff]  ;;  %v1493_v55 = vshll.u32 %v5197_v51, 16 }
  0x3f   : > { %1756 = vmatpush.bf16.msrb.mxu2 %v5218_v20  ;;  %1591 = vmatpush.bf16.msrb.mxu1 %v5205_v19  ;;  %v5198_v54 = vld [vmem:[%s5537_s16 + $0x70] sm:$0xff] }
  0x40   : > { %v1495_v63 = vrot.slane %v1493_v55, 1  ;;  %v1498_v1 = vshll.u32 %v5198_v54, 16 }
  0x41   : > { %1245 = vmatpush.bf16.msrb.mxu3 %v5178_v56  ;;  %v5239_v56 = vld [vmem:[%s6827_s1 + $0x218] sm:$0xff] }
  0x42   : > { %1395 = vmatpush.bf16.msrb.mxu0 %v5191_v59  ;;  %v5210_v59 = vld [vmem:[%s5537_s16 + $0x4] sm:$0xf0] }
  0x43   : > { %1757 = vmatpush.bf16.msrb.mxu2 %v5217_v24  ;;  %1592 = vmatpush.bf16.msrb.mxu1 %v5204_v25  ;;  %v4556_v3 = vor.u32 %v5210_v59, %v4555_v58  ;;  %v5188_v25 = vld [vmem:[%s5537_s16 + $0xbc] sm:$0xff] }
  0x45   : > { %1246 = vmatpush.bf16.msrb.mxu3 %v5177_v62  ;;  %v1491_v62 = vshrl.u32 %v5197_v51, 16  ;;  %v1986_v28 = vshll.u32 %v4556_v3, 16 }
  0x46   : > { %1396 = vmatpush.bf16.msrb.mxu0 %v5190_v2  ;;  %v5211_v2 = vld [vmem:[%s5537_s16 + $0xc] sm:$0xff] }
  0x47   : > { %1758 = vmatpush.bf16.msrb.mxu2 %v5216_v30  ;;  %1593 = vmatpush.bf16.msrb.mxu1 %v5203_v31  ;;  %v1496_v4 = vor.u32 %v1495_v63, %v1491_v62  ;;  %v1689_v7 = vrot.slane %v5211_v2, 1  ;;  %v1991_v29 = vshrl.u32 %v5211_v2, 16  ;;  %v1994_v30 = vshll.u32 %v5211_v2, 16 }
  0x48   : > { %v1988_v35 = vrot.slane %v1986_v28, 2 }
  0x49   : > { %1247 = vmatpush.bf16.msrb.mxu3 %v5176_v5  ;;  %v1500_v5 = vrot.slane %v1498_v1, 1  ;;  %v4468_v1 = vld [vmem:[%s5537_s16 + $0x90] sm:$0x1] }
  0x4a   : > { %1397 = vmatpush.bf16.msrb.mxu0 %v5189_v9 }
  0x4b   : > { %1759 = vmatpush.bf16.msrb.mxu2 %v5215_v34  ;;  %1594 = vmatpush.bf16.msrb.mxu1 %v5202_v36  ;;  %v1501_v9 = vsel %vm6835_vm0, %v1496_v4, %v1500_v5  ;;  %v1993_v36 = vrot.slane %v1991_v29, 1 }
  0x4c   : > { %818 = vmatmul.bf16.gmra.mxu3 %v5149_v15  ;;  %v1502_v15 = vshrl.u32 %v5198_v54, 16  ;;  %v5224_v54 = vld [vmem:[%s5537_s16 + $0x40] sm:$0xff] }
  0x4d   : > { %1916 = vmatpush.bf16.msra.mxu3 %v5235_v6  ;;  %920 = vmatmul.bf16.gmra.mxu1 %v5134_v16  ;;  %v1688_v6 = vrot.slane %v4556_v3, 1  ;;  %v1853_v62 = vrot.slane %v5224_v54, 1 }
  0x4e   : > { %2088 = vmatpush.bf16.msra.mxu0 %v5243_v12  ;;  %1108 = vmatmul.bf16.gmra.mxu2 %v1020_v17  ;;  %v5199_v12 = vld [vmem:[%s5537_s16 + $0x78] sm:$0xff] }
  0x4f   : > { %1398 = vmatmul.bf16.vlgmr.msrb.gmra.mxu0 %v5184_v18  ;;  %v1690_v10 = vsel %vm6836_vm1, %v1688_v6, %v1689_v7  ;;  %v1506_v16 = vshll.u32 %v5199_v12, 16  ;;  %v5212_v17 = vld [vmem:[%s5537_s16 + $0x14] sm:$0xff]  ;;  %v1504_v18 = vor.u32 %v1502_v15, %v1500_v5  ;;  %v1510_v31 = vshrl.u32 %v5199_v12, 16 }
  0x50   : > { %v1691_v20 = vrot.slane %v5212_v17, 1  ;;  %v2003_v51 = vshll.u32 %v5212_v17, 16  ;;  %v1483_v6 = vunpack.c.l.b16 %v4468_v1  ;;  %v2009_v15 = vshrl.u32 %v5762_v33, 16 }
  0x51   : > { %1917 = vmatpush.bf16.msra.mxu3 %v5234_v13  ;;  %v5237_v13 = vld [vmem:[%s6827_s1 + $0x208] sm:$0xff]  ;;  %v1508_v19 = vrot.slane %v1506_v16, 1  ;;  %v2012_v16 = vshll.u32 %v5762_v33, 16 }
  0x52   : > { %2089 = vmatpush.bf16.msra.mxu0 %v5242_v21  ;;  %v5174_v21 = vld [vmem:[%s5537_s16 + $0x80] sm:$0xff]  ;;  %v1692_v24 = vsel %vm6836_vm1, %v1689_v7, %v1691_v20  ;;  %v1694_v45 = vsel %vm6836_vm1, %v1691_v20, %v1693_v40  ;;  %v2005_v58 = vrot.slane %v2003_v51, 2  ;;  %v1489_v12 = vpack.c.b16 %v1483_v6, %v1483_v6  ;;  %v1960_v51 = vld [vmem:[%s5537_s16 + $0x2c] sm:$0x3]  ;;  %v5227_v6 = vld [vmem:[%s5537_s16 + $0x58] sm:$0xff] }
  0x53   : > { %v1509_v23 = vsel %vm6835_vm0, %v1504_v18, %v1508_v19 }
  0x54   : > { %v1530_v20 = vshll.u32 %v1489_v12, 16 }
  0x55   : > { %1918 = vmatpush.bf16.msra.mxu3 %v5233_v22  ;;  %v5236_v22 = vld [vmem:[%s6827_s1 + $0x200] sm:$0xff] }
  0x56   : > { %2090 = vmatpush.bf16.msra.mxu0 %v5241_v26  ;;  %v5200_v26 = vld [vmem:[%s5537_s16 + $0x80] sm:$0xff]  ;;  %v1532_v28 = vrot.slane %v1530_v20, 1 }
  0x57   : > { %v1514_v32 = vshll.u32 %v5200_v26, 16 }
  0x59   : > { %1919 = vmatpush.bf16.msra.mxu3 %v5232_v27  ;;  %v1983_v27 = vshrl.u32 %v4556_v3, 16 }
  0x5a   : > { %2091 = vmatpush.bf16.msra.mxu0 %v5240_v42 }
  0x5b   : > { %v1985_v34 = vrot.slane %v1983_v27, 1 }
  0x5c   : > { %1248 = vmatmul.bf16.vlgmr.msrb.gmra.mxu3 %v5171_v38  ;;  %v1512_v38 = vor.u32 %v1510_v31, %v1508_v19  ;;  %v1526_v19 = vshrl.u32 %v5201_v47, 16 }
  0x5d   : > { %925 = vmatmul.bf16.gmra.mxu1 %v5135_v37  ;;  %1920 = vmatpush.bf16.msra.mxu3 %v5231_v43  ;;  %v1996_v37 = vrot.slane %v1994_v30, 2  ;;  %v5175_v43 = vld [vmem:[%s5537_s16 + $0x88] sm:$0xff] }
  0x5e   : > { %1113 = vmatmul.bf16.gmra.mxu2 %v1028_v39  ;;  %2092 = vmatpush.bf16.msra.mxu0 %v5239_v56  ;;  %v1516_v39 = vrot.slane %v1514_v32, 1  ;;  %v5774_v56 = vld [vmem:[%s5537_s16 + $0x24] sm:$0xff] }
  0x5f   : > { %1403 = vmatmul.bf16.gmra.mxu0 %v5185_v41  ;;  %v1989_v41 = vor.u32 %v1988_v35, %v1985_v34  ;;  %v1997_v42 = vor.u32 %v1996_v37, %v1993_v36  ;;  %v1695_v63 = vrot.slane %v5774_v56, 1 }
  0x60   : > { %v1517_v44 = vsel %vm6835_vm0, %v1512_v38, %v1516_v39 }
  0x61   : > { %1921 = vmatpush.bf16.msra.mxu3 %v5230_v57  ;;  %v1998_v46 = vsel %vm6834_vm2, %v1989_v41, %v1997_v42  ;;  %v1696_v7 = vsel %vm6836_vm1, %v1693_v40, %v1695_v63 }
  0x62   : > { %2093 = vmatpush.bf16.msra.mxu0 %v5238_v60 }
  0x65   : > { %1922 = vmatpush.bf16.msra.mxu3 %v5229_v61 }
  0x66   : > { %2094 = vmatpush.bf16.msra.mxu0 %v5237_v13 }
  0x69   : > { %1923 = vmatpush.bf16.msra.mxu3 %v5228_v14 }
  0x6a   : > { %2095 = vmatpush.bf16.msra.mxu0 %v5236_v22 }
  0x6c   : > { %1253 = vmatmul.bf16.gmra.mxu3 %v5172_v50  ;;  %v2000_v50 = vshrl.u32 %v5212_v17, 16 }
  0x6d   : > { %930 = vmatmul.bf16.gmra.mxu1 %v5136_v49  ;;  %v5223_v49 = vld [vmem:[%s5537_s16 + $0x38] sm:$0xf0] }
  0x6e   : > { %1118 = vmatmul.bf16.gmra.mxu2 %v1036_v52  ;;  %v1518_v52 = vshrl.u32 %v5200_v26, 16  ;;  %v4635_v55 = vor.u32 %v5223_v49, %v4634_v48  ;;  %v2002_v57 = vrot.slane %v2000_v50, 1  ;;  %v2014_v26 = vrot.slane %v2012_v16, 2 }
  0x6f   : > { %1408 = vmatmul.bf16.gmra.mxu0 %v5186_v53  ;;  %v1522_v53 = vshll.u32 %v5201_v47, 16 }
  0x70   : > { %v1520_v59 = vor.u32 %v1518_v52, %v1516_v39  ;;  %v1852_v61 = vrot.slane %v4635_v55, 1  ;;  %v2006_v2 = vor.u32 %v2005_v58, %v2002_v57  ;;  %v1979_v55 = vunpack.c.l.b16 %v1960_v51  ;;  %v5263_v51 = vld [vmem:[#allocation3 + $0x78] sm:$0xff] }
  0x71   : > { %v1524_v60 = vrot.slane %v1522_v53, 1  ;;  %2507 = vmatpush.bf16.msra.mxu1 %v5263_v51 }
  0x72   : > { %v1854_v5 = vsel %vm6836_vm1, %v1852_v61, %v1853_v62 }
  0x73   : > { %v1525_v4 = vsel %vm6835_vm0, %v1520_v59, %v1524_v60  ;;  %v1528_v27 = vor.u32 %v1526_v19, %v1524_v60 }
  0x75   : > { %v1533_v35 = vsel %vm6835_vm0, %v1528_v27, %v1532_v28 }
  0x7c   : > { %1258 = vmatmul.bf16.gmra.mxu3 %v5173_v8 }
  0x7d   : > { %1595 = vmatmul.bf16.vlgmr.msrb.gmra.mxu1 %v1501_v9  ;;  %v1641_v9 = vld [vmem:[%s5537_s16 + $0x2c] sm:$0x1] }
  0x7e   : > { %1760 = vmatmul.bf16.vlgmr.msrb.gmra.mxu2 %v1690_v10  ;;  %v2007_v10 = vsel %vm6834_vm2, %v1997_v42, %v2006_v2  ;;  %v1680_v13 = vunpack.c.l.b16 %v1641_v9  ;;  %v2018_v42 = vshrl.u32 %v5774_v56, 16 }
  0x7f   : > { %1413 = vmatmul.bf16.gmra.mxu0 %v5187_v11 }
  0x80   : > { %v2020_v49 = vrot.slane %v2018_v42, 1 }
  0x8c   : > { %1263 = vmatmul.bf16.gmra.mxu3 %v5174_v21  ;;  %v5225_v21 = vld [vmem:[%s5537_s16 + $0x48] sm:$0xff] }
  0x8d   : > { %1600 = vmatmul.bf16.gmra.mxu1 %v1509_v23  ;;  %v1686_v23 = vpack.c.b16 %v1680_v13, %v1680_v13  ;;  %v1855_v29 = vrot.slane %v5225_v21, 1 }
  0x8e   : > { %1765 = vmatmul.bf16.gmra.mxu2 %v1692_v24 }
  0x8f   : > { %1418 = vmatmul.bf16.gmra.mxu0 %v5188_v25  ;;  %v2011_v25 = vrot.slane %v2009_v15, 1  ;;  %v1697_v30 = vrot.slane %v1686_v23, 1  ;;  %v1856_v36 = vsel %vm6836_vm1, %v1853_v62, %v1855_v29  ;;  %v1980_v62 = vpack.c.b16 %v1979_v55, %v1979_v55 }
  0x91   : > { %v2015_v32 = vor.u32 %v2014_v26, %v2011_v25  ;;  %v1698_v37 = vsel %vm6836_vm1, %v1695_v63, %v1697_v30  ;;  %v2027_v1 = vshrl.u32 %v1980_v62, 16  ;;  %v5255_v30 = vld [vmem:[#allocation3 + $0x38] sm:$0xff] }
  0x92   : > { %2594 = vmatpush.bf16.msra.mxu2 %v5255_v30 }
  0x93   : > { %v2016_v39 = vsel %vm6834_vm2, %v2006_v2, %v2015_v32  ;;  %v2030_v2 = vshll.u32 %v1980_v62, 16 }
  0x95   : > { %v2032_v9 = vrot.slane %v2030_v2, 2 }
  0x9c   : > { %1268 = vmatmul.bf16.gmra.mxu3 %v5175_v43  ;;  %v2021_v43 = vshll.u32 %v5774_v56, 16 }
  0x9d   : > { %1605 = vmatmul.bf16.gmra.mxu1 %v1517_v44 }
  0x9e   : > { %1770 = vmatmul.bf16.gmra.mxu2 %v1694_v45  ;;  %v2023_v50 = vrot.slane %v2021_v43, 2 }
  0x9f   : > { %2096 = vmatmul.bf16.vlgmr.msra.gmra.mxu0 %v1998_v46  ;;  %v5226_v46 = vld [vmem:[%s5537_s16 + $0x50] sm:$0xff] }
  0xa0   : > { %v1857_v52 = vrot.slane %v5226_v46, 1  ;;  %v2024_v54 = vor.u32 %v2023_v50, %v2020_v49 }
  0xa2   : > { %v1858_v58 = vsel %vm6836_vm1, %v1855_v29, %v1857_v52  ;;  %v2025_v61 = vsel %vm6834_vm2, %v2015_v32, %v2024_v54 }
  0xa9   : > { %v799_v8 = vpop.f32.mrf.mxu0 }
  0xaa   : > { %v911_v3 = vpop.f32.mrf.mxu1 }
  0xab   : > { %v912_v11 = vadd.f32 %v911_v3, %v799_v8  ;;  %v2029_v8 = vrot.slane %v2027_v1, 1 }
  0xac   : > { %1924 = vmatmul.bf16.vlgmr.msra.gmra.mxu3 %v1854_v5 }
  0xad   : > { %1610 = vmatmul.bf16.gmra.mxu1 %v1525_v4  ;;  %v2033_v12 = vor.u32 %v2032_v9, %v2029_v8 }
  0xae   : > { %1775 = vmatmul.bf16.gmra.mxu2 %v1696_v7 }
  0xaf   : > { %2101 = vmatmul.bf16.gmra.mxu0 %v2007_v10  ;;  %v809_v14 = vpop.f32.mrf.mxu3  ;;  %v1859_v10 = vrot.slane %v5227_v6, 1  ;;  %v2034_v20 = vsel %vm6834_vm2, %v2024_v54, %v2033_v12  ;;  %v5261_v12 = vld [vmem:[#allocation3 + $0x68] sm:$0xff] }
  0xb1   : > { %v1099_v17 = vpop.f32.mrf.mxu2  ;;  %v5791_v24 = vpop.f32.mrf.mxu0  ;;  %v1860_v15 = vsel %vm6836_vm1, %v1857_v52, %v1859_v10  ;;  %v5253_v52 = vld [vmem:[#allocation3 + $0x28] sm:$0xff] }
  0xb2   : > { %v5785_v18 = vpop.f32.mrf.mxu1  ;;  %v5788_v22 = vadd.f32 %v1099_v17, %v912_v11  ;;  %v4615_v17 = vld [vmem:[%s5537_s16 + $0x60] sm:$0x1] }
  0xb3   : > { %v1845_v21 = vunpack.c.l.b16 %v4615_v17 }
  0xb5   : > { %v1851_v29 = vpack.c.b16 %v1845_v21, %v1845_v21 }
  0xb7   : > { %v5804_v31 = vpop.f32.mrf.mxu3 }
  0xb9   : > { %v5806_v33 = vpop.f32.mrf.mxu2  ;;  %v804_v38 = vpop.f32.mrf.mxu0 }
  0xba   : > { %v916_v34 = vpop.f32.mrf.mxu1 }
  0xbb   : > { %v917_v40 = vadd.f32 %v916_v34, %v804_v38 }
  0xbc   : > { %1929 = vmatmul.bf16.gmra.mxu3 %v1856_v36 }
  0xbd   : > { %1615 = vmatmul.bf16.gmra.mxu1 %v1533_v35  ;;  %v1861_v35 = vrot.slane %v1851_v29, 1 }
  0xbe   : > { %1780 = vmatmul.bf16.gmra.mxu2 %v1698_v37 }
  0xbf   : > { %2106 = vmatmul.bf16.gmra.mxu0 %v2016_v39  ;;  %v814_v41 = vpop.f32.mrf.mxu3  ;;  %v1862_v39 = vsel %vm6836_vm1, %v1859_v10, %v1861_v35 }
  0xc1   : > { %v1104_v44 = vpop.f32.mrf.mxu2  ;;  %v5819_v48 = vpop.f32.mrf.mxu0 }
  0xc2   : > { %v5814_v45 = vpop.f32.mrf.mxu1  ;;  %v5817_v47 = vadd.f32 %v1104_v44, %v917_v40  ;;  %v5254_v40 = vld [vmem:[#allocation3 + $0x30] sm:$0xff] }
  0xc3   : > { %2595 = vmatpush.bf16.msra.mxu2 %v5254_v40 }
  0xc7   : > { %v5822_v53 = vpop.f32.mrf.mxu3  ;;  %2596 = vmatpush.bf16.msra.mxu2 %v5253_v52 }
  0xc9   : > { %v5824_v57 = vpop.f32.mrf.mxu2 }
  0xca   : > { %v921_v56 = vpop.f32.mrf.mxu1 }
  0xcb   : > { %v922_v59 = vadd.f32 %v921_v56, %v809_v14 }
  0xcc   : > { %v1399_v60 = vpop.f32.mrf.mxu0  ;;  %1934 = vmatmul.bf16.gmra.mxu3 %v1858_v58 }
  0xcf   : > { %2111 = vmatmul.bf16.gmra.mxu0 %v2025_v61  ;;  %v819_v63 = vpop.f32.mrf.mxu3  ;;  %v297_v61 = vlaneseq }
  0xd1   : > { %v1109_v3 = vpop.f32.mrf.mxu2  ;;  %v5871_v62 = vshrl.u32 %v297_v61, 7 }
  0xd2   : > { %v1128_v4 = vadd.f32 %v1109_v3, %v922_v59  ;;  %v5828_v5 = vpop.f32.mrf.mxu1  ;;  %v5262_v59 = vld [vmem:[#allocation3 + $0x70] sm:$0xff] }
  0xd3   : > { %2508 = vmatpush.bf16.msra.mxu1 %v5262_v59  ;;  %v311_v1 = vand.u32 65535, %v5871_v62  ;;  %v312_v8 = vshrl.u32 %v5871_v62, 16 }
  0xd4   : > { %v5831_v7 = vpop.f32.mrf.mxu0 }
  0xd5   : > { %v315_v9 = vmul.u32 52428, %v311_v1 }
  0xd7   : > { %v5833_v11 = vpop.f32.mrf.mxu3  ;;  %v318_v17 = vshll.u32 %v315_v9, 16  ;;  %2509 = vmatpush.bf16.msra.mxu1 %v5261_v12 }
  0xd9   : > { %v5835_v13 = vpop.f32.mrf.mxu2 }
  0xda   : > { %v926_v14 = vpop.f32.mrf.mxu1 }
  0xdb   : > { %v927_v16 = vadd.f32 %v926_v14, %v814_v41 }
  0xdc   : > { %v1404_v19 = vpop.f32.mrf.mxu0  ;;  %1939 = vmatmul.bf16.gmra.mxu3 %v1860_v15  ;;  %v314_v15 = vmul.u32 52429, %v311_v1 }
  0xde   : > { %vm322_vm3 = vc.u32 %v314_v15, %v318_v17 }
  0xdf   : > { %2116 = vmatmul.bf16.gmra.mxu0 %v2034_v20  ;;  %v1249_v23 = vpop.f32.mrf.mxu3  ;;  %v323_v21 = vsel %vm322_vm3, 1, %v5436_v0 }
  0xe0   : > { %v1274_v26 = vadd.f32 %v1249_v23, %v5788_v22  ;;  %v5885_v23 = vadd.s32 8, %v5871_v62 }
  0xe1   : > { %v1114_v25 = vpop.f32.mrf.mxu2 }
  0xe2   : > { %v5841_v27 = vadd.f32 %v1114_v25, %v927_v16  ;;  %v5843_v28 = vpop.f32.mrf.mxu1  ;;  %v5845_v32 = vadd.f32 %v1399_v60, %v1274_v26  ;;  %v316_v16 = vmul.u32 52429, %v312_v8  ;;  %v340_v35 = vand.u32 65535, %v5885_v23 }
  0xe4   : > { %v5847_v34 = vpop.f32.mrf.mxu0  ;;  %v320_v20 = vshll.u32 %v316_v16, 16  ;;  %v343_v51 = vmul.u32 52429, %v340_v35  ;;  %v321_v59 = vshrl.u32 %v316_v16, 16 }
  0xe7   : > { %v5849_v36 = vpop.f32.mrf.mxu3 }
  0xe9   : > { %v5851_v37 = vpop.f32.mrf.mxu2 }
  0xea   : > { %v931_v38 = vpop.f32.mrf.mxu1 }
  0xeb   : > { %v932_v22 = vadd.f32 %v931_v38, %v819_v63 }
  0xec   : > { %v1409_v41 = vpop.f32.mrf.mxu0  ;;  %1944 = vmatmul.bf16.gmra.mxu3 %v1862_v39  ;;  %v5251_v39 = vld [vmem:[#allocation3 + $0x18] sm:$0xff] }
  0xef   : > { %v1254_v42 = vpop.f32.mrf.mxu3 }
  0xf0   : > { %v1276_v44 = vadd.f32 %v1254_v42, %v5817_v47  ;;  %v5252_v47 = vld [vmem:[#allocation3 + $0x20] sm:$0xff]  ;;  %v344_v42 = vmul.u32 52428, %v340_v35 }
  0xf1   : > { %v1119_v43 = vpop.f32.mrf.mxu2  ;;  %2597 = vmatpush.bf16.msra.mxu2 %v5252_v47 }
  0xf2   : > { %v5855_v46 = vadd.f32 %v1119_v43, %v932_v22  ;;  %v5857_v49 = vpop.f32.mrf.mxu1  ;;  %v5859_v50 = vadd.f32 %v1404_v19, %v1276_v44  ;;  %v317_v19 = vmul.u32 52428, %v312_v8  ;;  %v319_v22 = vshrl.u32 %v315_v9, 16 }
  0xf3   : > { %v914_v43 = vadd.f32 %v5785_v18, %v5791_v24  ;;  %v347_v61 = vshll.u32 %v344_v42, 16  ;;  %v919_v9 = vadd.f32 %v5814_v45, %v5819_v48 }
  0xf4   : > { %v5861_v54 = vpop.f32.mrf.mxu0  ;;  %v325_v26 = vadd.s32 %v323_v21, %v317_v19 }
  0xf5   : > { %2598 = vmatpush.bf16.msra.mxu2 %v5251_v39  ;;  %vm351_vm5 = vc.u32 %v343_v51, %v347_v61  ;;  %v353_v8 = vadd.s32 %v347_v61, %v343_v51  ;;  %v1125_v18 = vadd.f32 %v5806_v33, %v914_v43  ;;  %v348_v33 = vshrl.u32 %v344_v42, 16 }
  0xf6   : > { %v352_v12 = vsel %vm351_vm5, 1, %v5436_v0  ;;  %v1127_v39 = vadd.f32 %v5824_v57, %v919_v9  ;;  %v2160_v57 = vld [vmem:[#allocation2 + $0x4] sm:$0x3] }
  0xf7   : > { %v5863_v55 = vpop.f32.mrf.mxu3  ;;  %v1275_v21 = vadd.f32 %v5849_v36, %v1125_v18 }
  0xf9   : > { %v5865_v56 = vpop.f32.mrf.mxu2 }
  0xfa   : > { %v5867_v58 = vpop.f32.mrf.mxu1 }
  0xfc   : > { %v5869_v60 = vpop.f32.mrf.mxu0 }
  0xff   : > { %v1259_v63 = vpop.f32.mrf.mxu3 }
 0x100   : > { %v1278_v2 = vadd.f32 %v1259_v63, %v1128_v4  ;;  %v324_v4 = vadd.s32 %v318_v17, %v314_v15 }
 0x101   : > { %v5874_v3 = vpop.f32.mrf.mxu2 }
 0x102   : > { %v5876_v6 = vpop.f32.mrf.mxu1  ;;  %v5879_v10 = vadd.f32 %v1409_v41, %v1278_v2  ;;  %vm326_vm4 = vc.u32 %v324_v4, %v320_v20  ;;  %v341_v41 = vshrl.u32 %v5885_v23, 16  ;;  %v5901_v2 = vadd.s32 16, %v5871_v62 }
 0x103   : > { %v327_v30 = vsel %vm326_vm4, 1, %v5436_v0  ;;  %v924_v4 = vadd.f32 %v5828_v5, %v5804_v31 }
 0x104   : > { %v5881_v14 = vpop.f32.mrf.mxu0  ;;  %v329_v40 = vadd.s32 %v327_v30, %v325_v26  ;;  %v345_v52 = vmul.u32 52429, %v341_v41  ;;  %v346_v63 = vmul.u32 52428, %v341_v41  ;;  %v369_v15 = vand.u32 65535, %v5901_v2 }
 0x105   : > { %v929_v26 = vadd.f32 %v5843_v28, %v5822_v53  ;;  %v370_v35 = vshrl.u32 %v5901_v2, 16  ;;  %v1129_v5 = vadd.f32 %v5835_v13, %v924_v4  ;;  %v1277_v53 = vadd.f32 %v5863_v55, %v1127_v39  ;;  %v2166_v55 = vld [vmem:[#allocation2 + $0x2c] sm:$0xe]  ;;  %v5271_v39 = vld [vmem:[#allocation3 + $0xb8] sm:$0xff] }
 0x106   : > { %v330_v47 = vadd.s32 %v329_v40, %v319_v22  ;;  %v349_v1 = vshll.u32 %v345_v52, 16  ;;  %v354_v20 = vadd.s32 %v352_v12, %v346_v63  ;;  %v350_v22 = vshrl.u32 %v345_v52, 16  ;;  %2713 = vmatpush.bf16.msrb.mxu3 %v5271_v39 }
 0x107   : > { %v5887_v25 = vpop.f32.mrf.mxu3  ;;  %v5924_v31 = vmul.u32 52428, %v369_v15  ;;  %v5928_v36 = vadd.f32 %v5851_v37, %v929_v26  ;;  %v1425_v28 = vadd.f32 %v5831_v7, %v1275_v21  ;;  %v372_v42 = vmul.u32 52429, %v369_v15  ;;  %v5250_v26 = vld [vmem:[#allocation3 + $0x10] sm:$0xff] }
 0x108   : > { %v331_v19 = vadd.s32 %v330_v47, %v321_v59  ;;  %vm355_vm6 = vc.u32 %v353_v8, %v349_v1  ;;  %v5934_v43 = vmul.u32 52429, %v370_v35  ;;  %v934_v13 = vadd.f32 %v5857_v49, %v5833_v11  ;;  %2599 = vmatpush.bf16.msra.mxu2 %v5250_v26 }
 0x109   : > { %v5889_v29 = vpop.f32.mrf.mxu2  ;;  %v356_v48 = vsel %vm355_vm6, 1, %v5436_v0  ;;  %v1621_v37 = vadd.f32 %v5867_v58, %v5845_v32  ;;  %v376_v59 = vshll.u32 %v5924_v31, 16  ;;  %v2161_v11 = vsel %vm5943_vm10, 0, %v2160_v57 }
 0x10a   : > { %v5893_v38 = vpop.f32.mrf.mxu1  ;;  %v358_v30 = vadd.s32 %v356_v48, %v354_v20  ;;  %v332_v40 = vshrl.u32 %v331_v19, 3  ;;  %v375_v58 = vmul.u32 52428, %v370_v35  ;;  %v5957_v63 = vadd.f32 %v5865_v56, %v934_v13  ;;  %2162 = vst [vmem:[#allocation2 + $0x4] sm:$0x3] %v2161_v11  ;;  %v3898_v13 = vld [vmem:[%s5796_s20 + $0x2c] sm:$0xe] }
 0x10b   : > { %v5960_v1 = vadd.f32 %v5847_v34, %v1277_v53  ;;  %v2167_v9 = vsel %vm5952_vm12, 0, %v2166_v55  ;;  %v378_v18 = vshll.u32 %v5934_v43, 16  ;;  %v1622_v12 = vadd.f32 %v5876_v6, %v1425_v28 }
 0x10c   : > { %v5898_v44 = vpop.f32.mrf.mxu0  ;;  %v359_v41 = vadd.s32 %v358_v30, %v348_v33  ;;  %v333_v61 = vmul.u32 10, %v332_v40  ;;  %2168 = vst [vmem:[#allocation2 + $0x2c] sm:$0xe] %v2167_v9  ;;  %vm380_vm13 = vc.u32 %v372_v42, %v376_v59  ;;  %v1279_v56 = vadd.f32 %v5887_v25, %v1129_v5 }
 0x10d   : > { %v381_v34 = vsel %vm380_vm13, 1, %v5436_v0  ;;  %v5974_v19 = vadd.s32 24, %v5871_v62  ;;  %v5977_v20 = vadd.f32 %v5889_v29, %v1622_v12  ;;  %v5986_v33 = vadd.s32 32, %v5871_v62 }
 0x10e   : > { %v360_v51 = vadd.s32 %v359_v41, %v350_v22  ;;  %v5980_v4 = vsub.s32 %v5871_v62, %v333_v61  ;;  %v383_v6 = vadd.s32 %v381_v34, %v375_v58  ;;  %v1623_v48 = vadd.f32 %v5893_v38, %v5859_v50  ;;  %v5270_v58 = vld [vmem:[#allocation3 + $0xb0] sm:$0xff] }
 0x10f   : > { %v1264_v24 = vpop.f32.mrf.mxu3  ;;  %v398_v21 = vand.u32 65535, %v5974_v19  ;;  %v399_v25 = vshrl.u32 %v5974_v19, 16  ;;  %v379_v30 = vshrl.u32 %v5934_v43, 16  ;;  %v3899_v11 = vsel %vm5952_vm12, 0, %v3898_v13  ;;  %2714 = vmatpush.bf16.msrb.mxu3 %v5270_v58 }
 0x110   : > { %v1280_v16 = vadd.f32 %v1264_v24, %v5841_v27  ;;  %v361_v32 = vshrl.u32 %v360_v51, 3  ;;  %v5968_v24 = vadd.f32 %v5874_v3, %v1621_v37  ;;  %v377_v3 = vshrl.u32 %v5924_v31, 16  ;;  %v5260_v37 = vld [vmem:[#allocation3 + $0x60] sm:$0xff]  ;;  %3900 = vst [vmem:[%s5796_s20 + $0x2c] sm:$0xe] %v3899_v11 }
 0x111   : > { %v5909_v17 = vpop.f32.mrf.mxu2  ;;  %v401_v40 = vmul.u32 52429, %v398_v21  ;;  %v5997_v41 = vmul.u32 52428, %v398_v21  ;;  %v5999_v53 = vmul.u32 52429, %v399_v25  ;;  %vm598_vm15 = vcmp.ne.s32.totalorder %v5980_v4, 0  ;;  %2510 = vmatpush.bf16.msra.mxu1 %v5260_v37  ;;  %v5282_v37 = vld [vmem:[#allocation3 + $0xf0] sm:$0xff] }
 0x112   : > { %v5914_v45 = vpop.f32.mrf.mxu1  ;;  %v5920_v27 = vadd.f32 %v5869_v60, %v1280_v16  ;;  %v362_v15 = vmul.u32 10, %v361_v32  ;;  %v382_v16 = vadd.s32 %v376_v59, %v372_v42  ;;  %vm608_vm3 = vcmp.lt.s32.totalorder %v5980_v4, 0  ;;  %v5249_v59 = vld [vmem:[#allocation3 + $0x8] sm:$0xff] }
 0x113   : > { %v404_v43 = vmul.u32 52428, %v399_v25  ;;  %v405_v57 = vshll.u32 %v5997_v41, 16  ;;  %v6014_v51 = vadd.f32 %v5909_v17, %v1623_v48  ;;  %v407_v61 = vshll.u32 %v5999_v53, 16  ;;  %2600 = vmatpush.bf16.msra.mxu2 %v5249_v59  ;;  %vm6035_vm7 = vmand %vm608_vm3, %vm598_vm15  ;;  %v5269_v25 = vld [vmem:[#allocation3 + $0xa8] sm:$0xff]  ;;  %v5268_v59 = vld [vmem:[#allocation3 + $0xa0] sm:$0xff] }
 0x114   : > { %v5932_v60 = vpop.f32.mrf.mxu0  ;;  %vm384_vm14 = vc.u32 %v382_v16, %v378_v18  ;;  %v5991_v29 = vsub.s32 %v5885_v23, %v362_v15  ;;  %v6005_v23 = vadd.f32 %v5861_v54, %v1279_v56  ;;  %v6017_v54 = vadd.s32 10, %v5980_v4  ;;  %2715 = vmatpush.bf16.msrb.mxu3 %v5269_v25 }
 0x115   : > { %v385_v35 = vsel %vm384_vm14, 1, %v5436_v0  ;;  %vm409_vm5 = vc.u32 %v401_v40, %v405_v57  ;;  %v428_v9 = vshrl.u32 %v5986_v33, 16  ;;  %v6042_v34 = vadd.s32 40, %v5871_v62 }
 0x116   : > { %v387_v5 = vadd.s32 %v385_v35, %v383_v6  ;;  %vm599_vm4 = vcmp.ne.s32.totalorder %v5991_v29, 0  ;;  %vm609_vm6 = vcmp.lt.s32.totalorder %v5991_v29, 0  ;;  %v410_v17 = vsel %vm409_vm5, 1, %v5436_v0  ;;  %v5248_v6 = vld [vmem:[#allocation3] sm:$0xff] }
 0x117   : > { %v5940_v52 = vpop.f32.mrf.mxu3  ;;  %v412_v12 = vadd.s32 %v410_v17, %v404_v43  ;;  %v406_v21 = vshrl.u32 %v5997_v41, 16  ;;  %v6047_v48 = vmul.u32 52429, %v428_v9  ;;  %vm6060_vm11 = vmand %vm609_vm6, %vm599_vm4  ;;  %2601 = vmatpush.bf16.msra.mxu2 %v5248_v6  ;;  %v457_v17 = vshrl.u32 %v6042_v34, 16 }
 0x118   : > { %v388_v42 = vadd.s32 %v387_v5, %v377_v3  ;;  %v1281_v16 = vadd.f32 %v5940_v52, %v5928_v36  ;;  %v5283_v3 = vld [vmem:[#allocation3 + $0xf8] sm:$0xff]  ;;  %v1624_v36 = vadd.f32 %v5914_v45, %v5960_v1  ;;  %v638_v45 = vsel %vm6035_vm7, %v6017_v54, %v5980_v4  ;;  %2716 = vmatpush.bf16.msrb.mxu3 %v5268_v59 }
 0x119   : > { %v5948_v47 = vpop.f32.mrf.mxu2  ;;  %2877 = vmatpush.bf16.msrb.mxu0 %v5283_v3  ;;  %vm6092_vm14 = vcmp.lt.s32.totalorder %v638_v45, 8  ;;  %v6102_v3 = vadd.s32 48, %v5871_v62 }
 0x11a   : > { %v5962_v8 = vpop.f32.mrf.mxu1  ;;  %v389_v32 = vadd.s32 %v388_v42, %v379_v30  ;;  %v6050_v30 = vadd.s32 10, %v5991_v29  ;;  %v6083_v4 = vadd.f32 %v5881_v14, %v1281_v16  ;;  %v6099_v16 = vmul.u32 52429, %v457_v17 }
 0x11b   : > { %v1625_v42 = vadd.f32 %v5962_v8, %v5879_v10  ;;  %v436_v10 = vshll.u32 %v6047_v48, 16  ;;  %v485_v45 = vand.u32 65535, %v6102_v3 }
 0x11c   : > { %v5995_v31 = vpop.f32.mrf.mxu0  ;;  %v390_v35 = vshrl.u32 %v389_v32, 3 }
 0x11d   : > { %2878 = vmatpush.bf16.msrb.mxu0 %v5282_v37  ;;  %v486_v37 = vshrl.u32 %v6102_v3, 16 }
 0x11e   : > { %v391_v54 = vmul.u32 10, %v390_v35  ;;  %v437_v35 = vshrl.u32 %v6047_v48, 16  ;;  %v5266_v48 = vld [vmem:[#allocation3 + $0x90] sm:$0xff] }
 0x11f   : > { %v1269_v22 = vpop.f32.mrf.mxu3 }
 0x120   : > { %v1282_v50 = vadd.f32 %v1269_v22, %v5855_v46  ;;  %v427_v46 = vand.u32 65535, %v5986_v33  ;;  %v6106_v6 = vsub.s32 %v5901_v2, %v391_v54 }
 0x121   : > { %v6002_v38 = vpop.f32.mrf.mxu2 }
 0x122   : > { %v6009_v28 = vpop.f32.mrf.mxu1  ;;  %v6021_v55 = vadd.f32 %v5898_v44, %v1282_v50  ;;  %v411_v44 = vadd.s32 %v405_v57, %v401_v40  ;;  %v430_v15 = vmul.u32 52429, %v427_v46  ;;  %v6039_v56 = vmul.u32 52428, %v427_v46 }
 0x123   : > { %v408_v40 = vshrl.u32 %v5999_v53, 16  ;;  %v433_v50 = vmul.u32 52428, %v428_v9  ;;  %v456_v57 = vand.u32 65535, %v6042_v34  ;;  %v6075_v46 = vadd.f32 %v5948_v47, %v1624_v36  ;;  %v5259_v53 = vld [vmem:[#allocation3 + $0x58] sm:$0xff] }
 0x124   : > { %vm413_vm9 = vc.u32 %v411_v44, %v407_v61  ;;  %v434_v22 = vshll.u32 %v6039_v56, 16  ;;  %v6071_v1 = vpop.f32.mrf.mxu0  ;;  %v6080_v61 = vadd.f32 %v6002_v38, %v1625_v42  ;;  %v639_v47 = vsel %vm6060_vm11, %v6050_v30, %v5991_v29  ;;  %2511 = vmatpush.bf16.msra.mxu1 %v5259_v53  ;;  %v6114_v30 = vld [vmem:[%s6828_s2] ss:$0 sm:$0xff]  ;;  %v5280_v42 = vld [vmem:[#allocation3 + $0xe0] sm:$0xff] }
 0x125   : > { %v414_v39 = vsel %vm413_vm9, 1, %v5436_v0  ;;  %v1626_v38 = vadd.f32 %v6009_v28, %v6005_v23  ;;  %v435_v14 = vshrl.u32 %v6039_v56, 16  ;;  %v459_v9 = vmul.u32 52429, %v456_v57 }
 0x126   : > { %v416_v41 = vadd.s32 %v414_v39, %v412_v12  ;;  %vm438_vm13 = vc.u32 %v430_v15, %v434_v22  ;;  %v440_v32 = vadd.s32 %v434_v22, %v430_v15  ;;  %v6097_v29 = vmul.u32 52428, %v456_v57  ;;  %v5267_v12 = vld [vmem:[#allocation3 + $0x98] sm:$0xff]  ;;  %v5281_v15 = vld [vmem:[#allocation3 + $0xe8] sm:$0xff] }
 0x127   : > { %v1271_v26 = vpop.f32.mrf.mxu3  ;;  %v439_v8 = vsel %vm438_vm13, 1, %v5436_v0  ;;  %2879 = vmatpush.bf16.msrb.mxu0 %v5281_v15  ;;  %2717 = vmatpush.bf16.msrb.mxu3 %v5267_v12  ;;  %v462_v22 = vmul.u32 52428, %v457_v17  ;;  %vm600_vm4 = vcmp.ne.s32.totalorder %v6106_v6, 0  ;;  %vm610_vm6 = vcmp.lt.s32.totalorder %v6106_v6, 0  ;;  %v5279_v17 = vld [vmem:[#allocation3 + $0xd8] sm:$0xff]  ;;  %v5257_v15 = vld [vmem:[#allocation3 + $0x48] sm:$0xff] }
 0x128   : > { %v417_v13 = vadd.s32 %v416_v41, %v406_v21  ;;  %v441_v58 = vadd.s32 %v439_v8, %v433_v50  ;;  %vm442_vm15 = vc.u32 %v440_v32, %v436_v10  ;;  %v1283_v23 = vadd.f32 %v1271_v26, %v5957_v63  ;;  %v5258_v41 = vld [vmem:[#allocation3 + $0x50] sm:$0xff]  ;;  %vm6153_vm9 = vmand %vm610_vm6, %vm600_vm4 }
 0x129   : > { %v1773_v52 = vpop.f32.mrf.mxu2  ;;  %v443_v56 = vsel %vm442_vm15, 1, %v5436_v0  ;;  %v463_v21 = vshll.u32 %v6097_v29, 16  ;;  %v465_v63 = vshll.u32 %v6099_v16, 16  ;;  %2512 = vmatpush.bf16.msra.mxu1 %v5258_v41  ;;  %vm6135_vm7 = vcmp.lt.s32.totalorder %v639_v47, 8 }
 0x12a   : > { %v1611_v43 = vpop.f32.mrf.mxu1  ;;  %v418_v11 = vadd.s32 %v417_v13, %v408_v40  ;;  %v445_v39 = vadd.s32 %v443_v56, %v441_v58  ;;  %v6120_v5 = vadd.f32 %v1773_v52, %v1626_v38  ;;  %v6145_v32 = vadd.f32 %v5932_v60, %v1283_v23  ;;  %v5265_v58 = vld [vmem:[#allocation3 + $0x88] sm:$0xff] }
 0x12b   : > { %vm467_vm3 = vc.u32 %v459_v9, %v463_v21  ;;  %v469_v36 = vadd.s32 %v463_v21, %v459_v9  ;;  %v1627_v57 = vadd.f32 %v1611_v43, %v5920_v27  ;;  %2880 = vmatpush.bf16.msrb.mxu0 %v5280_v42  ;;  %2718 = vmatpush.bf16.msrb.mxu3 %v5266_v48  ;;  %v6147_v47 = vmul.u32 52428, %v485_v45  ;;  %v5256_v42 = vld [vmem:[#allocation3 + $0x40] sm:$0xff] }
 0x12c   : > { %v419_v18 = vshrl.u32 %v418_v11, 3  ;;  %v446_v50 = vadd.s32 %v445_v39, %v435_v14  ;;  %v6127_v53 = vpop.f32.mrf.mxu0  ;;  %v468_v13 = vsel %vm467_vm3, 1, %v5436_v0  ;;  %v630_v11 = vadd.s32 10, %v6106_v6  ;;  %v5264_v39 = vld [vmem:[#allocation3 + $0x80] sm:$0xff] }
 0x12d   : > { %vm471_vm5 = vc.u32 %v469_v36, %v465_v63  ;;  %v470_v10 = vadd.s32 %v468_v13, %v462_v22  ;;  %v466_v9 = vshrl.u32 %v6099_v16, 16  ;;  %v6161_v23 = vmul.u32 52429, %v486_v37  ;;  %2513 = vmatpush.bf16.msra.mxu1 %v5257_v15  ;;  %v5278_v63 = vld [vmem:[#allocation3 + $0xd0] sm:$0xff]  ;;  %v5299_v15 = vld [vmem:[#allocation3 + $0x178] sm:$0xff] }
 0x12e   : > { %v420_v2 = vmul.u32 10, %v419_v18  ;;  %v447_v43 = vadd.s32 %v446_v50, %v437_v35  ;;  %v472_v8 = vsel %vm471_vm5, 1, %v5436_v0  ;;  %v488_v18 = vmul.u32 52429, %v485_v45  ;;  %3178 = vmatpush.bf16.msrb.mxu2 %v5299_v15 }
 0x12f   : > { %v1925_v28 = vpop.f32.mrf.mxu3  ;;  %2881 = vmatpush.bf16.msrb.mxu0 %v5279_v17  ;;  %2719 = vmatpush.bf16.msrb.mxu3 %v5265_v58  ;;  %vm2211_vm15 = vsmask.f32 5392  ;;  %v494_v45 = vshll.u32 %v6161_v23, 16 }
 0x130   : > { %v1950_v25 = vadd.f32 %v1925_v28, %v5968_v24  ;;  %v6140_v27 = vsub.s32 %v5974_v19, %v420_v2  ;;  %v448_v14 = vshrl.u32 %v447_v43, 3  ;;  %v492_v28 = vshll.u32 %v6147_v47, 16  ;;  %vm6247_vm2 = vmor %vm2158_vm8, %vm2211_vm15 }
 0x131   : > { %v6118_v26 = vpop.f32.mrf.mxu2  ;;  %2514 = vmatpush.bf16.msra.mxu1 %v5256_v42 }
 0x132   : > { %v2122_v24 = vadd.f32 %v5995_v31, %v1950_v25  ;;  %v6123_v40 = vpop.f32.mrf.mxu1  ;;  %v464_v31 = vshrl.u32 %v6097_v29, 16  ;;  %v474_v29 = vadd.s32 %v472_v8, %v470_v10  ;;  %vm601_vm11 = vcmp.ne.s32.totalorder %v6140_v27, 0  ;;  %v2323_v8 = vld [vmem:[#allocation2 + $0x4] sm:$0xe] }
 0x133   : > { %vm611_vm13 = vcmp.lt.s32.totalorder %v6140_v27, 0  ;;  %v640_v25 = vsel %vm6153_vm9, %v630_v11, %v6106_v6  ;;  %v449_v35 = vmul.u32 10, %v448_v14  ;;  %vm6175_vm3 = vc.u32 %v488_v18, %v492_v28  ;;  %2882 = vmatpush.bf16.msrb.mxu0 %v5278_v63  ;;  %2720 = vmatpush.bf16.msrb.mxu3 %v5264_v39 }
 0x134   : > { %v2136_v52 = vadd.f32 %v6114_v30, %v2122_v24  ;;  %v475_v21 = vadd.s32 %v474_v29, %v464_v31  ;;  %vm6187_vm4 = vmand %vm611_vm13, %vm601_vm11  ;;  %v498_v13 = vadd.s32 %v492_v28, %v488_v18  ;;  %vm6194_vm5 = vcmp.lt.s32.totalorder %v640_v25, 8  ;;  %v6198_v43 = vpop.f32.mrf.mxu0  ;;  %v5276_v28 = vld [vmem:[#allocation3 + $0xc0] sm:$0xff] }
 0x135   : > { %v491_v10 = vmul.u32 52428, %v486_v37  ;;  %v6201_v11 = vsub.s32 %v5986_v33, %v449_v35  ;;  %v497_v17 = vsel %vm6175_vm3, 1, %v5436_v0  ;;  %v6212_v14 = vadd.s32 56, %v5871_v62 }
 0x136   : > { %v2146_v54 = vmax.f32 %v2136_v52, 0.0  ;;  %v476_v24 = vadd.s32 %v475_v21, %v466_v9  ;;  %vm500_vm6 = vc.u32 %v498_v13, %v494_v45 }
 0x137   : > { %v1927_v38 = vpop.f32.mrf.mxu3  ;;  %vm602_vm9 = vcmp.ne.s32.totalorder %v6201_v11, 0  ;;  %vm612_vm11 = vcmp.lt.s32.totalorder %v6201_v11, 0  ;;  %v514_v25 = vand.u32 65535, %v6212_v14 }
 0x138   : > { %v2191_v60 = vsel %vm6092_vm14, %v2146_v54, 0.0  ;;  %v1951_v12 = vadd.f32 %v1927_v38, %v5977_v20  ;;  %v6171_v20 = vadd.s32 10, %v6140_v27  ;;  %v477_v58 = vshrl.u32 %v476_v24, 3 }
 0x139   : > { %v2201_v56 = vpack.c.bf16 %v2191_v60, %v2191_v60  ;;  %v6173_v36 = vpop.f32.mrf.mxu2  ;;  %v493_v60 = vshrl.u32 %v6147_v47, 16  ;;  %v6255_v48 = vmul.u32 52428, %v514_v25 }
 0x13a   : > { %v2123_v16 = vadd.f32 %v6071_v1, %v1951_v12  ;;  %v6180_v1 = vadd.f32 %v6118_v26, %v1627_v57  ;;  %v1616_v50 = vpop.f32.mrf.mxu1  ;;  %v1628_v26 = vadd.f32 %v6123_v40, %v6083_v4  ;;  %v5277_v4 = vld [vmem:[#allocation3 + $0xc8] sm:$0xff]  ;;  %v641_v37 = vsel %vm6187_vm4, %v6171_v20, %v6140_v27 }
 0x13b   : > { %v2214_v2 = vshrl.u32 %v2201_v56, 16  ;;  %v2217_v22 = vshll.u32 %v2201_v56, 16  ;;  %v1629_v38 = vadd.f32 %v1616_v50, %v6021_v55  ;;  %v478_v29 = vmul.u32 10, %v477_v58  ;;  %2883 = vmatpush.bf16.msrb.mxu0 %v5277_v4 }
 0x13c   : > { %v2137_v6 = vadd.f32 %v6114_v30, %v2123_v16  ;;  %v499_v12 = vadd.s32 %v497_v17, %v491_v10  ;;  %v501_v16 = vsel %vm500_vm6, 1, %v5436_v0  ;;  %v632_v20 = vadd.s32 10, %v6201_v11  ;;  %vm6240_vm6 = vmand %vm612_vm11, %vm602_vm9 }
 0x13d   : > { %v2216_v52 = vrot.slane %v2214_v2, 6  ;;  %v2219_v31 = vrot.slane %v2217_v22, 7  ;;  %vm6232_vm4 = vcmp.lt.s32.totalorder %v641_v37, 8  ;;  %v515_v22 = vshrl.u32 %v6212_v14, 16 }
 0x13e   : > { %v2147_v54 = vmax.f32 %v2137_v6, 0.0  ;;  %v503_v2 = vadd.s32 %v501_v16, %v499_v12  ;;  %v495_v50 = vshrl.u32 %v6161_v23, 16  ;;  %v6258_v45 = vadd.f32 %v6173_v36, %v1628_v26 }
 0x13f   : > { %v2220_v40 = vor.u32 %v2219_v31, %v2216_v52  ;;  %v1930_v19 = vpop.f32.mrf.mxu3  ;;  %2884 = vmatpush.bf16.msrb.mxu0 %v5276_v28  ;;  %v2107_v31 = vpop.f32.mrf.mxu0  ;;  %v642_v26 = vsel %vm6240_vm6, %v632_v20, %v6201_v11  ;;  %v6280_v37 = vmul.u32 52429, %v515_v22  ;;  %v5298_v11 = vld [vmem:[#allocation3 + $0x170] sm:$0xff]  ;;  %v520_v12 = vmul.u32 52428, %v515_v22 }
 0x140   : > { %v2192_v33 = vsel %vm6135_vm7, %v2147_v54, 0.0  ;;  %v1952_v9 = vadd.f32 %v1930_v19, %v6014_v51  ;;  %v6224_v51 = vsub.s32 %v6042_v34, %v478_v29  ;;  %v517_v19 = vmul.u32 52429, %v514_v25  ;;  %3179 = vmatpush.bf16.msrb.mxu2 %v5298_v11 }
 0x141   : > { %v2324_v55 = vsel %vm5952_vm12, %v2220_v40, %v2323_v8  ;;  %v2202_v18 = vpack.c.bf16 %v2192_v33, %v2192_v33  ;;  %v1781_v35 = vpop.f32.mrf.mxu2  ;;  %v2221_v42 = vrot.slane %v2220_v40, 4  ;;  %v504_v8 = vadd.s32 %v503_v2, %v493_v60  ;;  %v5346_v40 = vld [vmem:[#allocation2] sm:$0xe] }
 0x142   : > { %2325 = vst [vmem:[#allocation2 + $0x4] sm:$0xe] %v2324_v55  ;;  %v2124_v27 = vadd.f32 %v6127_v53, %v1952_v9  ;;  %vm603_vm13 = vcmp.ne.s32.totalorder %v6224_v51, 0  ;;  %vm613_vm3 = vcmp.lt.s32.totalorder %v6224_v51, 0  ;;  %v6252_v6 = vadd.s32 10, %v6224_v51 }
 0x143   : > { %v2223_v56 = vshrl.u32 %v2202_v18, 16  ;;  %v2226_v21 = vshll.u32 %v2202_v18, 16  ;;  %vm6264_vm8 = vmand %vm613_vm3, %vm603_vm13  ;;  %v6268_v54 = vadd.f32 %v1781_v35, %v1629_v38  ;;  %v505_v33 = vadd.s32 %v504_v8, %v495_v50 }
 0x144   : > { %v2138_v47 = vadd.f32 %v6114_v30, %v2124_v27  ;;  %v521_v29 = vshll.u32 %v6255_v48, 16  ;;  %vm6292_vm15 = vcmp.lt.s32.totalorder %v642_v26, 8  ;;  %v523_v25 = vshll.u32 %v6280_v37, 16 }
 0x145   : > { %v2225_v53 = vrot.slane %v2223_v56, 6  ;;  %v2228_v34 = vrot.slane %v2226_v21, 7  ;;  %v506_v28 = vshrl.u32 %v505_v33, 3  ;;  %v6325_v11 = vadd.s32 72, %v5871_v62 }
 0x146   : > { %v2148_v41 = vmax.f32 %v2138_v47, 0.0  ;;  %vm525_vm9 = vc.u32 %v517_v19, %v521_v29  ;;  %v527_v22 = vadd.s32 %v521_v29, %v517_v19 }
 0x147   : > { %v2229_v13 = vor.u32 %v2228_v34, %v2225_v53  ;;  %v1932_v52 = vpop.f32.mrf.mxu3  ;;  %v507_v20 = vmul.u32 10, %v506_v28  ;;  %v522_v53 = vshrl.u32 %v6255_v48, 16  ;;  %v526_v2 = vsel %vm525_vm9, 1, %v5436_v0 }
 0x148   : > { %v2193_v23 = vsel %vm6194_vm5, %v2148_v41, 0.0  ;;  %v1953_v36 = vadd.f32 %v1932_v52, %v6075_v46  ;;  %v643_v46 = vsel %vm6264_vm8, %v6252_v6, %v6224_v51  ;;  %v2109_v52 = vpop.f32.mrf.mxu0  ;;  %vm529_vm11 = vc.u32 %v527_v22, %v523_v25 }
 0x149   : > { %v2230_v58 = vsel %vm6247_vm2, %v2221_v42, %v2229_v13  ;;  %v2203_v17 = vpack.c.bf16 %v2193_v23, %v2193_v23  ;;  %v6278_v4 = vld [vmem:[#allocation2] sm:$0xff]   ;;  %v2231_v27 = vrot.slane %v2229_v13, 4  ;;  %v6303_v50 = vsub.s32 %v6102_v3, %v507_v20  ;;  %v5291_v3 = vld [vmem:[#allocation3 + $0x138] sm:$0xff] }
 0x14a   : > { %2326 = vst [vmem:[#allocation2 + $0x8] sm:$0xf] %v2230_v58  ;;  %v2125_v38 = vadd.f32 %v6198_v43, %v1953_v36  ;;  %2602 = vmatmul.bf16.vlgmr.msra.gmra.mxu2 %v6278_v4  ;;  %v5345_v9 = vld [vmem:[#allocation2] sm:$0xf0]  ;;  %v2413_v60 = vshll.u32 %v6278_v4, 16  ;;  %v2411_v15 = vshrl.u32 %v6278_v4, 16  ;;  %v528_v42 = vadd.s32 %v526_v2, %v520_v12  ;;  %3048 = vmatpush.bf16.msrb.mxu1 %v5291_v3 }
 0x14b   : > { %v2233_v55 = vshrl.u32 %v2203_v17, 16  ;;  %v2236_v18 = vshll.u32 %v2203_v17, 16  ;;  %v5347_v16 = vor.u32 %v5346_v40, %v5345_v9  ;;  %v6309_v8 = vld [vmem:[#allocation2 + $0x4] sm:$0xe]  ;;  %vm604_vm13 = vcmp.ne.s32.totalorder %v6303_v50, 0 }
 0x14c   : > { %v2139_v43 = vadd.f32 %v6114_v30, %v2125_v38  ;;  %v2415_v35 = vrot.slane %v2413_v60, 1  ;;  %vm614_vm3 = vcmp.lt.s32.totalorder %v6303_v50, 0  ;;  %v5297_v58 = vld [vmem:[#allocation3 + $0x168] sm:$0xff]  ;;  %v530_v17 = vsel %vm529_vm11, 1, %v5436_v0 }
 0x14d   : > { %v2235_v56 = vrot.slane %v2233_v55, 6  ;;  %v2238_v21 = vrot.slane %v2236_v18, 7  ;;  %v6307_v10 = vrot.slane %v5347_v16, 1  ;;  %v6316_v4 = vadd.s32 64, %v5871_v62  ;;  %vm6319_vm6 = vmand %vm614_vm3, %vm604_vm13  ;;  %3180 = vmatpush.bf16.msrb.mxu2 %v5297_v58 }
 0x14e   : > { %v2149_v47 = vmax.f32 %v2139_v43, 0.0  ;;  %v532_v38 = vadd.s32 %v530_v17, %v528_v42  ;;  %v2416_v29 = vor.u32 %v2415_v35, %v2411_v15  ;;  %vm6327_vm8 = vcmp.lt.s32.totalorder %v643_v46, 8 }
 0x14f   : > { %v2239_v34 = vor.u32 %v2238_v21, %v2235_v56  ;;  %v1935_v63 = vpop.f32.mrf.mxu3  ;;  %v543_v18 = vand.u32 65535, %v6316_v4  ;;  %v572_v25 = vand.u32 65535, %v6325_v11 }
 0x150   : > { %v2194_v41 = vsel %vm6232_vm4, %v2149_v47, 0.0  ;;  %v1954_v6 = vadd.f32 %v1935_v63, %v6080_v61  ;;  %v634_v61 = vadd.s32 10, %v6303_v50  ;;  %v533_v12 = vadd.s32 %v532_v38, %v522_v53 }
 0x151   : > { %v2240_v13 = vsel %vm6247_vm2, %v2231_v27, %v2239_v34  ;;  %v2204_v48 = vpack.c.bf16 %v2194_v41, %v2194_v41  ;;  %v2796_v27 = vunpack.c.l.b16 %v6309_v8  ;;  %v2241_v43 = vrot.slane %v2239_v34, 4 }
 0x152   : > { %2327 = vst [vmem:[#allocation2 + $0xc] sm:$0xf] %v2240_v13  ;;  %v2126_v23 = vadd.f32 %v2107_v31, %v1954_v6  ;;  %v524_v31 = vshrl.u32 %v6280_v37, 16  ;;  %v544_v37 = vshrl.u32 %v6316_v4, 16  ;;  %v644_v15 = vsel %vm6319_vm6, %v634_v61, %v6303_v50  ;;  %v5296_v6 = vld [vmem:[#allocation3 + $0x160] sm:$0xff] }
 0x153   : > { %v2243_v36 = vshrl.u32 %v2204_v48, 16  ;;  %v2246_v26 = vshll.u32 %v2204_v48, 16  ;;  %v6337_v46 = vmul.u32 52428, %v543_v18  ;;  %v546_v35 = vmul.u32 52429, %v543_v18  ;;  %v2112_v48 = vpop.f32.mrf.mxu0  ;;  %3181 = vmatpush.bf16.msrb.mxu2 %v5296_v6 }
 0x154   : > { %v2140_v40 = vadd.f32 %v6114_v30, %v2126_v23  ;;  %v534_v16 = vadd.s32 %v533_v12, %v524_v31  ;;  %v6349_v63 = vmul.u32 52429, %v544_v37  ;;  %vm6358_vm9 = vcmp.lt.s32.totalorder %v644_v15, 8 }
 0x155   : > { %v2245_v33 = vrot.slane %v2243_v36, 6  ;;  %v2248_v9 = vrot.slane %v2246_v26, 7  ;;  %v550_v50 = vshll.u32 %v6337_v46, 16  ;;  %v573_v36 = vshrl.u32 %v6325_v11, 16 }
 0x156   : > { %v2150_v60 = vmax.f32 %v2140_v40, 0.0  ;;  %v535_v22 = vshrl.u32 %v534_v16, 3  ;;  %v551_v15 = vshrl.u32 %v6337_v46, 16 }
 0x157   : > { %v2249_v28 = vor.u32 %v2248_v9, %v2245_v33  ;;  %v1937_v62 = vpop.f32.mrf.mxu3  ;;  %v549_v9 = vmul.u32 52428, %v544_v37  ;;  %vm554_vm11 = vc.u32 %v546_v35, %v550_v50  ;;  %v556_v16 = vadd.s32 %v550_v50, %v546_v35 }
 0x158   : > { %v2195_v56 = vsel %vm6292_vm15, %v2150_v60, 0.0  ;;  %v1955_v21 = vadd.f32 %v1937_v62, %v6120_v5  ;;  %v5290_v5 = vld [vmem:[#allocation3 + $0x130] sm:$0xff] }
 0x159   : > { %v2250_v47 = vsel %vm6247_vm2, %v2241_v43, %v2249_v28  ;;  %v2205_v20 = vpack.c.bf16 %v2195_v56, %v2195_v56  ;;  %v6345_v53 = vld [vmem:[#allocation2 + $0x8] sm:$0xff]  ;;  %v2251_v61 = vrot.slane %v2249_v28, 4  ;;  %3049 = vmatpush.bf16.msrb.mxu1 %v5290_v5  ;;  %v552_v43 = vshll.u32 %v6349_v63, 16 }
 0x15a   : > { %v6347_v34 = vld [vmem:[#allocation2 + $0x8] sm:$0xff]   ;;  %2328 = vst [vmem:[#allocation2 + $0x10] sm:$0xf] %v2250_v47  ;;  %v2127_v2 = vadd.f32 %v2109_v52, %v1955_v21  ;;  %2607 = vmatmul.bf16.gmra.mxu2 %v6345_v53  ;;  %v2650_v8 = vrot.slane %v6345_v53, 1  ;;  %v2418_v23 = vshll.u32 %v6345_v53, 16  ;;  %v536_v52 = vmul.u32 10, %v535_v22 }
 0x15b   : > { %v2797_v41 = vunpack.c.l.b16 %v6347_v34  ;;  %v2253_v42 = vshrl.u32 %v2205_v20, 16  ;;  %v2256_v13 = vshll.u32 %v2205_v20, 16  ;;  %v555_v21 = vsel %vm554_vm11, 1, %v5436_v0  ;;  %v5289_v47 = vld [vmem:[#allocation3 + $0x128] sm:$0xff] }
 0x15c   : > { %v2141_v3 = vadd.f32 %v6114_v30, %v2127_v2  ;;  %v2651_v40 = vsel %vm6836_vm1, %v6307_v10, %v2650_v8  ;;  %v2420_v19 = vrot.slane %v2418_v23, 1  ;;  %v537_v38 = vsub.s32 %v6212_v14, %v536_v52  ;;  %v2114_v23 = vpop.f32.mrf.mxu0 }
 0x15d   : > { %v2255_v26 = vrot.slane %v2253_v42, 6  ;;  %v2258_v58 = vrot.slane %v2256_v13, 7  ;;  %2721 = vmatmul.bf16.vlgmr.msrb.gmra.mxu3 %v2651_v40  ;;  %v6369_v33 = vpack.c.b16 %v2797_v41, %v2796_v27  ;;  %v553_v5 = vshrl.u32 %v6349_v63, 16  ;;  %3050 = vmatpush.bf16.msrb.mxu1 %v5289_v47 }
 0x15e   : > { %v2151_v31 = vmax.f32 %v2141_v3, 0.0  ;;  %v2421_v12 = vsel %vm6835_vm0, %v2416_v29, %v2420_v19  ;;  %vm605_vm13 = vcmp.ne.s32.totalorder %v537_v38, 0  ;;  %vm615_vm3 = vcmp.lt.s32.totalorder %v537_v38, 0 }
 0x15f   : > { %v2259_v18 = vor.u32 %v2258_v58, %v2255_v26  ;;  %v1940_v60 = vpop.f32.mrf.mxu3  ;;  %2515 = vmatmul.bf16.vlgmr.msra.gmra.mxu1 %v2421_v12  ;;  %vm6378_vm6 = vmand %vm615_vm3, %vm605_vm13  ;;  %v635_v29 = vadd.s32 10, %v537_v38  ;;  %v557_v46 = vadd.s32 %v555_v21, %v549_v9  ;;  %vm558_vm13 = vc.u32 %v556_v16, %v552_v43 }
 0x160   : > { %v2196_v10 = vsel %vm6327_vm8, %v2151_v31, 0.0  ;;  %v1956_v28 = vadd.f32 %v1940_v60, %v6180_v1  ;;  %v2813_v1 = vrot.slane %v6369_v33, 1  ;;  %v559_v50 = vsel %vm558_vm13, 1, %v5436_v0 }
 0x161   : > { %v2260_v14 = vsel %vm6247_vm2, %v2251_v61, %v2259_v18  ;;  %v2206_v27 = vpack.c.bf16 %v2196_v10, %v2196_v10  ;;  %v6382_v62 = vld [vmem:[#allocation2 + $0xc] sm:$0xff]  ;;  %v645_v42 = vsel %vm6378_vm6, %v635_v29, %v537_v38  ;;  %v2261_v61 = vrot.slane %v2259_v18, 4 }
 0x162   : > { %2329 = vst [vmem:[#allocation2 + $0x14] sm:$0xf] %v2260_v14  ;;  %v2128_v56 = vadd.f32 %v2112_v48, %v1956_v28  ;;  %v2814_v22 = vrot.slane %v6382_v62, 1  ;;  %v561_v63 = vadd.s32 %v559_v50, %v557_v46  ;;  %v2422_v52 = vshrl.u32 %v6345_v53, 16 }
 0x163   : > { %v2263_v20 = vshrl.u32 %v2206_v27, 16  ;;  %v2266_v2 = vshll.u32 %v2206_v27, 16  ;;  %vm6397_vm11 = vcmp.lt.s32.totalorder %v645_v42, 8  ;;  %v575_v31 = vmul.u32 52429, %v572_v25 }
 0x164   : > { %v2142_v6 = vadd.f32 %v6114_v30, %v2128_v56  ;;  %v2815_v35 = vsel %vm6836_vm1, %v2813_v1, %v2814_v22  ;;  %v6405_v38 = vmul.u32 52428, %v572_v25  ;;  %v562_v60 = vadd.s32 %v561_v63, %v551_v15 }
 0x165   : > { %v2265_v13 = vrot.slane %v2263_v20, 6  ;;  %v2268_v48 = vrot.slane %v2266_v2, 7  ;;  %2885 = vmatmul.bf16.vlgmr.msrb.gmra.mxu0 %v2815_v35  ;;  %v6412_v12 = vmul.u32 52429, %v573_v36  ;;  %v2424_v14 = vor.u32 %v2422_v52, %v2420_v19 }
 0x166   : > { %v2152_v3 = vmax.f32 %v2142_v6, 0.0  ;;  %v579_v25 = vshll.u32 %v6405_v38, 16  ;;  %v563_v29 = vadd.s32 %v562_v60, %v553_v5 }
 0x167   : > { %v2269_v26 = vor.u32 %v2268_v48, %v2265_v13  ;;  %v1942_v40 = vpop.f32.mrf.mxu3  ;;  %v581_v47 = vshll.u32 %v6412_v12, 16  ;;  %v582_v60 = vshrl.u32 %v6412_v12, 16 }
 0x168   : > { %v2197_v9 = vsel %vm6358_vm9, %v2152_v3, 0.0  ;;  %v1957_v18 = vadd.f32 %v1942_v40, %v6258_v45  ;;  %v578_v45 = vmul.u32 52428, %v573_v36  ;;  %v564_v19 = vshrl.u32 %v563_v29, 3  ;;  %v5295_v3 = vld [vmem:[#allocation3 + $0x158] sm:$0xff]  ;;  %v5294_v40 = vld [vmem:[#allocation3 + $0x150] sm:$0xff]  ;;  %v1783_v29 = vpop.f32.mrf.mxu2 }
 0x169   : > { %v2270_v43 = vsel %vm6247_vm2, %v2261_v61, %v2269_v26  ;;  %v2207_v10 = vpack.c.bf16 %v2197_v9, %v2197_v9  ;;  %v6416_v28 = vld [vmem:[#allocation2 + $0x10] sm:$0xff]  ;;  %v2271_v27 = vrot.slane %v2269_v26, 4  ;;  %vm583_vm3 = vc.u32 %v575_v31, %v579_v25  ;;  %v1618_v9 = vpop.f32.mrf.mxu1  ;;  %3182 = vmatpush.bf16.msrb.mxu2 %v5295_v3 }
 0x16a   : > { %2330 = vst [vmem:[#allocation2 + $0x18] sm:$0xf] %v2270_v43  ;;  %v2129_v37 = vadd.f32 %v2114_v23, %v1957_v18  ;;  %2612 = vmatmul.bf16.gmra.mxu2 %v6416_v28  ;;  %v2652_v1 = vrot.slane %v6416_v28, 1  ;;  %v2426_v21 = vshll.u32 %v6416_v28, 16  ;;  %v565_v42 = vmul.u32 10, %v564_v19  ;;  %v2117_v23 = vpop.f32.mrf.mxu0 }
 0x16b   : > { %v2273_v15 = vshrl.u32 %v2207_v10, 16  ;;  %v2276_v56 = vshll.u32 %v2207_v10, 16  ;;  %v584_v46 = vsel %vm583_vm3, 1, %v5436_v0  ;;  %v585_v13 = vadd.s32 %v579_v25, %v575_v31  ;;  %v5311_v31 = vld [vmem:[#allocation3 + $0x1b8] sm:$0xff] }
 0x16c   : > { %v2143_v16 = vadd.f32 %v6114_v30, %v2129_v37  ;;  %v2653_v36 = vsel %vm6836_vm1, %v2650_v8, %v2652_v1  ;;  %v6431_v5 = vrot.slane %v2426_v21, 1  ;;  %v580_v61 = vshrl.u32 %v6405_v38, 16  ;;  %v5288_v8 = vld [vmem:[#allocation3 + $0x120] sm:$0xff]  ;;  %3342 = vmatpush.bf16.msra.mxu3 %v5311_v31  ;;  %v5310_v37 = vld [vmem:[#allocation3 + $0x1b0] sm:$0xff] }
 0x16d   : > { %v2275_v20 = vrot.slane %v2273_v15, 6  ;;  %v2278_v2 = vrot.slane %v2276_v56, 7  ;;  %2726 = vmatmul.bf16.gmra.mxu3 %v2653_v36  ;;  %v586_v53 = vadd.s32 %v584_v46, %v578_v45  ;;  %v566_v52 = vsub.s32 %v6316_v4, %v565_v42  ;;  %3051 = vmatpush.bf16.msrb.mxu1 %v5288_v8  ;;  %v5287_v4 = vld [vmem:[#allocation3 + $0x118] sm:$0xff]  ;;  %v5286_v36 = vld [vmem:[#allocation3 + $0x110] sm:$0xff] }
 0x16e   : > { %v2153_v6 = vmax.f32 %v2143_v16, 0.0  ;;  %v2429_v50 = vsel %vm6835_vm0, %v2424_v14, %v6431_v5  ;;  %vm587_vm6 = vc.u32 %v585_v13, %v581_v47  ;;  %v1630_v15 = vadd.f32 %v1618_v9, %v6145_v32  ;;  %3183 = vmatpush.bf16.msrb.mxu2 %v5294_v40 }
 0x16f   : > { %v6434_v48 = vor.u32 %v2278_v2, %v2275_v20  ;;  %v1945_v35 = vpop.f32.mrf.mxu3  ;;  %2520 = vmatmul.bf16.gmra.mxu1 %v2429_v50  ;;  %v588_v43 = vsel %vm587_vm6, 1, %v5436_v0  ;;  %vm606_vm13 = vcmp.ne.s32.totalorder %v566_v52, 0  ;;  %vm616_vm3 = vcmp.lt.s32.totalorder %v566_v52, 0  ;;  %v5293_v2 = vld [vmem:[#allocation3 + $0x148] sm:$0xff] }
 0x170   : > { %v2198_v63 = vsel %vm6397_vm11, %v2153_v6, 0.0  ;;  %v1958_v26 = vadd.f32 %v1945_v35, %v6268_v54  ;;  %v5319_v54 = vld [vmem:[#allocation3 + $0x1f8] sm:$0xff]  ;;  %v636_v14 = vadd.s32 10, %v566_v52  ;;  %vm626_vm0 = vmand %vm616_vm3, %vm606_vm13  ;;  %v590_v12 = vadd.s32 %v588_v43, %v586_v53  ;;  %3343 = vmatpush.bf16.msra.mxu3 %v5310_v37  ;;  %v5292_v53 = vld [vmem:[#allocation3 + $0x140] sm:$0xff] }
 0x171   : > { %v2280_v18 = vsel %vm6247_vm2, %v2271_v27, %v6434_v48  ;;  %v2208_v38 = vpack.c.bf16 %v2198_v63, %v2198_v63  ;;  %v6448_v10 = vld [vmem:[#allocation2 + $0x14] sm:$0xff]  ;;  %3514 = vmatpush.bf16.msra.mxu0 %v5319_v54  ;;  %v6879_v47 = vmov 0  ;;  %3052 = vmatpush.bf16.msrb.mxu1 %v5287_v4  ;;  %v1795_v6 = vadd.f32 %v1783_v29, %v1630_v15  ;;  %v5285_v43 = vld [vmem:[#allocation3 + $0x108] sm:$0xff] }
 0x172   : > { %2331 = vst [vmem:[#allocation2 + $0x1c] sm:$0xf] %v2280_v18  ;;  %v2130_v25 = vadd.f32 %v2117_v23, %v1958_v26  ;;  %v2816_v0 = vrot.slane %v6448_v10, 1  ;;  %v646_v56 = vsel %vm626_vm0, %v636_v14, %v566_v52  ;;  %v591_v20 = vadd.s32 %v590_v12, %v580_v61  ;;  %v2119_v63 = vpop.f32.mrf.mxu0  ;;  %3184 = vmatpush.bf16.msrb.mxu2 %v5293_v2 }
 0x173   : > { %v2283_v27 = vshrl.u32 %v2208_v38, 16  ;;  %v2286_v45 = vshll.u32 %v2208_v38, 16  ;;  %vm6453_vm6 = vcmp.lt.s32.totalorder %v646_v56, 8  ;;  %v2281_v46 = vrot.slane %v6434_v48, 4  ;;  %v5318_v48 = vld [vmem:[#allocation3 + $0x1f0] sm:$0xff]  ;;  %v5340_v56 = vld [vmem:[%s6831_s5 + $0x38] sm:$0xff] }
 0x174   : > { %v2144_v21 = vadd.f32 %v6114_v30, %v2130_v25  ;;  %v6880_v47 = vsel %vm6453_vm6, 4294967295, %v6879_v47  ;;  %v2817_v32 = vsel %vm6836_vm1, %v2814_v22, %v2816_v0  ;;  %v592_v23 = vadd.s32 %v591_v20, %v582_v60  ;;  %v5309_v22 = vld [vmem:[#allocation3 + $0x1a8] sm:$0xff]  ;;  %v5308_v60 = vld [vmem:[#allocation3 + $0x1a0] sm:$0xff] }
 0x175   : > { %v2285_v16 = vrot.slane %v2283_v27, 6  ;;  %v2288_v19 = vrot.slane %v2286_v45, 7  ;;  %2890 = vmatmul.bf16.gmra.mxu0 %v2817_v32  ;;  %3053 = vmatpush.bf16.msrb.mxu1 %v5286_v36  ;;  %v2430_v54 = vshrl.u32 %v6416_v28, 16  ;;  %v5316_v36 = vld [vmem:[#allocation3 + $0x1e0] sm:$0xff] }
 0x176   : > { %v2154_v42 = vmax.f32 %v2144_v21, 0.0  ;;  %v593_v52 = vshrl.u32 %v592_v23, 3  ;;  %3344 = vmatpush.bf16.msra.mxu3 %v5309_v22  ;;  %3515 = vmatpush.bf16.msra.mxu0 %v5318_v48 }
 0x177   : > { %v2289_v13 = vor.u32 %v2288_v19, %v2285_v16  ;;  %v1947_v35 = vpop.f32.mrf.mxu3  ;;  %3185 = vmatpush.bf16.msrb.mxu2 %v5292_v53 }
 0x178   : > { %v2199_v50 = vsel %vm6453_vm6, %v2154_v42, 0.0  ;;  %v1959_v61 = vadd.f32 %v1947_v35, %v1795_v6  ;;  %v594_v18 = vmul.u32 10, %v593_v52  ;;  %v2946_v6 = vshll.u32 %v6369_v33, 16 }
 0x179   : > { %v2290_v3 = vsel %vm6247_vm2, %v2281_v46, %v2289_v13  ;;  %v2209_v8 = vpack.c.bf16 %v2199_v50, %v2199_v50  ;;  %v6467_v26 = vld [vmem:[#allocation2 + $0x18] sm:$0xff]  ;;  %3054 = vmatpush.bf16.msrb.mxu1 %v5285_v43  ;;  %v2291_v45 = vrot.slane %v2289_v13, 4  ;;  %v2951_v46 = vshrl.u32 %v6382_v62, 16  ;;  %v5306_v50 = vld [vmem:[#allocation3 + $0x190] sm:$0xff] }
 0x17a   : > { %2332 = vst [vmem:[#allocation2 + $0x20] sm:$0xf] %v2290_v3  ;;  %v2131_v40 = vadd.f32 %v2119_v63, %v1959_v61  ;;  %2617 = vmatmul.bf16.gmra.mxu2 %v6467_v26  ;;  %v2654_v38 = vrot.slane %v6467_v26, 1  ;;  %v2434_v14 = vshll.u32 %v6467_v26, 16  ;;  %v595_v29 = vsub.s32 %v6325_v11, %v594_v18  ;;  %v5317_v11 = vld [vmem:[#allocation3 + $0x1e8] sm:$0xff]  ;;  %3345 = vmatpush.bf16.msra.mxu3 %v5308_v60  ;;  %v5284_v43 = vld [vmem:[#allocation3 + $0x100] sm:$0xff] }
 0x17b   : > { %v2293_v31 = vshrl.u32 %v2209_v8, 16  ;;  %v2296_v9 = vshll.u32 %v2209_v8, 16  ;;  %3806 = vmatpush.bf16.msra.mxu2 %v5340_v56  ;;  %3516 = vmatpush.bf16.msra.mxu0 %v5317_v11  ;;  %v2954_v13 = vshll.u32 %v6382_v62, 16  ;;  %v2948_v61 = vrot.slane %v2946_v6, 2 }
 0x17c   : > { %v2145_v4 = vadd.f32 %v6114_v30, %v2131_v40  ;;  %v2655_v27 = vsel %vm6836_vm1, %v2652_v1, %v2654_v38  ;;  %v2432_v30 = vor.u32 %v2430_v54, %v6431_v5  ;;  %v6481_v15 = vrot.slane %v2434_v14, 1  ;;  %v5307_v1 = vld [vmem:[#allocation3 + $0x198] sm:$0xff] }
 0x17d   : > { %v2295_v25 = vrot.slane %v2293_v31, 6  ;;  %v2298_v37 = vrot.slane %v2296_v9, 7  ;;  %2731 = vmatmul.bf16.gmra.mxu3 %v2655_v27  ;;  %vm607_vm0 = vcmp.ne.s32.totalorder %v595_v29, 0  ;;  %vm617_vm13 = vcmp.lt.s32.totalorder %v595_v29, 0  ;;  %v2335_v27 = vld [vmem:[#allocation2 + $0x2c] sm:$0x3]  ;;  %3055 = vmatpush.bf16.msrb.mxu1 %v5284_v43 }
 0x17e   : > { %v2155_v12 = vmax.f32 %v2145_v4, 0.0  ;;  %v637_v28 = vadd.s32 10, %v595_v29  ;;  %vm627_vm3 = vmand %vm617_vm13, %vm607_vm0  ;;  %vm6881_vm1 = vsmask.f32 7424  ;;  %v2943_v5 = vshrl.u32 %v6369_v33, 16  ;;  %3346 = vmatpush.bf16.msra.mxu3 %v5307_v1  ;;  %v5305_v4 = vld [vmem:[#allocation3 + $0x188] sm:$0xff] }
 0x17f   : > { %v2299_v21 = vor.u32 %v2298_v37, %v2295_v25  ;;  %v2437_v16 = vsel %vm6881_vm1, %v2432_v30, %v6481_v15  ;;  %3517 = vmatpush.bf16.msra.mxu0 %v5316_v36  ;;  %v2953_v33 = vrot.slane %v2951_v46, 1  ;;  %v2956_v3 = vrot.slane %v2954_v13, 2  ;;  %v5315_v25 = vld [vmem:[#allocation3 + $0x1d8] sm:$0xff] }
 0x180   : > { %v647_v20 = vsel %vm627_vm3, %v637_v28, %v595_v29  ;;  %2525 = vmatmul.bf16.gmra.mxu1 %v2437_v16  ;;  %v2945_v32 = vrot.slane %v2943_v5, 1  ;;  %vm6884_vm1 = vcmask 1046528   ;;  %vm6885_vm0 = vsmask.f32 6400  ;;  %v5339_v37 = vld [vmem:[%s6831_s5 + $0x30] sm:$0xff]  ;;  %v5314_v28 = vld [vmem:[#allocation3 + $0x1d0] sm:$0xff] }
 0x181   : > { %v2300_v19 = vsel %vm6247_vm2, %v2291_v45, %v2299_v21  ;;  %v6491_v2 = vld [vmem:[#allocation2 + $0x1c] sm:$0xff]  ;;  %vm6494_vm6 = vcmp.lt.s32.totalorder %v647_v20, 8  ;;  %v2957_v48 = vor.u32 %v2956_v3, %v2953_v33  ;;  %v2960_v18 = vshrl.u32 %v6448_v10, 16  ;;  %v3558_v16 = vld [vmem:[#allocation2 + $0x8] sm:$0x8]  ;;  %vm6886_vm13 = vmmov %vm6884_vm1  ;;  %3807 = vmatpush.bf16.msra.mxu2 %v5339_v37 }
 0x182   : > { %2333 = vst [vmem:[#allocation2 + $0x24] sm:$0xf] %v2300_v19  ;;  %v2200_v23 = vsel %vm6494_vm6, %v2155_v12, 0.0  ;;  %v2818_v35 = vrot.slane %v6491_v2, 1  ;;  %v2949_v22 = vor.u32 %v2948_v61, %v2945_v32  ;;  %3347 = vmatpush.bf16.msra.mxu3 %v5306_v50  ;;  %v2963_v54 = vshll.u32 %v6448_v10, 16  ;;  %v6532_v36 = vld [vmem:[#allocation2 + $0x10] sm:$0xff] }
 0x183   : > { %v2210_v53 = vpack.c.bf16 %v2200_v23, %v2200_v23  ;;  %v2962_v29 = vrot.slane %v2960_v18, 1  ;;  %v2438_v12 = vshrl.u32 %v6467_v26, 16  ;;  %3518 = vmatpush.bf16.msra.mxu0 %v5315_v25  ;;  %v3262_v6 = vunpack.c.h.b16 %v6347_v34  ;;  %v6535_v32 = vld [vmem:[#allocation2 + $0x18] sm:$0xff]  ;;  %v5313_v61 = vld [vmem:[#allocation3 + $0x1c8] sm:$0xff]  ;;  %v5327_v3 = vld [vmem:[#allocation3 + $0x238] sm:$0xff] }
 0x184   : > { %v2819_v8 = vsel %vm6884_vm1, %v2816_v0, %v2818_v35  ;;  %v6509_v9 = vsel %vm6885_vm0, %v2949_v22, %v2957_v48  ;;  %v2301_v0 = vrot.slane %v2299_v21, 4  ;;  %v5304_v21 = vld [vmem:[#allocation3 + $0x180] sm:$0xff]  ;;  %v2965_v1 = vrot.slane %v2963_v54, 2  ;;  %vm6888_vm1 = vmmov %vm6885_vm0  ;;  %5356 = vmatpush.bf16.msra.mxu1 %v5327_v3 }
 0x185   : > { %v2303_v63 = vshrl.u32 %v2210_v53, 16  ;;  %v2306_v52 = vshll.u32 %v2210_v53, 16  ;;  %2895 = vmatmul.bf16.gmra.mxu0 %v2819_v8  ;;  %v2440_v19 = vor.u32 %v2438_v12, %v6481_v15  ;;  %v2969_v26 = vshrl.u32 %v6491_v2, 16  ;;  %v3092_v15 = vld [vmem:[#allocation2 + $0x4] sm:$0xc]  ;;  %v5338_v8 = vld [vmem:[%s6831_s5 + $0x28] sm:$0xff] }
 0x186   : > { %3348 = vmatpush.bf16.msra.mxu3 %v5305_v4  ;;  %v2966_v13 = vor.u32 %v2965_v1, %v2962_v29  ;;  %vm6887_vm3 = vsmask.f32 7424  ;;  %v2972_v23 = vshll.u32 %v6491_v2, 16  ;;  %v3577_v50 = vunpack.c.l.b16 %v3558_v16  ;;  %3808 = vmatpush.bf16.msra.mxu2 %v5338_v8  ;;  %v5326_v1 = vld [vmem:[#allocation3 + $0x230] sm:$0xff] }
 0x187   : > { %v2305_v40 = vrot.slane %v2303_v63, 6  ;;  %v2308_v31 = vrot.slane %v2306_v52, 7  ;;  %3519 = vmatpush.bf16.msra.mxu0 %v5314_v28  ;;  %v2971_v33 = vrot.slane %v2969_v26, 1  ;;  %v3581_v52 = vrot.slane %v6532_v36, 3 }
 0x188   : > { %v6544_v53 = vsel %vm6888_vm1, %v2957_v48, %v2966_v13  ;;  %v2974_v63 = vrot.slane %v2972_v23, 2  ;;  %v3583_v22 = vrot.slane %v6535_v32, 3  ;;  %vm3579_vm0 = vcmask 1044480   ;;  %5357 = vmatpush.bf16.msra.mxu1 %v5326_v1 }
 0x189   : > { %v6512_v60 = vld [vmem:[#allocation2 + $0x20] sm:$0xff]  ;;  %v2309_v14 = vor.u32 %v2308_v31, %v2305_v40  ;;  %v3578_v40 = vpack.c.b16 %v3262_v6, %v3577_v50  ;;  %v3111_v31 = vunpack.c.l.b16 %v3092_v15  ;;  %v3115_v12 = vrot.slane %v6382_v62, 2 }
 0x18a   : > { %2622 = vmatmul.bf16.gmra.mxu2 %v6512_v60  ;;  %v2656_v45 = vrot.slane %v6512_v60, 1  ;;  %v2442_v30 = vshll.u32 %v6512_v60, 16  ;;  %3349 = vmatpush.bf16.msra.mxu3 %v5304_v21  ;;  %v2975_v48 = vor.u32 %v2974_v63, %v2971_v33  ;;  %v6554_v18 = vsel %vm3579_vm0, %v3581_v52, %v3583_v22  ;;  %v6581_v23 = vld [vmem:[#allocation2 + $0x20] sm:$0xff]  ;;  %v3222_v63 = vld [vmem:[#allocation2 + $0x8] sm:$0xc] }
 0x18b   : > { %v2310_v56 = vsel %vm6247_vm2, %v2301_v0, %v2309_v14  ;;  %v2311_v11 = vrot.slane %v2309_v14, 4  ;;  %v3580_v43 = vrot.slane %v3578_v40, 3  ;;  %v3112_v54 = vpack.c.b16 %v2797_v41, %v3111_v31  ;;  %3520 = vmatpush.bf16.msra.mxu0 %v5313_v61  ;;  %v5312_v14 = vld [vmem:[#allocation3 + $0x1c0] sm:$0xff] }
 0x18c   : > { %2334 = vst [vmem:[#allocation2 + $0x28] sm:$0xf] %v2310_v56  ;;  %v2657_v5 = vsel %vm6886_vm13, %v2654_v38, %v2656_v45  ;;  %v6530_v20 = vrot.slane %v2442_v30, 1  ;;  %vm6889_vm13 = vmmov %vm6888_vm1  ;;  %vm6890_vm1 = vcmask 1046528   ;;  %v2446_v62 = vshrl.u32 %v6512_v60, 16  ;;  %v5325_v60 = vld [vmem:[#allocation3 + $0x228] sm:$0xff] }
 0x18d   : > { %v2336_v46 = vsel %vm5943_vm10, %v2311_v11, %v2335_v27  ;;  %2736 = vmatmul.bf16.gmra.mxu3 %v2657_v5  ;;  %v6561_v37 = vsel %vm6889_vm13, %v2966_v13, %v2975_v48  ;;  %v6564_v29 = vsel %vm3579_vm0, %v3580_v43, %v3581_v52  ;;  %v3114_v56 = vrot.slane %v3112_v54, 2  ;;  %vm6891_vm13 = vmmov %vm6890_vm1  ;;  %5358 = vmatpush.bf16.msra.mxu1 %v5325_v60 }
 0x18e   : > { %2337 = vst [vmem:[#allocation2 + $0x2c] sm:$0x3] %v2336_v46  ;;  %v2445_v38 = vsel %vm6887_vm3, %v2440_v19, %v6530_v20  ;;  %vm6838_vm3 = vcmask 1045504   ;;  %v2448_v50 = vor.u32 %v2446_v62, %v6530_v20  ;;  %v3261_v40 = vunpack.c.l.b16 %v3222_v63 }
 0x18f   : > { %3521 = vmatpush.bf16.msra.mxu0 %v5312_v14  ;;  %v3116_v16 = vsel %vm6838_vm3, %v3114_v56, %v3115_v12  ;;  %vm6893_vm3 = vsmask.f32 6400  ;;  %v3117_v31 = vrot.slane %v6448_v10, 2  ;;  %v5336_v14 = vld [vmem:[%s6831_s5 + $0x18] sm:$0xff]  ;;  %v3420_v34 = vshll.u32 %v6532_v36, 16 }
 0x190   : > { %2530 = vmatmul.bf16.gmra.mxu1 %v2445_v38  ;;  %v3283_v63 = vrot.slane %v6581_v23, 2 }
 0x193   : > { %v6556_v4 = vld [vmem:[#allocation2 + $0x24] sm:$0xff]  ;;  %3644 = vmatpush.bf16.msrb.mxu0 %v5327_v3 }
 0x194   : > { %v2364_v0 = vld [vmem:[#allocation2 + $0x28] sm:$0x1]  ;;  %v2820_v27 = vrot.slane %v6556_v4, 1  ;;  %v2978_v5 = vshrl.u32 %v6556_v4, 16  ;;  %v2981_v19 = vshll.u32 %v6556_v4, 16 }
 0x195   : > { %v2403_v25 = vunpack.c.l.b16 %v2364_v0  ;;  %v2767_v28 = vld [vmem:[#allocation2 + $0x2c] sm:$0x1]  ;;  %v3279_v0 = vrot.slane %v6532_v36, 2 }
 0x196   : > { %v2821_v41 = vsel %vm6890_vm1, %v2818_v35, %v2820_v27  ;;  %v5337_v35 = vld [vmem:[%s6831_s5 + $0x20] sm:$0xff]  ;;  %v2806_v13 = vunpack.c.l.b16 %v2767_v28  ;;  %v2980_v26 = vrot.slane %v2978_v5, 1  ;;  %v2983_v38 = vrot.slane %v2981_v19, 2  ;;  %v6596_v43 = vld [vmem:[#allocation2 + $0x28] sm:$0xff] }
 0x197   : > { %v2409_v30 = vpack.c.b16 %v2403_v25, %v2403_v25  ;;  %2900 = vmatmul.bf16.gmra.mxu0 %v2821_v41  ;;  %3809 = vmatpush.bf16.msra.mxu2 %v5337_v35  ;;  %vm6892_vm1 = vsmask.f32 7424  ;;  %v3587_v25 = vrot.slane %v6596_v43, 3  ;;  %v3119_v19 = vrot.slane %v6491_v2, 2 }
 0x198   : > { %v6584_v61 = vor.u32 %v2983_v38, %v2980_v26  ;;  %3645 = vmatpush.bf16.msrb.mxu0 %v5326_v1  ;;  %v2812_v3 = vpack.c.b16 %v2806_v13, %v2806_v13  ;;  %v3281_v35 = vrot.slane %v6535_v32, 2  ;;  %v3426_v26 = vshrl.u32 %v6535_v32, 16 }
 0x199   : > { %v2658_v11 = vrot.slane %v2409_v30, 1  ;;  %v2450_v21 = vshll.u32 %v2409_v30, 16  ;;  %v3417_v30 = vshrl.u32 %v6532_v36, 16  ;;  %v5335_v36 = vld [vmem:[%s6831_s5 + $0x10] sm:$0xff]  ;;  %v3429_v38 = vshll.u32 %v6535_v32, 16 }
 0x19a   : > { %3186 = vmatmul.bf16.vlgmr.msrb.gmra.mxu2 %v3116_v16  ;;  %v6589_v8 = vsel %vm6893_vm3, %v2975_v48, %v6584_v61  ;;  %v2822_v20 = vrot.slane %v2812_v3, 1  ;;  %v3272_v48 = vpack.c.b16 %v3262_v6, %v3261_v40  ;;  %vm6894_vm3 = vmmov %vm6891_vm13  ;;  %v3435_v40 = vshrl.u32 %v6581_v23, 16 }
 0x19b   : > { %v2452_v46 = vrot.slane %v2450_v21, 1  ;;  %v2659_v15 = vsel %vm6891_vm13, %v2656_v45, %v2658_v11  ;;  %v3585_v45 = vrot.slane %v6581_v23, 3  ;;  %vm6895_vm13 = vcmask 1045504   ;;  %3810 = vmatpush.bf16.msra.mxu2 %v5336_v14 }
 0x19c   : > { %3646 = vmatpush.bf16.msrb.mxu0 %v5325_v60  ;;  %v2823_v54 = vsel %vm6894_vm3, %v2820_v27, %v2822_v20  ;;  %v3278_v10 = vrot.slane %v3272_v48, 2  ;;  %v3409_v41 = vshrl.u32 %v3272_v48, 16  ;;  %v3412_v56 = vshll.u32 %v3272_v48, 16  ;;  %v5333_v60 = vld [vmem:[%s6831_s5] sm:$0xff] }
 0x19d   : > { %2741 = vmatmul.bf16.gmra.mxu3 %v2659_v15  ;;  %v2453_v33 = vsel %vm6892_vm1, %v2448_v50, %v2452_v46  ;;  %v6593_v52 = vsel %vm3579_vm0, %v3583_v22, %v3585_v45  ;;  %v3118_v22 = vsel %vm6895_vm13, %v3115_v12, %v3117_v31  ;;  %v6612_v6 = vsel %vm3579_vm0, %v3585_v45, %v3587_v25  ;;  %vm6896_vm1 = vmmov %vm6895_vm13  ;;  %v5324_v12 = vld [vmem:[#allocation3 + $0x220] sm:$0xff]  ;;  %v5323_v46 = vld [vmem:[#allocation3 + $0x218] sm:$0xff] }
 0x19e   : > { %v3280_v27 = vsel %vm6896_vm1, %v3278_v10, %v3279_v0  ;;  %v3419_v11 = vrot.slane %v3417_v30, 2  ;;  %v3422_v21 = vrot.slane %v3420_v34, 3  ;;  %5359 = vmatpush.bf16.msra.mxu1 %v5324_v12  ;;  %v3411_v28 = vrot.slane %v3409_v41, 2  ;;  %vm6897_vm13 = vmmov %vm6896_vm1  ;;  %v5321_v48 = vld [vmem:[#allocation3 + $0x208] sm:$0xff] }
 0x19f   : > { %v3414_v1 = vrot.slane %v3412_v56, 3  ;;  %3811 = vmatpush.bf16.msra.mxu2 %v5335_v36  ;;  %vm3407_vm3 = vsmask.f32 5376  ;;  %v3120_v13 = vsel %vm6897_vm13, %v3117_v31, %v3119_v19  ;;  %v3282_v2 = vsel %vm6896_vm1, %v3279_v0, %v3281_v35  ;;  %vm6898_vm13 = vmmov %vm6896_vm1  ;;  %v5320_v56 = vld [vmem:[#allocation3 + $0x200] sm:$0xff] }
 0x1a0   : > { %2535 = vmatmul.bf16.gmra.mxu1 %v2453_v33  ;;  %3647 = vmatpush.bf16.msrb.mxu0 %v5324_v12  ;;  %v3423_v16 = vor.u32 %v3422_v21, %v3419_v11  ;;  %v3428_v15 = vrot.slane %v3426_v26, 2  ;;  %v3431_v50 = vrot.slane %v3429_v38, 3  ;;  %v5322_v33 = vld [vmem:[#allocation3 + $0x210] sm:$0xff]  ;;  %v3121_v45 = vrot.slane %v6556_v4, 2 }
 0x1a1   : > { %v3415_v5 = vor.u32 %v3414_v1, %v3411_v28  ;;  %v3438_v31 = vshll.u32 %v6581_v23, 16  ;;  %v3284_v0 = vsel %vm6896_vm1, %v3281_v35, %v3283_v63  ;;  %v3437_v14 = vrot.slane %v3435_v40, 2 }
 0x1a2   : > { %5360 = vmatpush.bf16.msra.mxu1 %v5323_v46  ;;  %v3432_v3 = vor.u32 %v3431_v50, %v3428_v15  ;;  %v3122_v20 = vsel %vm6898_vm13, %v3119_v19, %v3121_v45  ;;  %v3285_v23 = vrot.slane %v6596_v43, 2  ;;  %vm6899_vm13 = vmmov %vm6896_vm1  ;;  %v3444_v11 = vshrl.u32 %v6596_v43, 16 }
 0x1a3   : > { %v3424_v62 = vsel %vm3407_vm3, %v3415_v5, %v3423_v16  ;;  %v3447_v21 = vshll.u32 %v6596_v43, 16 }
 0x1a4   : > { %3648 = vmatpush.bf16.msrb.mxu0 %v5323_v46  ;;  %v3433_v32 = vsel %vm3407_vm3, %v3423_v16, %v3432_v3  ;;  %v3286_v36 = vsel %vm6896_vm1, %v3283_v63, %v3285_v23  ;;  %v3232_v16 = vld [vmem:[#allocation2 + $0x30] sm:$0x3]  ;;  %v3446_v5 = vrot.slane %v3444_v11, 2 }
 0x1a5   : > { %v3449_v19 = vrot.slane %v3447_v21, 3  ;;  %v3271_v46 = vunpack.c.l.b16 %v3232_v16 }
 0x1a6   : > { %5361 = vmatpush.bf16.msra.mxu1 %v5322_v33 }
 0x1a7   : > { %2905 = vmatmul.bf16.gmra.mxu0 %v2823_v54 }
 0x1a8   : > { %3649 = vmatpush.bf16.msrb.mxu0 %v5322_v33 }
 0x1aa   : > { %3191 = vmatmul.bf16.gmra.mxu2 %v3118_v22  ;;  %5362 = vmatpush.bf16.msra.mxu1 %v5321_v48  ;;  %v3440_v22 = vrot.slane %v3438_v31, 3 }
 0x1ac   : > { %3650 = vmatpush.bf16.msrb.mxu0 %v5321_v48  ;;  %v3441_v30 = vor.u32 %v3440_v22, %v3437_v14 }
 0x1ad   : > { %3350 = vmatmul.bf16.vlgmr.msra.gmra.mxu3 %v3280_v27 }
 0x1ae   : > { %v3442_v41 = vsel %vm3407_vm3, %v3432_v3, %v3441_v30  ;;  %5363 = vmatpush.bf16.msra.mxu1 %v5320_v56  ;;  %v3277_v3 = vpack.c.b16 %v3271_v46, %v3271_v46 }
 0x1b0   : > { %3056 = vmatmul.bf16.vlgmr.msrb.gmra.mxu1 %v6509_v9  ;;  %v5334_v9 = vld [vmem:[%s6831_s5 + $0x8] sm:$0xff]  ;;  %3651 = vmatpush.bf16.msrb.mxu0 %v5320_v56  ;;  %v3287_v31 = vrot.slane %v3277_v3, 2 }
 0x1b1   : > { %3812 = vmatpush.bf16.msra.mxu2 %v5334_v9 }
 0x1b5   : > { %3813 = vmatpush.bf16.msra.mxu2 %v5333_v60 }
 0x1b7   : > { %3522 = vmatmul.bf16.vlgmr.msra.gmra.mxu0 %v3424_v62  ;;  %v3386_v62 = vld [vmem:[#allocation2 + $0x30] sm:$0x7] }
 0x1b8   : > { %v3405_v26 = vunpack.c.l.b16 %v3386_v62 }
 0x1ba   : > { %3196 = vmatmul.bf16.gmra.mxu2 %v3120_v13 }
 0x1bd   : > { %3355 = vmatmul.bf16.gmra.mxu3 %v3282_v2  ;;  %v3450_v2 = vor.u32 %v3449_v19, %v3446_v5 }
 0x1bf   : > { %v3451_v63 = vsel %vm3407_vm3, %v3441_v30, %v3450_v2 }
 0x1c0   : > { %3061 = vmatmul.bf16.gmra.mxu1 %v6544_v53  ;;  %v2921_v53 = vld [vmem:[#allocation2 + $0x2c] sm:$0x3] }
 0x1c1   : > { %v2940_v4 = vunpack.c.l.b16 %v2921_v53 }
 0x1c3   : > { %v2941_v10 = vpack.c.b16 %v2940_v4, %v2940_v4 }
 0x1c5   : > { %v3123_v27 = vrot.slane %v2941_v10, 2  ;;  %v2987_v15 = vshrl.u32 %v2941_v10, 16  ;;  %v2990_v50 = vshll.u32 %v2941_v10, 16 }
 0x1c7   : > { %3527 = vmatmul.bf16.gmra.mxu0 %v3433_v32  ;;  %v3124_v12 = vsel %vm6899_vm13, %v3121_v45, %v3123_v27  ;;  %v5328_v32 = vld [vmem:[%s5537_s16 + $0x9c] sm:$0xff]  ;;  %v2992_v53 = vrot.slane %v2990_v50, 2  ;;  %vm6900_vm13 = vmmov %vm6896_vm1  ;;  %vm6901_vm1 = vsmask.f32 6400 }
 0x1c8   : > { %v3288_v30 = vsel %vm6900_vm13, %v3285_v23, %v3287_v31  ;;  %v5329_v23 = vld [vmem:[%s5537_s16 + $0xa4] sm:$0xff] }
 0x1ca   : > { %3201 = vmatmul.bf16.gmra.mxu2 %v3122_v20  ;;  %v2989_v20 = vrot.slane %v2987_v15, 1 }
 0x1cc   : > { %v2993_v4 = vor.u32 %v2992_v53, %v2989_v20 }
 0x1cd   : > { %v2603_v54 = vpop.f32.mrf.mxu2  ;;  %3360 = vmatmul.bf16.gmra.mxu3 %v3284_v0 }
 0x1d0   : > { %3066 = vmatmul.bf16.gmra.mxu1 %v6561_v37 }
 0x1d5   : > { %v2605_v34 = vpop.f32.mrf.mxu2 }
 0x1d7   : > { %3532 = vmatmul.bf16.gmra.mxu0 %v3442_v41  ;;  %v2994_v41 = vsel %vm6901_vm1, %v6584_v61, %v2993_v4 }
 0x1da   : > { %3206 = vmatmul.bf16.gmra.mxu2 %v3124_v12 }
 0x1dc   : > { %v2516_v37 = vpop.f32.mrf.mxu1 }
 0x1dd   : > { %v2604_v28 = vadd.f32 %v2603_v54, %v2516_v37  ;;  %v2608_v1 = vpop.f32.mrf.mxu2  ;;  %3365 = vmatmul.bf16.gmra.mxu3 %v3286_v36 }
 0x1e0   : > { %3071 = vmatmul.bf16.gmra.mxu1 %v6589_v8  ;;  %v2722_v35 = vpop.f32.mrf.mxu3  ;;  %v6652_v8 = vpack.c.b16 %v3405_v26, %v3405_v26 }
 0x1e1   : > { %v2747_v9 = vadd.f32 %v2722_v35, %v2604_v28 }
 0x1e2   : > { %v2886_v13 = vpop.f32.mrf.mxu0  ;;  %v3453_v14 = vshrl.u32 %v6652_v8, 16  ;;  %v3456_v22 = vshll.u32 %v6652_v8, 16 }
 0x1e3   : > { %v6648_v38 = vadd.f32 %v2886_v13, %v2747_v9 }
 0x1e4   : > { %v2518_v33 = vpop.f32.mrf.mxu1  ;;  %v3455_v56 = vrot.slane %v3453_v14, 2  ;;  %v3458_v12 = vrot.slane %v3456_v22, 3 }
 0x1e5   : > { %v2606_v60 = vadd.f32 %v2605_v34, %v2518_v33  ;;  %v2610_v45 = vpop.f32.mrf.mxu2 }
 0x1e6   : > { %v3459_v36 = vor.u32 %v3458_v12, %v3455_v56 }
 0x1e7   : > { %3537 = vmatmul.bf16.gmra.mxu0 %v3451_v63 }
 0x1e8   : > { %v2724_v40 = vpop.f32.mrf.mxu3 }
 0x1e9   : > { %v2748_v48 = vadd.f32 %v2724_v40, %v2606_v60 }
 0x1ea   : > { %v2888_v54 = vpop.f32.mrf.mxu0  ;;  %3814 = vmatmul.bf16.vlgmr.msra.gmra.mxu2 %v5328_v32  ;;  %v5330_v32 = vld [vmem:[%s5537_s16 + $0xac] sm:$0xff] }
 0x1eb   : > { %v6654_v0 = vadd.f32 %v2888_v54, %v2748_v48 }
 0x1ec   : > { %v2521_v10 = vpop.f32.mrf.mxu1 }
 0x1ed   : > { %v2609_v34 = vadd.f32 %v2608_v1, %v2521_v10  ;;  %v2613_v27 = vpop.f32.mrf.mxu2  ;;  %3370 = vmatmul.bf16.gmra.mxu3 %v3288_v30  ;;  %v3460_v1 = vsel %vm3407_vm3, %v3450_v2, %v3459_v36 }
 0x1f0   : > { %3076 = vmatmul.bf16.gmra.mxu1 %v2994_v41  ;;  %v2727_v11 = vpop.f32.mrf.mxu3 }
 0x1f1   : > { %v2749_v21 = vadd.f32 %v2727_v11, %v2609_v34  ;;  %v5331_v34 = vld [vmem:[%s5537_s16 + $0xb4] sm:$0xff] }
 0x1f2   : > { %v2891_v37 = vpop.f32.mrf.mxu0 }
 0x1f3   : > { %v6661_v28 = vadd.f32 %v2891_v37, %v2749_v21 }
 0x1f4   : > { %v2523_v16 = vpop.f32.mrf.mxu1 }
 0x1f5   : > { %v2611_v5 = vadd.f32 %v2610_v45, %v2523_v16  ;;  %v2615_v19 = vpop.f32.mrf.mxu2 }
 0x1f7   : > { %3542 = vmatmul.bf16.gmra.mxu0 %v3460_v1 }
 0x1f8   : > { %v2729_v62 = vpop.f32.mrf.mxu3 }
 0x1f9   : > { %v2750_v35 = vadd.f32 %v2729_v62, %v2611_v5  ;;  %v5332_v62 = vld [vmem:[%s5537_s16 + $0xbc] sm:$0xff] }
 0x1fa   : > { %3819 = vmatmul.bf16.gmra.mxu2 %v5329_v23  ;;  %v2893_v61 = vpop.f32.mrf.mxu0 }
 0x1fb   : > { %v6665_v46 = vadd.f32 %v2893_v61, %v2750_v35 }
 0x1fd   : > { %v2526_v9 = vpop.f32.mrf.mxu1  ;;  %v2618_v13 = vpop.f32.mrf.mxu2 }
 0x1fe   : > { %v2614_v26 = vadd.f32 %v2613_v27, %v2526_v9  ;;  %v3589_v9 = vrot.slane %v6652_v8, 3 }
 0x200   : > { %3657 = vmatmul.bf16.vlgmr.msra.gmra.mxu1 %v6554_v18  ;;  %v2732_v15 = vpop.f32.mrf.mxu3 }
 0x201   : > { %v2751_v50 = vadd.f32 %v2732_v15, %v2614_v26 }
 0x202   : > { %v2896_v33 = vpop.f32.mrf.mxu0 }
 0x203   : > { %v6668_v3 = vadd.f32 %v2896_v33, %v2751_v50 }
 0x205   : > { %v2528_v60 = vpop.f32.mrf.mxu1  ;;  %v2620_v2 = vpop.f32.mrf.mxu2 }
 0x206   : > { %v2616_v45 = vadd.f32 %v2615_v19, %v2528_v60 }
 0x207   : > { %3652 = vmatmul.bf16.vlgmr.msrb.gmra.mxu0 %v6564_v29 }
 0x208   : > { %v2734_v63 = vpop.f32.mrf.mxu3 }
 0x209   : > { %v2752_v20 = vadd.f32 %v2734_v63, %v2616_v45 }
 0x20a   : > { %3824 = vmatmul.bf16.gmra.mxu2 %v5330_v32  ;;  %v2898_v53 = vpop.f32.mrf.mxu0 }
 0x20b   : > { %v6672_v40 = vadd.f32 %v2898_v53, %v2752_v20 }
 0x20d   : > { %v2531_v31 = vpop.f32.mrf.mxu1  ;;  %v2623_v18 = vpop.f32.mrf.mxu2 }
 0x20e   : > { %v2619_v48 = vadd.f32 %v2618_v13, %v2531_v31 }
 0x210   : > { %3662 = vmatmul.bf16.gmra.mxu1 %v6593_v52  ;;  %v2737_v54 = vpop.f32.mrf.mxu3 }
 0x211   : > { %v2753_v4 = vadd.f32 %v2737_v54, %v2619_v48 }
 0x214   : > { %v2901_v14 = vpop.f32.mrf.mxu0 }
 0x215   : > { %v2533_v22 = vpop.f32.mrf.mxu1  ;;  %v6675_v10 = vadd.f32 %v2901_v14, %v2753_v4  ;;  %v2625_v29 = vpop.f32.mrf.mxu2 }
 0x216   : > { %v2621_v30 = vadd.f32 %v2620_v2, %v2533_v22 }
 0x218   : > { %v2739_v27 = vpop.f32.mrf.mxu3 }
 0x219   : > { %v2754_v41 = vadd.f32 %v2739_v27, %v2621_v30 }
 0x21a   : > { %3829 = vmatmul.bf16.gmra.mxu2 %v5331_v34 }
 0x21c   : > { %v2903_v56 = vpop.f32.mrf.mxu0 }
 0x21d   : > { %v2536_v12 = vpop.f32.mrf.mxu1  ;;  %v6678_v11 = vadd.f32 %v2903_v56, %v2754_v41  ;;  %v3187_v37 = vpop.f32.mrf.mxu2 }
 0x21e   : > { %v2624_v21 = vadd.f32 %v2623_v18, %v2536_v12 }
 0x220   : > { %3667 = vmatmul.bf16.gmra.mxu1 %v6612_v6  ;;  %v2742_v52 = vpop.f32.mrf.mxu3  ;;  %v3590_v6 = vsel %vm3579_vm0, %v3587_v25, %v3589_v9 }
 0x221   : > { %v2755_v36 = vadd.f32 %v2742_v52, %v2624_v21 }
 0x224   : > { %v2906_v16 = vpop.f32.mrf.mxu0 }
 0x225   : > { %v2538_v5 = vpop.f32.mrf.mxu1  ;;  %v2919_v19 = vadd.f32 %v2906_v16, %v2755_v36  ;;  %v3189_v1 = vpop.f32.mrf.mxu2 }
 0x226   : > { %v2626_v23 = vadd.f32 %v2625_v29, %v2538_v5 }
 0x228   : > { %v2744_v35 = vpop.f32.mrf.mxu3 }
 0x229   : > { %v2756_v61 = vadd.f32 %v2744_v35, %v2626_v23 }
 0x22a   : > { %3834 = vmatmul.bf16.gmra.mxu2 %v5332_v62 }
 0x22c   : > { %v2908_v13 = vpop.f32.mrf.mxu0 }
 0x22d   : > { %v3057_v26 = vpop.f32.mrf.mxu1  ;;  %v2920_v15 = vadd.f32 %v2908_v13, %v2756_v61  ;;  %v3192_v33 = vpop.f32.mrf.mxu2 }
 0x22e   : > { %v3082_v50 = vadd.f32 %v3057_v26, %v6648_v38 }
 0x230   : > { %3672 = vmatmul.bf16.gmra.mxu1 %v3590_v6  ;;  %v3212_v60 = vadd.f32 %v3187_v37, %v3082_v50  ;;  %v3351_v2 = vpop.f32.mrf.mxu3 }
 0x232   : > { %v3376_v45 = vadd.f32 %v3351_v2, %v3212_v60  ;;  %v3895_v2 = vld [vmem:[%s5796_s20 + $0x4] sm:$0x3] }
 0x234   : > { %v3523_v32 = vpop.f32.mrf.mxu0 }
 0x235   : > { %v3059_v63 = vpop.f32.mrf.mxu1  ;;  %v6687_v20 = vadd.f32 %v3523_v32, %v3376_v45  ;;  %v3194_v53 = vpop.f32.mrf.mxu2  ;;  %v3896_v45 = vsel %vm5943_vm10, 0, %v3895_v2 }
 0x236   : > { %v3083_v8 = vadd.f32 %v3059_v63, %v6654_v0  ;;  %3897 = vst [vmem:[%s5796_s20 + $0x4] sm:$0x3] %v3896_v45 }
 0x238   : > { %v3213_v31 = vadd.f32 %v3189_v1, %v3083_v8  ;;  %v3353_v18 = vpop.f32.mrf.mxu3 }
 0x23a   : > { %v3377_v48 = vadd.f32 %v3353_v18, %v3213_v31 }
 0x23c   : > { %v3525_v38 = vpop.f32.mrf.mxu0 }
 0x23d   : > { %v3062_v54 = vpop.f32.mrf.mxu1  ;;  %v6690_v4 = vadd.f32 %v3525_v38, %v3377_v48  ;;  %v3197_v25 = vpop.f32.mrf.mxu2 }
 0x23e   : > { %v3084_v43 = vadd.f32 %v3062_v54, %v6661_v28 }
 0x240   : > { %v3214_v14 = vadd.f32 %v3192_v33, %v3084_v43  ;;  %v3356_v61 = vpop.f32.mrf.mxu3 }
 0x244   : > { %v3528_v22 = vpop.f32.mrf.mxu0 }
 0x245   : > { %v3064_v30 = vpop.f32.mrf.mxu1  ;;  %v3199_v34 = vpop.f32.mrf.mxu2 }
 0x246   : > { %v3085_v29 = vadd.f32 %v3064_v30, %v6665_v46 }
 0x248   : > { %v3215_v27 = vadd.f32 %v3194_v53, %v3085_v29  ;;  %v3358_v60 = vpop.f32.mrf.mxu3  ;;  %v3378_v53 = vadd.f32 %v3356_v61, %v3214_v14 }
 0x24a   : > { %v3550_v48 = vadd.f32 %v3528_v22, %v3378_v53  ;;  %v3379_v30 = vadd.f32 %v3358_v60, %v3215_v27 }
 0x24c   : > { %v3530_v41 = vpop.f32.mrf.mxu0 }
 0x24d   : > { %v3067_v0 = vpop.f32.mrf.mxu1  ;;  %v3202_v12 = vpop.f32.mrf.mxu2  ;;  %v3551_v22 = vadd.f32 %v3530_v41, %v3379_v30 }
 0x24e   : > { %v3086_v56 = vadd.f32 %v3067_v0, %v6668_v3 }
 0x250   : > { %v3216_v21 = vadd.f32 %v3197_v25, %v3086_v56  ;;  %v3361_v18 = vpop.f32.mrf.mxu3 }
 0x252   : > { %v3380_v27 = vadd.f32 %v3361_v18, %v3216_v21 }
 0x254   : > { %v3533_v37 = vpop.f32.mrf.mxu0 }
 0x255   : > { %v3069_v52 = vpop.f32.mrf.mxu1  ;;  %v3204_v16 = vpop.f32.mrf.mxu2 }
 0x256   : > { %v3087_v36 = vadd.f32 %v3069_v52, %v6672_v40 }
 0x258   : > { %v6696_v28 = vadd.f32 %v3199_v34, %v3087_v36  ;;  %v3363_v34 = vpop.f32.mrf.mxu3 }
 0x25c   : > { %v6698_v5 = vpop.f32.mrf.mxu0 }
 0x25d   : > { %v3072_v23 = vpop.f32.mrf.mxu1  ;;  %v3207_v1 = vpop.f32.mrf.mxu2 }
 0x25e   : > { %v3088_v46 = vadd.f32 %v3072_v23, %v6675_v10 }
 0x260   : > { %v6701_v62 = vadd.f32 %v3202_v12, %v3088_v46  ;;  %v3366_v57 = vpop.f32.mrf.mxu3 }
 0x264   : > { %v6703_v3 = vpop.f32.mrf.mxu0 }
 0x265   : > { %v3074_v35 = vpop.f32.mrf.mxu1  ;;  %v3209_v40 = vpop.f32.mrf.mxu2 }
 0x266   : > { %v3089_v9 = vadd.f32 %v3074_v35, %v6678_v11 }
 0x268   : > { %v6706_v13 = vadd.f32 %v3204_v16, %v3089_v9 }
 0x26c   : > { %v6708_v26 = vpop.f32.mrf.mxu0 }
 0x26d   : > { %v3077_v50 = vpop.f32.mrf.mxu1  ;;  %v3815_v6 = vpop.f32.mrf.mxu2 }
 0x26e   : > { %v3090_v33 = vadd.f32 %v3077_v50, %v2919_v19  ;;  %v6723_v19 = vld [vmem:[%s6830_s4] ss:$0 sm:$0xff] }
 0x270   : > { %v6710_v10 = vadd.f32 %v3207_v1, %v3090_v33  ;;  %v3552_v33 = vadd.f32 %v3533_v37, %v3380_v27 }
 0x274   : > { %v6716_v32 = vpop.f32.mrf.mxu0 }
 0x275   : > { %v3079_v63 = vpop.f32.mrf.mxu1  ;;  %v3817_v8 = vpop.f32.mrf.mxu2 }
 0x276   : > { %v3091_v11 = vadd.f32 %v3079_v63, %v2920_v15  ;;  %v6731_v15 = vld [vmem:[%s6832_s6] ss:$0 sm:$0xff] }
 0x278   : > { %v6718_v31 = vadd.f32 %v3209_v40, %v3091_v11 }
 0x27c   : > { %v6725_v38 = vpop.f32.mrf.mxu0 }
 0x27d   : > { %v3658_v54 = vpop.f32.mrf.mxu1  ;;  %v3820_v25 = vpop.f32.mrf.mxu2 }
 0x27e   : > { %v3680_v43 = vadd.f32 %v3658_v54, %v3550_v48 }
 0x280   : > { %v3694_v29 = vadd.f32 %v6723_v19, %v3680_v43 }
 0x282   : > { %v3842_v14 = vadd.f32 %v3820_v25, %v3694_v29 }
 0x284   : > { %v3856_v0 = vadd.f32 %v6731_v15, %v3842_v14  ;;  %v3653_v56 = vpop.f32.mrf.mxu0 }
 0x285   : > { %v3660_v12 = vpop.f32.mrf.mxu1  ;;  %v3678_v36 = vadd.f32 %v3653_v56, %v6687_v20  ;;  %v3822_v23 = vpop.f32.mrf.mxu2 }
 0x286   : > { %v3866_v52 = vmax.f32 %v3856_v0, 0.0  ;;  %v3681_v16 = vadd.f32 %v3660_v12, %v3551_v22 }
 0x287   : > { %v3692_v1 = vadd.f32 %v6723_v19, %v3678_v36 }
 0x288   : > { %v3876_v46 = vsel %vm6194_vm5, %v3866_v52, 0.0  ;;  %v3695_v35 = vadd.f32 %v6723_v19, %v3681_v16 }
 0x289   : > { %v3886_v61 = vpack.c.bf16 %v3876_v46, %v3876_v46  ;;  %v3840_v41 = vadd.f32 %v3815_v6, %v3692_v1  ;;  %v3381_v6 = vadd.f32 %v3363_v34, %v6696_v28  ;;  %v4013_v1 = vld [vmem:[%s5796_s20 + $0x4] sm:$0xe] }
 0x28a   : > { %v3843_v9 = vadd.f32 %v3822_v23, %v3695_v35 }
 0x28b   : > { %v3923_v40 = vshrl.u32 %v3886_v61, 16  ;;  %v3926_v50 = vshll.u32 %v3886_v61, 16  ;;  %v3854_v60 = vadd.f32 %v6731_v15, %v3840_v41  ;;  %v3553_v44 = vadd.f32 %v6698_v5, %v3381_v6 }
 0x28c   : > { %v3857_v20 = vadd.f32 %v6731_v15, %v3843_v9  ;;  %v3655_v21 = vpop.f32.mrf.mxu0 }
 0x28d   : > { %v3925_v2 = vrot.slane %v3923_v40, 6  ;;  %v3928_v45 = vrot.slane %v3926_v50, 7  ;;  %v3663_v63 = vpop.f32.mrf.mxu1  ;;  %v3864_v11 = vmax.f32 %v3854_v60, 0.0  ;;  %v3679_v18 = vadd.f32 %v3655_v21, %v6690_v4  ;;  %v3825_v54 = vpop.f32.mrf.mxu2 }
 0x28e   : > { %v3867_v53 = vmax.f32 %v3857_v20, 0.0  ;;  %v3682_v48 = vadd.f32 %v3663_v63, %v3552_v33  ;;  %v3368_v50 = vpop.f32.mrf.mxu3 }
 0x28f   : > { %v3874_v37 = vsel %vm6092_vm14, %v3864_v11, 0.0  ;;  %v3693_v25 = vadd.f32 %v6723_v19, %v3679_v18  ;;  %v6749_v22 = vor.u32 %v3928_v45, %v3925_v2  ;;  %v3382_v2 = vadd.f32 %v3366_v57, %v6701_v62 }
 0x290   : > { %v3877_v43 = vsel %vm6232_vm4, %v3867_v53, 0.0  ;;  %v3696_v30 = vadd.f32 %v6723_v19, %v3682_v48  ;;  %v3884_v29 = vpack.c.bf16 %v3874_v37, %v3874_v37 }
 0x291   : > { %v3887_v14 = vpack.c.bf16 %v3877_v43, %v3877_v43  ;;  %v3841_v4 = vadd.f32 %v3817_v8, %v3693_v25  ;;  %v3931_v9 = vrot.slane %v6749_v22, 4 }
 0x292   : > { %v3844_v0 = vadd.f32 %v3825_v54, %v3696_v30  ;;  %v3904_v56 = vshrl.u32 %v3884_v29, 16  ;;  %v3907_v12 = vshll.u32 %v3884_v29, 16  ;;  %v3554_v54 = vadd.f32 %v6703_v3, %v3382_v2 }
 0x293   : > { %v3933_v28 = vshrl.u32 %v3887_v14, 16  ;;  %v3936_v34 = vshll.u32 %v3887_v14, 16  ;;  %v3855_v39 = vadd.f32 %v6731_v15, %v3841_v4  ;;  %v3383_v30 = vadd.f32 %v3368_v50, %v6706_v13 }
 0x294   : > { %v3858_v52 = vadd.f32 %v6731_v15, %v3844_v0  ;;  %v3906_v36 = vrot.slane %v3904_v56, 6  ;;  %v3909_v16 = vrot.slane %v3907_v12, 7 }
 0x295   : > { %v3935_v23 = vrot.slane %v3933_v28, 6  ;;  %v3938_v27 = vrot.slane %v3936_v34, 7  ;;  %v3665_v46 = vpop.f32.mrf.mxu1  ;;  %v3865_v35 = vmax.f32 %v3855_v39, 0.0  ;;  %v3827_v41 = vpop.f32.mrf.mxu2 }
 0x296   : > { %v3868_v8 = vmax.f32 %v3858_v52, 0.0  ;;  %v3683_v61 = vadd.f32 %v3665_v46, %v3553_v44  ;;  %v3910_v40 = vor.u32 %v3909_v16, %v3906_v36  ;;  %v3371_v34 = vpop.f32.mrf.mxu3  ;;  %v3555_v16 = vadd.f32 %v6708_v26, %v3383_v30 }
 0x297   : > { %v3939_v5 = vor.u32 %v3938_v27, %v3935_v23  ;;  %v3875_v33 = vsel %vm6135_vm7, %v3865_v35, 0.0 }
 0x298   : > { %v3878_v60 = vsel %vm6292_vm15, %v3868_v8, 0.0  ;;  %v3697_v20 = vadd.f32 %v6723_v19, %v3683_v61  ;;  %v4014_v45 = vsel %vm5952_vm12, %v3910_v40, %v4013_v1  ;;  %v3885_v63 = vpack.c.bf16 %v3875_v33, %v3875_v33 }
 0x299   : > { %v3940_v21 = vsel %vm6247_vm2, %v3931_v9, %v3939_v5  ;;  %4015 = vst [vmem:[%s5796_s20 + $0x4] sm:$0xe] %v4014_v45  ;;  %v3888_v11 = vpack.c.bf16 %v3878_v60, %v3878_v60  ;;  %v3911_v4 = vrot.slane %v3910_v40, 4  ;;  %v3941_v0 = vrot.slane %v3939_v5, 4 }
 0x29a   : > { %v3845_v53 = vadd.f32 %v3827_v41, %v3697_v20  ;;  %4018 = vst [vmem:[%s5796_s20 + $0x10] sm:$0xf] %v3940_v21  ;;  %v3913_v59 = vshrl.u32 %v3885_v63, 16  ;;  %v3916_v18 = vshll.u32 %v3885_v63, 16  ;;  %v3384_v40 = vadd.f32 %v3371_v34, %v6710_v10 }
 0x29b   : > { %v3943_v48 = vshrl.u32 %v3888_v11, 16  ;;  %v3946_v51 = vshll.u32 %v3888_v11, 16  ;;  %vm6902_vm12 = vnez %v6880_v47 }
 0x29c   : > { %v3859_v6 = vadd.f32 %v6731_v15, %v3845_v53  ;;  %v3915_v57 = vrot.slane %v3913_v59, 6  ;;  %v3918_v49 = vrot.slane %v3916_v18, 7  ;;  %v3556_v2 = vadd.f32 %v6716_v32, %v3384_v40  ;;  %v4025_v40 = vld [vmem:[%s5796_s20 + $0x2c] sm:$0x3] }
 0x29d   : > { %v3668_v62 = vpop.f32.mrf.mxu1  ;;  %v3945_v37 = vrot.slane %v3943_v48, 6  ;;  %v3948_v43 = vrot.slane %v3946_v51, 7  ;;  %v3830_v25 = vpop.f32.mrf.mxu2 }
 0x29e   : > { %v3869_v29 = vmax.f32 %v3859_v6, 0.0  ;;  %v3684_v14 = vadd.f32 %v3668_v62, %v3554_v54  ;;  %v3919_v56 = vor.u32 %v3918_v49, %v3915_v57  ;;  %v3373_v45 = vpop.f32.mrf.mxu3 }
 0x29f   : > { %v3949_v12 = vor.u32 %v3948_v43, %v3945_v37  ;;  %v3385_v48 = vadd.f32 %v3373_v45, %v6718_v31 }
 0x2a0   : > { %v3879_v3 = vsel %vm6327_vm8, %v3869_v29, 0.0  ;;  %v3698_v28 = vadd.f32 %v6723_v19, %v3684_v14  ;;  %v3920_v44 = vsel %vm6247_vm2, %v3911_v4, %v3919_v56  ;;  %v3921_v39 = vrot.slane %v3919_v56, 4 }
 0x2a1   : > { %v3950_v13 = vsel %vm6247_vm2, %v3941_v0, %v3949_v12  ;;  %4016 = vst [vmem:[%s5796_s20 + $0x8] sm:$0xf] %v3920_v44  ;;  %v3889_v52 = vpack.c.bf16 %v3879_v3, %v3879_v3  ;;  %v3951_v5 = vrot.slane %v3949_v12, 4  ;;  %v3557_v30 = vadd.f32 %v6725_v38, %v3385_v48 }
 0x2a2   : > { %v3846_v36 = vadd.f32 %v3830_v25, %v3698_v28  ;;  %v3930_v55 = vsel %vm6247_vm2, %v3921_v39, %v6749_v22  ;;  %4019 = vst [vmem:[%s5796_s20 + $0x14] sm:$0xf] %v3950_v13 }
 0x2a3   : > { %4017 = vst [vmem:[%s5796_s20 + $0xc] sm:$0xf] %v3930_v55  ;;  %v3953_v23 = vshrl.u32 %v3889_v52, 16  ;;  %v3956_v27 = vshll.u32 %v3889_v52, 16 }
 0x2a4   : > { %v3860_v46 = vadd.f32 %v6731_v15, %v3846_v36 }
 0x2a5   : > { %v3670_v1 = vpop.f32.mrf.mxu1  ;;  %v3832_v8 = vpop.f32.mrf.mxu2  ;;  %v3955_v61 = vrot.slane %v3953_v23, 6  ;;  %v3958_v41 = vrot.slane %v3956_v27, 7 }
 0x2a6   : > { %v3685_v35 = vadd.f32 %v3670_v1, %v3555_v16  ;;  %v3870_v9 = vmax.f32 %v3860_v46, 0.0 }
 0x2a7   : > { %v3959_v50 = vor.u32 %v3958_v41, %v3955_v61 }
 0x2a8   : > { %v3699_v26 = vadd.f32 %v6723_v19, %v3685_v35  ;;  %v3880_v22 = vsel %vm6358_vm9, %v3870_v9, 0.0 }
 0x2a9   : > { %v3890_v33 = vpack.c.bf16 %v3880_v22, %v3880_v22  ;;  %v3960_v20 = vsel %vm6247_vm2, %v3951_v5, %v3959_v50  ;;  %v3961_v54 = vrot.slane %v3959_v50, 4 }
 0x2aa   : > { %v3847_v60 = vadd.f32 %v3832_v8, %v3699_v26  ;;  %4020 = vst [vmem:[%s5796_s20 + $0x18] sm:$0xf] %v3960_v20 }
 0x2ab   : > { %v3963_v21 = vshrl.u32 %v3890_v33, 16  ;;  %v3966_v63 = vshll.u32 %v3890_v33, 16 }
 0x2ac   : > { %v3861_v10 = vadd.f32 %v6731_v15, %v3847_v60 }
 0x2ad   : > { %v3673_v11 = vpop.f32.mrf.mxu1  ;;  %v3965_v53 = vrot.slane %v3963_v21, 6  ;;  %v3968_v59 = vrot.slane %v3966_v63, 7  ;;  %v3835_v51 = vpop.f32.mrf.mxu2 }
 0x2ae   : > { %v3871_v18 = vmax.f32 %v3861_v10, 0.0  ;;  %v3686_v17 = vadd.f32 %v3673_v11, %v3556_v2 }
 0x2af   : > { %v3969_v6 = vor.u32 %v3968_v59, %v3965_v53 }
 0x2b0   : > { %v3881_v32 = vsel %vm6397_vm11, %v3871_v18, 0.0  ;;  %v3700_v62 = vadd.f32 %v6723_v19, %v3686_v17 }
 0x2b1   : > { %v3891_v57 = vpack.c.bf16 %v3881_v32, %v3881_v32  ;;  %v3970_v49 = vsel %vm6247_vm2, %v3961_v54, %v3969_v6  ;;  %v3971_v56 = vrot.slane %v3969_v6, 4 }
 0x2b2   : > { %v3848_v37 = vadd.f32 %v3835_v51, %v3700_v62  ;;  %4021 = vst [vmem:[%s5796_s20 + $0x1c] sm:$0xf] %v3970_v49 }
 0x2b3   : > { %v3973_v43 = vshrl.u32 %v3891_v57, 16  ;;  %v3976_v25 = vshll.u32 %v3891_v57, 16 }
 0x2b4   : > { %v3862_v31 = vadd.f32 %v6731_v15, %v3848_v37 }
 0x2b5   : > { %v3975_v29 = vrot.slane %v3973_v43, 6  ;;  %v3978_v14 = vrot.slane %v3976_v25, 7  ;;  %v3675_v4 = vpop.f32.mrf.mxu1  ;;  %v3837_v38 = vpop.f32.mrf.mxu2 }
 0x2b6   : > { %v3872_v58 = vmax.f32 %v3862_v31, 0.0  ;;  %v3687_v0 = vadd.f32 %v3675_v4, %v3557_v30 }
 0x2b7   : > { %v3979_v12 = vor.u32 %v3978_v14, %v3975_v29 }
 0x2b8   : > { %v3882_v3 = vsel %vm6902_vm12, %v3872_v58, 0.0  ;;  %v3701_v28 = vadd.f32 %v6723_v19, %v3687_v0 }
 0x2b9   : > { %v3980_v34 = vsel %vm6247_vm2, %v3971_v56, %v3979_v12  ;;  %v3892_v44 = vpack.c.bf16 %v3882_v3, %v3882_v3  ;;  %v3981_v47 = vrot.slane %v3979_v12, 4 }
 0x2ba   : > { %4022 = vst [vmem:[%s5796_s20 + $0x20] sm:$0xf] %v3980_v34  ;;  %v3849_v39 = vadd.f32 %v3837_v38, %v3701_v28 }
 0x2bb   : > { %v3983_v13 = vshrl.u32 %v3892_v44, 16  ;;  %v3986_v52 = vshll.u32 %v3892_v44, 16 }
 0x2bc   : > { %v3863_v36 = vadd.f32 %v6731_v15, %v3849_v39 }
 0x2bd   : > { %v3985_v16 = vrot.slane %v3983_v13, 6  ;;  %v3988_v55 = vrot.slane %v3986_v52, 7 }
 0x2be   : > { %v3873_v23 = vmax.f32 %v3863_v36, 0.0 }
 0x2bf   : > { %v3989_v27 = vor.u32 %v3988_v55, %v3985_v16 }
 0x2c0   : > { %v3883_v19 = vsel %vm6494_vm6, %v3873_v23, 0.0 }
 0x2c1   : > { %v3990_v46 = vsel %vm6247_vm2, %v3981_v47, %v3989_v27  ;;  %v3893_v1 = vpack.c.bf16 %v3883_v19, %v3883_v19  ;;  %v3991_v41 = vrot.slane %v3989_v27, 4 }
 0x2c2   : > { %4023 = vst [vmem:[%s5796_s20 + $0x24] sm:$0xf] %v3990_v46 }
 0x2c3   : > { %v3993_v35 = vshrl.u32 %v3893_v1, 16  ;;  %v3996_v8 = vshll.u32 %v3893_v1, 16 }
 0x2c5   : > { %v3995_v61 = vrot.slane %v3993_v35, 6  ;;  %v3998_v15 = vrot.slane %v3996_v8, 7 }
 0x2c7   : > { %v3999_v9 = vor.u32 %v3998_v15, %v3995_v61 }
 0x2c9   : > { %v4000_v26 = vsel %vm6247_vm2, %v3991_v41, %v3999_v9  ;;  %v4001_v5 = vrot.slane %v3999_v9, 4 }
 0x2ca   : > { %4024 = vst [vmem:[%s5796_s20 + $0x28] sm:$0xf] %v4000_v26 }
 0x2cb   : > { %v4026_v42 = vsel %vm5943_vm10, %v4001_v5, %v4025_v40 }
 0x2cc   : > { %4027 = vst [vmem:[%s5796_s20 + $0x2c] sm:$0x3] %v4026_v42 }
 0x2cd PF: > { %s18_s24 = sadd.s32 1, %s5431_s24  }
 0x2ce   : > { %p15_p7 = scmp.ge.s32.totalorder %s18_s24, 4  }
 0x2d0   :  { %17 = sbr.rel (!%p15_p7) target bundleno = 1 (0x1), region = 102 }
 0x2d5   :  { %4049 = vsyncpa [#allocation4], 1 }
 0x2d6   :  { %4051 = vsyncpa [#allocation4 + $0x1], 1 }

</bundles_post_ra>
